<compile_context>
chip_gen: v6e
topology: v6e:2x2x1
jax: 0.10.0
libtpu: 0.0.40
codegen_flags: <defaults>
</compile_context>

<pallas_src>
import jax
import jax.numpy as jnp
from jax.experimental import pallas as pl
from jax.experimental.pallas import tpu as pltpu

EPS = 1e-5
LANE = 128


def _round_up(x, m):
    return (x + m - 1) // m * m


def _compiler_params(block_elems, scratch_elems=0):
    """'parallel' grid + explicit VMEM budget sized from the real buffers."""
    need = (2 * block_elems + scratch_elems) * 4 + (8 << 20)   # f32, 2x buffered
    try:
        cap = pltpu.get_tpu_info().vmem_capacity_bytes
    except Exception:
        cap = 128 << 20
    limit = int(max(32 << 20, min(need, cap - (8 << 20))))
    return pltpu.CompilerParams(
        dimension_semantics=("parallel",), vmem_limit_bytes=limit)


# --------------------------------------------------------------------------
# In-kernel helpers
# --------------------------------------------------------------------------
def _tile_stats(z, st_ref):
    """Per-image BN stats: row 0 = mean, row 1 = centered sum of squares."""
    co = z.shape[-1]
    mu = jnp.mean(z, axis=0, keepdims=True)            # (1, C)
    d = z - mu
    m2 = jnp.sum(d * d, axis=0, keepdims=True)         # (1, C)
    st_ref[...] = jnp.concatenate([mu, m2], axis=0).reshape(1, 2, co)


def _taps_matmul(tap, w_ref, h, w, c):
    """3x3 'same' conv as 9 tap dots accumulated in f32 (no im2col scratch)."""
    z = None
    for ky in range(3):
        for kx in range(3):
            t = ky * 3 + kx
            lhs = tap(ky, kx).reshape(h * w, c)
            p = jnp.dot(lhs, w_ref[t * c:(t + 1) * c, :],
                        preferred_element_type=jnp.float32)
            z = p if z is None else z + p
    return z


# --------------------------------------------------------------------------
# Kernels
# --------------------------------------------------------------------------
def _conv1_packed_kernel(xc_ref, w_ref, z_ref, st_ref):
    # xc_ref: (1, H*W, Kp)  wrapper-packed im2col LHS (taps contiguous on lanes)
    # w_ref : (Kp, Cout_p)  flattened + packed conv1 weights
    # z_ref : (1, H*W, Cout_p)  pre-BN conv1 output
    # st_ref: (1, 2, Cout_p)    per-image BN1 statistics
    z = jnp.dot(xc_ref[0], w_ref[...], preferred_element_type=jnp.float32)
    z_ref[...] = z.reshape(z_ref.shape)
    _tile_stats(z, st_ref)


def _conv1_taps_kernel(xp_ref, w_ref, z_ref, st_ref):
    # Fallback for large Cin: xp_ref (1, H+2, W+2, Cin_p) pre-padded image.
    _, hp, wp, ci = xp_ref.shape
    h, w = hp - 2, wp - 2
    z = _taps_matmul(lambda ky, kx: xp_ref[0, ky:ky + h, kx:kx + w, :],
                     w_ref, h, w, ci)
    z_ref[...] = z.reshape(z_ref.shape)
    _tile_stats(z, st_ref)


def _bnrelu_conv2_kernel(z1_ref, s_ref, b_ref, w_ref, z2_ref, st_ref, pad_ref):
    # z1_ref : (1, H, W, C)   conv1 pre-BN output
    # s_ref  : (1, C)         folded BN1 scale
    # b_ref  : (1, C)         folded BN1 shift
    # w_ref  : (9*C, C)       flattened conv2 weights
    # z2_ref : (1, H*W, C)    pre-BN conv2 output
    # st_ref : (1, 2, C)      per-image BN2 statistics
    # pad_ref: VMEM (H+2, W+2, C) halo'd scratch
    _, h, w, c = z1_ref.shape
    # Zero only the 1-px halo (4 thin stripes).  Re-done every step: scratch
    # is per-core and the "parallel" grid may be sharded across TensorCores,
    # so a program_id(0)==0 guard is unsafe.
    pad_ref[0:1, :, :] = jnp.zeros((1, w + 2, c), jnp.float32)
    pad_ref[h + 1:h + 2, :, :] = jnp.zeros((1, w + 2, c), jnp.float32)
    pad_ref[:, 0:1, :] = jnp.zeros((h + 2, 1, c), jnp.float32)
    pad_ref[:, w + 1:w + 2, :] = jnp.zeros((h + 2, 1, c), jnp.float32)
    # Fused BN1 (scale/shift) + ReLU, written straight into the padded buffer.
    pad_ref[1:h + 1, 1:w + 1, :] = jnp.maximum(
        z1_ref[0] * s_ref[...] + b_ref[...], 0.0)
    z = _taps_matmul(lambda ky, kx: pad_ref[ky:ky + h, kx:kx + w, :],
                     w_ref, h, w, c)
    z2_ref[...] = z.reshape(z2_ref.shape)
    _tile_stats(z, st_ref)


def _bnrelu_kernel(z_ref, s_ref, b_ref, o_ref):
    # Folded BN2 scale/shift + ReLU (lane-dense elementwise pass, in place).
    o_ref[...] = jnp.maximum(z_ref[...] * s_ref[...] + b_ref[...], 0.0)


# --------------------------------------------------------------------------
# Wrapper
# --------------------------------------------------------------------------
def _finalize_bn(stats, gamma, beta, tile_count):
    """Combine per-image (mean, M2) into folded BN scale/shift of shape (1, C)."""
    mu_t = stats[:, 0, :]                               # (T, C)
    m2_t = stats[:, 1, :]                               # (T, C)
    t = mu_t.shape[0]
    mean = jnp.mean(mu_t, axis=0)                       # equal-sized tiles
    m2 = jnp.sum(m2_t, axis=0) + tile_count * jnp.sum(
        jnp.square(mu_t - mean), axis=0)
    var = m2 / (t * tile_count)                         # biased (train-mode BN)
    scale = gamma * jax.lax.rsqrt(var + EPS)
    shift = beta - mean * scale
    return scale.reshape(1, -1), shift.reshape(1, -1)


@jax.jit
def double_conv(x_nchw, params):
    """x_nchw: (N, Cin, H, W) f32 -> (N, Cout, H, W) f32 (PyTorch semantics)."""
    w1, b1, g1, be1, w2, b2, g2, be2 = params
    del b1, b2  # conv bias cancels exactly under train-mode BatchNorm
    n, cin, h, w = x_nchw.shape
    cout = w1.shape[-1]
    cop = _round_up(cout, LANE)
    hw = h * w

    # ---- one-time wrapper-side layout prep (glue, not the hot path) ----
    x = jnp.transpose(x_nchw, (0, 2, 3, 1))                        # NHWC
    xpad = jnp.pad(x, ((0, 0), (1, 1), (1, 1), (0, 0)))            # spatial halo
    g1p, be1p = jnp.pad(g1, (0, cop - cout)), jnp.pad(be1, (0, cop - cout))
    g2p, be2p = jnp.pad(g2, (0, cop - cout)), jnp.pad(be2, (0, cop - cout))

    packed_conv1 = 9 * cin <= LANE
    if packed_conv1:
        # Small-Cin stem: pack the 9 taps contiguously on lanes -> K = 128.
        kp = _round_up(9 * cin, LANE)
        taps = [xpad[:, ky:ky + h, kx:kx + w, :]
                for ky in range(3) for kx in range(3)]
        xcol = jnp.concatenate(taps, axis=-1)                      # (n,h,w,9cin)
        xcol = jnp.pad(xcol, ((0, 0), (0, 0), (0, 0), (0, kp - 9 * cin)))
        conv1_in = xcol.reshape(n, hw, kp)
        w1f = jnp.pad(w1.reshape(9 * cin, cout),
                      ((0, kp - 9 * cin), (0, cop - cout)))         # (kp, cop)
        conv1_kernel = _conv1_packed_kernel
        conv1_in_spec = pl.BlockSpec((1, hw, kp), lambda i: (i, 0, 0))
        conv1_elems = hw * kp + kp * cop + hw * cop + 2 * cop
    else:
        cip = _round_up(cin, LANE)
        conv1_in = jnp.pad(xpad, ((0, 0), (0, 0), (0, 0), (0, cip - cin)))
        w1f = jnp.pad(w1, ((0, 0), (0, 0), (0, cip - cin), (0, cop - cout))
                      ).reshape(9 * cip, cop)
        conv1_kernel = _conv1_taps_kernel
        conv1_in_spec = pl.BlockSpec((1, h + 2, w + 2, cip),
                                     lambda i: (i, 0, 0, 0))
        conv1_elems = ((h + 2) * (w + 2) * cip + 9 * cip * cop
                       + hw * cop + 2 * cop)

    w2f = jnp.pad(w2, ((0, 0), (0, 0), (0, cop - cout), (0, cop - cout))
                  ).reshape(9 * cop, cop)
    kdim = w1f.shape[0]

    # ---- phase 1: conv1 + per-image BN1 stats ----
    z1, st1 = pl.pallas_call(
        conv1_kernel,
        grid=(n,),
        in_specs=[
            conv1_in_spec,
            pl.BlockSpec((kdim, cop), lambda i: (0, 0)),
        ],
        out_specs=(
            pl.BlockSpec((1, hw, cop), lambda i: (i, 0, 0)),
            pl.BlockSpec((1, 2, cop), lambda i: (i, 0, 0)),
        ),
        out_shape=(
            jax.ShapeDtypeStruct((n, hw, cop), jnp.float32),
            jax.ShapeDtypeStruct((n, 2, cop), jnp.float32),
        ),
        compiler_params=_compiler_params(conv1_elems, scratch_elems=hw * cop),
    )(conv1_in, w1f)

    s1, sh1 = _finalize_bn(st1, g1p, be1p, hw)

    # ---- phase 2: fused BN1+ReLU + conv2 + per-image BN2 stats ----
    z1_img = z1.reshape(n, h, w, cop)                  # free HBM reshape
    p2_elems = hw * cop + 2 * cop + 9 * cop * cop + hw * cop + 2 * cop
    p2_scratch = (h + 2) * (w + 2) * cop + hw * cop
    z2, st2 = pl.pallas_call(
        _bnrelu_conv2_kernel,
        grid=(n,),
        in_specs=[
            pl.BlockSpec((1, h, w, cop), lambda i: (i, 0, 0, 0)),
            pl.BlockSpec((1, cop), lambda i: (0, 0)),
            pl.BlockSpec((1, cop), lambda i: (0, 0)),
            pl.BlockSpec((9 * cop, cop), lambda i: (0, 0)),
        ],
        out_specs=(
            pl.BlockSpec((1, hw, cop), lambda i: (i, 0, 0)),
            pl.BlockSpec((1, 2, cop), lambda i: (i, 0, 0)),
        ),
        out_shape=(
            jax.ShapeDtypeStruct((n, hw, cop), jnp.float32),
            jax.ShapeDtypeStruct((n, 2, cop), jnp.float32),
        ),
        scratch_shapes=[pltpu.VMEM((h + 2, w + 2, cop), jnp.float32)],
        compiler_params=_compiler_params(p2_elems, scratch_elems=p2_scratch),
    )(z1_img, s1, sh1, w2f)

    s2, sh2 = _finalize_bn(st2, g2p, be2p, hw)

    # ---- phase 3: BN2 + ReLU (in place over z2) ----
    y = pl.pallas_call(
        _bnrelu_kernel,
        grid=(n,),
        in_specs=[
            pl.BlockSpec((1, hw, cop), lambda i: (i, 0, 0)),
            pl.BlockSpec((1, cop), lambda i: (0, 0)),
            pl.BlockSpec((1, cop), lambda i: (0, 0)),
        ],
        out_specs=pl.BlockSpec((1, hw, cop), lambda i: (i, 0, 0)),
        out_shape=jax.ShapeDtypeStruct((n, hw, cop), jnp.float32),
        input_output_aliases={0: 0},
        compiler_params=_compiler_params(2 * hw * cop + 2 * cop),
    )(z2, s2, sh2)

    # strip channel padding, back to NCHW
    y = y.reshape(n, h, w, cop)[..., :cout]
    return jnp.transpose(y, (0, 3, 1, 2))


# --------------------------------------------------------------------------
# Pure-JAX reference (matches PyTorch training-mode forward, incl. conv bias)
# --------------------------------------------------------------------------
def reference_double_conv(x_nchw, params):
    w1, b1, g1, be1, w2, b2, g2, be2 = params

    def conv(x, w_hwio, b):
        w_oihw = jnp.transpose(w_hwio, (3, 2, 0, 1))
        y = jax.lax.conv_general_dilated(
            x, w_oihw, window_strides=(1, 1), padding=[(1, 1), (1, 1)],
            dimension_numbers=('NCHW', 'OIHW', 'NCHW'))
        return y + b[None, :, None, None]

    def bn_relu(x, g, be):
        mean = jnp.mean(x, axis=(0, 2, 3), keepdims=True)
        var = jnp.mean(jnp.square(x - mean), axis=(0, 2, 3), keepdims=True)
        y = (x - mean) / jnp.sqrt(var + EPS)
        y = y * g[None, :, None, None] + be[None, :, None, None]
        return jnp.maximum(y, 0.0)

    y = bn_relu(conv(x_nchw, w1, b1), g1, be1)
    return bn_relu(conv(y, w2, b2), g2, be2)


def init_params(key, in_channels, out_channels):
    k1, k2, k3, k4 = jax.random.split(key, 4)
    # Weights stored as (kh, kw, cin, cout) for the kernel-side flattening.
    w1 = 0.1 * jax.random.normal(k1, (3, 3, in_channels, out_channels), jnp.float32)
    b1 = 0.1 * jax.random.normal(k2, (out_channels,), jnp.float32)
    w2 = 0.1 * jax.random.normal(k3, (3, 3, out_channels, out_channels), jnp.float32)
    b2 = 0.1 * jax.random.normal(k4, (out_channels,), jnp.float32)
    # BatchNorm affine params: PyTorch defaults (gamma=1, beta=0).
    g1 = jnp.ones((out_channels,), jnp.float32)
    be1 = jnp.zeros((out_channels,), jnp.float32)
    g2 = jnp.ones((out_channels,), jnp.float32)
    be2 = jnp.zeros((out_channels,), jnp.float32)
    return (w1, b1, g1, be1, w2, b2, g2, be2)


if __name__ == "__main__":
    key = jax.random.PRNGKey(0)
    kx_, kp_ = jax.random.split(key)

    N, Cin, Cout, H, W = 2, 4, 8, 16, 16
    x = jax.random.normal(kx_, (N, Cin, H, W), jnp.float32)
    params = init_params(kp_, Cin, Cout)

    out = jax.block_until_ready(double_conv(x, params))
    ref = jax.block_until_ready(reference_double_conv(x, params))

    assert out.shape == (N, Cout, H, W), out.shape
    max_err = float(jnp.max(jnp.abs(out - ref)))
    assert jnp.allclose(out, ref, atol=1e-3, rtol=1e-3), max_err
    print("KERNEL_OK")
</pallas_src>

<mosaic_0001>
module attributes {stable_mosaic.version = 11 : i64} {
  func.func @_conv1_packed_kernel(%arg0: i32, %arg1: memref<1x256x128xf32, #tpu.memory_space<vmem>>, %arg2: memref<128x128xf32, #tpu.memory_space<vmem>>, %arg3: memref<1x256x128xf32, #tpu.memory_space<vmem>>, %arg4: memref<1x2x128xf32, #tpu.memory_space<vmem>>) attributes {dimension_semantics = [#tpu.dimension_semantics<parallel>], iteration_bounds = array<i64: 2>, scalar_prefetch = 0 : i64, scratch_operands = 0 : i64, tpu.core_type = #tpu.core_type<tc>, window_params = [{transform_indices = @transform_0, window_bounds = array<i64: 1, 256, 128>}, {pipeline_mode = #tpu.pipeline_mode<synchronous>, transform_indices = @transform_1, window_bounds = array<i64: 128, 128>}, {transform_indices = @transform_2, window_bounds = array<i64: 1, 256, 128>}, {transform_indices = @transform_3, window_bounds = array<i64: 1, 2, 128>}]} {
    %c0 = arith.constant 0 : index
    %c0_0 = arith.constant 0 : index
    %c0_1 = arith.constant 0 : index
    %0 = vector.load %arg1[%c0, %c0_0, %c0_1] : memref<1x256x128xf32, #tpu.memory_space<vmem>>, vector<1x256x128xf32>
    %1 = vector.shape_cast %0 : vector<1x256x128xf32> to vector<256x128xf32>
    %c0_2 = arith.constant 0 : index
    %c0_3 = arith.constant 0 : index
    %2 = vector.load %arg2[%c0_2, %c0_3] : memref<128x128xf32, #tpu.memory_space<vmem>>, vector<128x128xf32>
    %cst = arith.constant dense<0.000000e+00> : vector<256x128xf32>
    %3 = tpu.matmul %1, %2, %cst {dimension_numbers = #tpu.dot_dimension_numbers<[1], [0], [0], [1], [0, 0, 1, 1], [], []>} : vector<256x128xf32>, vector<128x128xf32>, vector<256x128xf32> -> vector<256x128xf32>
    %4 = vector.shape_cast %3 : vector<256x128xf32> to vector<1x256x128xf32>
    %c0_4 = arith.constant 0 : index
    %c0_5 = arith.constant 0 : index
    %c0_6 = arith.constant 0 : index
    %5 = vector.load %arg3[%c0_4, %c0_5, %c0_6] : memref<1x256x128xf32, #tpu.memory_space<vmem>>, vector<1x256x128xf32>
    tpu.vector_store %arg3[%c0_4, %c0_5, %c0_6], %4 {strides = array<i32>} : memref<1x256x128xf32, #tpu.memory_space<vmem>>, vector<1x256x128xf32>,
    %cst_7 = arith.constant dense<0.000000e+00> : vector<128xf32>
    %6 = vector.multi_reduction <add>, %3, %cst_7 [0] : vector<256x128xf32> to vector<128xf32>
    %7 = vector.shape_cast %6 : vector<128xf32> to vector<1x128xf32>
    %cst_8 = arith.constant 2.560000e+02 : f32
    %8 = vector.broadcast %cst_8 : f32 to vector<1x128xf32>
    %9 = arith.divf %7, %8 : vector<1x128xf32>
    %10 = vector.broadcast %9 : vector<1x128xf32> to vector<256x128xf32>
    %11 = arith.subf %3, %10 : vector<256x128xf32>
    %12 = arith.mulf %11, %11 : vector<256x128xf32>
    %cst_9 = arith.constant dense<0.000000e+00> : vector<128xf32>
    %13 = vector.multi_reduction <add>, %12, %cst_9 [0] : vector<256x128xf32> to vector<128xf32>
    %14 = vector.shape_cast %13 : vector<128xf32> to vector<1x128xf32>
    %15 = tpu.concatenate %9, %14 in 0 : vector<1x128xf32>, vector<1x128xf32> -> vector<2x128xf32>
    %16 = vector.shape_cast %15 : vector<2x128xf32> to vector<1x2x128xf32>
    %c0_10 = arith.constant 0 : index
    %c0_11 = arith.constant 0 : index
    %c0_12 = arith.constant 0 : index
    %17 = vector.load %arg4[%c0_10, %c0_11, %c0_12] : memref<1x2x128xf32, #tpu.memory_space<vmem>>, vector<1x2x128xf32>
    tpu.vector_store %arg4[%c0_10, %c0_11, %c0_12], %16 {strides = array<i32>} : memref<1x2x128xf32, #tpu.memory_space<vmem>>, vector<1x2x128xf32>,
    return
  }
  func.func @transform_0(%arg0: i32) -> (i32, i32, i32) {
    %c0_i32 = arith.constant 0 : i32
    %c0_i32_0 = arith.constant 0 : i32
    %c0_i32_1 = arith.constant 0 : i32
    return %arg0, %c0_i32, %c0_i32_0 : i32, i32, i32
  }
  func.func @transform_1(%arg0: i32) -> (i32, i32) {
    %c0_i32 = arith.constant 0 : i32
    %c0_i32_0 = arith.constant 0 : i32
    %c0_i32_1 = arith.constant 0 : i32
    return %c0_i32, %c0_i32_0 : i32, i32
  }
  func.func @transform_2(%arg0: i32) -> (i32, i32, i32) {
    %c0_i32 = arith.constant 0 : i32
    %c0_i32_0 = arith.constant 0 : i32
    %c0_i32_1 = arith.constant 0 : i32
    return %arg0, %c0_i32, %c0_i32_0 : i32, i32, i32
  }
  func.func @transform_3(%arg0: i32) -> (i32, i32, i32) {
    %c0_i32 = arith.constant 0 : i32
    %c0_i32_0 = arith.constant 0 : i32
    %c0_i32_1 = arith.constant 0 : i32
    return %arg0, %c0_i32, %c0_i32_0 : i32, i32, i32
  }
}

module attributes {stable_mosaic.version = 11 : i64} {
  func.func @_bnrelu_conv2_kernel(%arg0: i32, %arg1: memref<1x16x16x128xf32, #tpu.memory_space<vmem>>, %arg2: memref<1x128xf32, #tpu.memory_space<vmem>>, %arg3: memref<1x128xf32, #tpu.memory_space<vmem>>, %arg4: memref<1152x128xf32, #tpu.memory_space<vmem>>, %arg5: memref<1x256x128xf32, #tpu.memory_space<vmem>>, %arg6: memref<1x2x128xf32, #tpu.memory_space<vmem>>, %arg7: memref<18x18x128xf32, #tpu.memory_space<vmem>>) attributes {dimension_semantics = [#tpu.dimension_semantics<parallel>], iteration_bounds = array<i64: 2>, scalar_prefetch = 0 : i64, scratch_operands = 1 : i64, tpu.core_type = #tpu.core_type<tc>, window_params = [{transform_indices = @transform_0, window_bounds = array<i64: 1, 16, 16, 128>}, {pipeline_mode = #tpu.pipeline_mode<synchronous>, transform_indices = @transform_1, window_bounds = array<i64: 1, 128>}, {pipeline_mode = #tpu.pipeline_mode<synchronous>, transform_indices = @transform_2, window_bounds = array<i64: 1, 128>}, {pipeline_mode = #tpu.pipeline_mode<synchronous>, transform_indices = @transform_3, window_bounds = array<i64: 1152, 128>}, {transform_indices = @transform_4, window_bounds = array<i64: 1, 256, 128>}, {transform_indices = @transform_5, window_bounds = array<i64: 1, 2, 128>}]} {
    %cst = arith.constant 0.000000e+00 : f32
    %0 = vector.broadcast %cst : f32 to vector<1x18x128xf32>
    %c0 = arith.constant 0 : index
    %c0_0 = arith.constant 0 : index
    %c0_1 = arith.constant 0 : index
    %1 = vector.load %arg7[%c0, %c0_0, %c0_1] : memref<18x18x128xf32, #tpu.memory_space<vmem>>, vector<1x18x128xf32>
    tpu.vector_store %arg7[%c0, %c0_0, %c0_1], %0 {strides = array<i32>} : memref<18x18x128xf32, #tpu.memory_space<vmem>>, vector<1x18x128xf32>,
    %cst_2 = arith.constant 0.000000e+00 : f32
    %2 = vector.broadcast %cst_2 : f32 to vector<1x18x128xf32>
    %c17 = arith.constant 17 : index
    %c0_3 = arith.constant 0 : index
    %c0_4 = arith.constant 0 : index
    %3 = vector.load %arg7[%c17, %c0_3, %c0_4] : memref<18x18x128xf32, #tpu.memory_space<vmem>>, vector<1x18x128xf32>
    tpu.vector_store %arg7[%c17, %c0_3, %c0_4], %2 {strides = array<i32>} : memref<18x18x128xf32, #tpu.memory_space<vmem>>, vector<1x18x128xf32>,
    %cst_5 = arith.constant 0.000000e+00 : f32
    %4 = vector.broadcast %cst_5 : f32 to vector<18x1x128xf32>
    %c0_6 = arith.constant 0 : index
    %c0_7 = arith.constant 0 : index
    %c0_8 = arith.constant 0 : index
    %5 = vector.load %arg7[%c0_6, %c0_7, %c0_8] : memref<18x18x128xf32, #tpu.memory_space<vmem>>, vector<18x1x128xf32>
    tpu.vector_store %arg7[%c0_6, %c0_7, %c0_8], %4 {strides = array<i32>} : memref<18x18x128xf32, #tpu.memory_space<vmem>>, vector<18x1x128xf32>,
    %cst_9 = arith.constant 0.000000e+00 : f32
    %6 = vector.broadcast %cst_9 : f32 to vector<18x1x128xf32>
    %c0_10 = arith.constant 0 : index
    %c17_11 = arith.constant 17 : index
    %c0_12 = arith.constant 0 : index
    %7 = vector.load %arg7[%c0_10, %c17_11, %c0_12] : memref<18x18x128xf32, #tpu.memory_space<vmem>>, vector<18x1x128xf32>
    tpu.vector_store %arg7[%c0_10, %c17_11, %c0_12], %6 {strides = array<i32>} : memref<18x18x128xf32, #tpu.memory_space<vmem>>, vector<18x1x128xf32>,
    %c0_13 = arith.constant 0 : index
    %c0_14 = arith.constant 0 : index
    %c0_15 = arith.constant 0 : index
    %c0_16 = arith.constant 0 : index
    %8 = vector.load %arg1[%c0_13, %c0_14, %c0_15, %c0_16] : memref<1x16x16x128xf32, #tpu.memory_space<vmem>>, vector<1x16x16x128xf32>
    %9 = vector.shape_cast %8 : vector<1x16x16x128xf32> to vector<16x16x128xf32>
    %c0_17 = arith.constant 0 : index
    %c0_18 = arith.constant 0 : index
    %10 = vector.load %arg2[%c0_17, %c0_18] : memref<1x128xf32, #tpu.memory_space<vmem>>, vector<1x128xf32>
    %11 = vector.shape_cast %10 : vector<1x128xf32> to vector<1x1x128xf32>
    %12 = vector.broadcast %11 : vector<1x1x128xf32> to vector<16x16x128xf32>
    %13 = arith.mulf %9, %12 : vector<16x16x128xf32>
    %c0_19 = arith.constant 0 : index
    %c0_20 = arith.constant 0 : index
    %14 = vector.load %arg3[%c0_19, %c0_20] : memref<1x128xf32, #tpu.memory_space<vmem>>, vector<1x128xf32>
    %15 = vector.shape_cast %14 : vector<1x128xf32> to vector<1x1x128xf32>
    %16 = vector.broadcast %15 : vector<1x1x128xf32> to vector<16x16x128xf32>
    %17 = arith.addf %13, %16 : vector<16x16x128xf32>
    %cst_21 = arith.constant 0.000000e+00 : f32
    %18 = vector.broadcast %cst_21 : f32 to vector<16x16x128xf32>
    %19 = arith.maximumf %17, %18 : vector<16x16x128xf32>
    %c1 = arith.constant 1 : index
    %c1_22 = arith.constant 1 : index
    %c0_23 = arith.constant 0 : index
    %20 = vector.load %arg7[%c1, %c1_22, %c0_23] : memref<18x18x128xf32, #tpu.memory_space<vmem>>, vector<16x16x128xf32>
    tpu.vector_store %arg7[%c1, %c1_22, %c0_23], %19 {strides = array<i32>} : memref<18x18x128xf32, #tpu.memory_space<vmem>>, vector<16x16x128xf32>,
    %c0_24 = arith.constant 0 : index
    %c0_25 = arith.constant 0 : index
    %c0_26 = arith.constant 0 : index
    %21 = vector.load %arg7[%c0_24, %c0_25, %c0_26] : memref<18x18x128xf32, #tpu.memory_space<vmem>>, vector<16x16x128xf32>
    %22 = vector.shape_cast %21 : vector<16x16x128xf32> to vector<256x128xf32>
    %c0_27 = arith.constant 0 : index
    %c0_28 = arith.constant 0 : index
    %23 = vector.load %arg4[%c0_27, %c0_28] : memref<1152x128xf32, #tpu.memory_space<vmem>>, vector<128x128xf32>
    %cst_29 = arith.constant dense<0.000000e+00> : vector<256x128xf32>
    %24 = tpu.matmul %22, %23, %cst_29 {dimension_numbers = #tpu.dot_dimension_numbers<[1], [0], [0], [1], [0, 0, 1, 1], [], []>} : vector<256x128xf32>, vector<128x128xf32>, vector<256x128xf32> -> vector<256x128xf32>
    %c0_30 = arith.constant 0 : index
    %c1_31 = arith.constant 1 : index
    %c0_32 = arith.constant 0 : index
    %25 = vector.load %arg7[%c0_30, %c1_31, %c0_32] : memref<18x18x128xf32, #tpu.memory_space<vmem>>, vector<16x16x128xf32>
    %26 = vector.shape_cast %25 : vector<16x16x128xf32> to vector<256x128xf32>
    %c128 = arith.constant 128 : index
    %c0_33 = arith.constant 0 : index
    %27 = vector.load %arg4[%c128, %c0_33] : memref<1152x128xf32, #tpu.memory_space<vmem>>, vector<128x128xf32>
    %cst_34 = arith.constant dense<0.000000e+00> : vector<256x128xf32>
    %28 = tpu.matmul %26, %27, %cst_34 {dimension_numbers = #tpu.dot_dimension_numbers<[1], [0], [0], [1], [0, 0, 1, 1], [], []>} : vector<256x128xf32>, vector<128x128xf32>, vector<256x128xf32> -> vector<256x128xf32>
    %29 = arith.addf %24, %28 : vector<256x128xf32>
    %c0_35 = arith.constant 0 : index
    %c2 = arith.constant 2 : index
    %c0_36 = arith.constant 0 : index
    %30 = vector.load %arg7[%c0_35, %c2, %c0_36] : memref<18x18x128xf32, #tpu.memory_space<vmem>>, vector<16x16x128xf32>
    %31 = vector.shape_cast %30 : vector<16x16x128xf32> to vector<256x128xf32>
    %c256 = arith.constant 256 : index
    %c0_37 = arith.constant 0 : index
    %32 = vector.load %arg4[%c256, %c0_37] : memref<1152x128xf32, #tpu.memory_space<vmem>>, vector<128x128xf32>
    %cst_38 = arith.constant dense<0.000000e+00> : vector<256x128xf32>
    %33 = tpu.matmul %31, %32, %cst_38 {dimension_numbers = #tpu.dot_dimension_numbers<[1], [0], [0], [1], [0, 0, 1, 1], [], []>} : vector<256x128xf32>, vector<128x128xf32>, vector<256x128xf32> -> vector<256x128xf32>
    %34 = arith.addf %29, %33 : vector<256x128xf32>
    %c1_39 = arith.constant 1 : index
    %c0_40 = arith.constant 0 : index
    %c0_41 = arith.constant 0 : index
    %35 = vector.load %arg7[%c1_39, %c0_40, %c0_41] : memref<18x18x128xf32, #tpu.memory_space<vmem>>, vector<16x16x128xf32>
    %36 = vector.shape_cast %35 : vector<16x16x128xf32> to vector<256x128xf32>
    %c384 = arith.constant 384 : index
    %c0_42 = arith.constant 0 : index
    %37 = vector.load %arg4[%c384, %c0_42] : memref<1152x128xf32, #tpu.memory_space<vmem>>, vector<128x128xf32>
    %cst_43 = arith.constant dense<0.000000e+00> : vector<256x128xf32>
    %38 = tpu.matmul %36, %37, %cst_43 {dimension_numbers = #tpu.dot_dimension_numbers<[1], [0], [0], [1], [0, 0, 1, 1], [], []>} : vector<256x128xf32>, vector<128x128xf32>, vector<256x128xf32> -> vector<256x128xf32>
    %39 = arith.addf %34, %38 : vector<256x128xf32>
    %c1_44 = arith.constant 1 : index
    %c1_45 = arith.constant 1 : index
    %c0_46 = arith.constant 0 : index
    %40 = vector.load %arg7[%c1_44, %c1_45, %c0_46] : memref<18x18x128xf32, #tpu.memory_space<vmem>>, vector<16x16x128xf32>
    %41 = vector.shape_cast %40 : vector<16x16x128xf32> to vector<256x128xf32>
    %c512 = arith.constant 512 : index
    %c0_47 = arith.constant 0 : index
    %42 = vector.load %arg4[%c512, %c0_47] : memref<1152x128xf32, #tpu.memory_space<vmem>>, vector<128x128xf32>
    %cst_48 = arith.constant dense<0.000000e+00> : vector<256x128xf32>
    %43 = tpu.matmul %41, %42, %cst_48 {dimension_numbers = #tpu.dot_dimension_numbers<[1], [0], [0], [1], [0, 0, 1, 1], [], []>} : vector<256x128xf32>, vector<128x128xf32>, vector<256x128xf32> -> vector<256x128xf32>
    %44 = arith.addf %39, %43 : vector<256x128xf32>
    %c1_49 = arith.constant 1 : index
    %c2_50 = arith.constant 2 : index
    %c0_51 = arith.constant 0 : index
    %45 = vector.load %arg7[%c1_49, %c2_50, %c0_51] : memref<18x18x128xf32, #tpu.memory_space<vmem>>, vector<16x16x128xf32>
    %46 = vector.shape_cast %45 : vector<16x16x128xf32> to vector<256x128xf32>
    %c640 = arith.constant 640 : index
    %c0_52 = arith.constant 0 : index
    %47 = vector.load %arg4[%c640, %c0_52] : memref<1152x128xf32, #tpu.memory_space<vmem>>, vector<128x128xf32>
    %cst_53 = arith.constant dense<0.000000e+00> : vector<256x128xf32>
    %48 = tpu.matmul %46, %47, %cst_53 {dimension_numbers = #tpu.dot_dimension_numbers<[1], [0], [0], [1], [0, 0, 1, 1], [], []>} : vector<256x128xf32>, vector<128x128xf32>, vector<256x128xf32> -> vector<256x128xf32>
    %49 = arith.addf %44, %48 : vector<256x128xf32>
    %c2_54 = arith.constant 2 : index
    %c0_55 = arith.constant 0 : index
    %c0_56 = arith.constant 0 : index
    %50 = vector.load %arg7[%c2_54, %c0_55, %c0_56] : memref<18x18x128xf32, #tpu.memory_space<vmem>>, vector<16x16x128xf32>
    %51 = vector.shape_cast %50 : vector<16x16x128xf32> to vector<256x128xf32>
    %c768 = arith.constant 768 : index
    %c0_57 = arith.constant 0 : index
    %52 = vector.load %arg4[%c768, %c0_57] : memref<1152x128xf32, #tpu.memory_space<vmem>>, vector<128x128xf32>
    %cst_58 = arith.constant dense<0.000000e+00> : vector<256x128xf32>
    %53 = tpu.matmul %51, %52, %cst_58 {dimension_numbers = #tpu.dot_dimension_numbers<[1], [0], [0], [1], [0, 0, 1, 1], [], []>} : vector<256x128xf32>, vector<128x128xf32>, vector<256x128xf32> -> vector<256x128xf32>
    %54 = arith.addf %49, %53 : vector<256x128xf32>
    %c2_59 = arith.constant 2 : index
    %c1_60 = arith.constant 1 : index
    %c0_61 = arith.constant 0 : index
    %55 = vector.load %arg7[%c2_59, %c1_60, %c0_61] : memref<18x18x128xf32, #tpu.memory_space<vmem>>, vector<16x16x128xf32>
    %56 = vector.shape_cast %55 : vector<16x16x128xf32> to vector<256x128xf32>
    %c896 = arith.constant 896 : index
    %c0_62 = arith.constant 0 : index
    %57 = vector.load %arg4[%c896, %c0_62] : memref<1152x128xf32, #tpu.memory_space<vmem>>, vector<128x128xf32>
    %cst_63 = arith.constant dense<0.000000e+00> : vector<256x128xf32>
    %58 = tpu.matmul %56, %57, %cst_63 {dimension_numbers = #tpu.dot_dimension_numbers<[1], [0], [0], [1], [0, 0, 1, 1], [], []>} : vector<256x128xf32>, vector<128x128xf32>, vector<256x128xf32> -> vector<256x128xf32>
    %59 = arith.addf %54, %58 : vector<256x128xf32>
    %c2_64 = arith.constant 2 : index
    %c2_65 = arith.constant 2 : index
    %c0_66 = arith.constant 0 : index
    %60 = vector.load %arg7[%c2_64, %c2_65, %c0_66] : memref<18x18x128xf32, #tpu.memory_space<vmem>>, vector<16x16x128xf32>
    %61 = vector.shape_cast %60 : vector<16x16x128xf32> to vector<256x128xf32>
    %c1024 = arith.constant 1024 : index
    %c0_67 = arith.constant 0 : index
    %62 = vector.load %arg4[%c1024, %c0_67] : memref<1152x128xf32, #tpu.memory_space<vmem>>, vector<128x128xf32>
    %cst_68 = arith.constant dense<0.000000e+00> : vector<256x128xf32>
    %63 = tpu.matmul %61, %62, %cst_68 {dimension_numbers = #tpu.dot_dimension_numbers<[1], [0], [0], [1], [0, 0, 1, 1], [], []>} : vector<256x128xf32>, vector<128x128xf32>, vector<256x128xf32> -> vector<256x128xf32>
    %64 = arith.addf %59, %63 : vector<256x128xf32>
    %65 = vector.shape_cast %64 : vector<256x128xf32> to vector<1x256x128xf32>
    %c0_69 = arith.constant 0 : index
    %c0_70 = arith.constant 0 : index
    %c0_71 = arith.constant 0 : index
    %66 = vector.load %arg5[%c0_69, %c0_70, %c0_71] : memref<1x256x128xf32, #tpu.memory_space<vmem>>, vector<1x256x128xf32>
    tpu.vector_store %arg5[%c0_69, %c0_70, %c0_71], %65 {strides = array<i32>} : memref<1x256x128xf32, #tpu.memory_space<vmem>>, vector<1x256x128xf32>,
    %cst_72 = arith.constant dense<0.000000e+00> : vector<128xf32>
    %67 = vector.multi_reduction <add>, %64, %cst_72 [0] : vector<256x128xf32> to vector<128xf32>
    %68 = vector.shape_cast %67 : vector<128xf32> to vector<1x128xf32>
    %cst_73 = arith.constant 2.560000e+02 : f32
    %69 = vector.broadcast %cst_73 : f32 to vector<1x128xf32>
    %70 = arith.divf %68, %69 : vector<1x128xf32>
    %71 = vector.broadcast %70 : vector<1x128xf32> to vector<256x128xf32>
    %72 = arith.subf %64, %71 : vector<256x128xf32>
    %73 = arith.mulf %72, %72 : vector<256x128xf32>
    %cst_74 = arith.constant dense<0.000000e+00> : vector<128xf32>
    %74 = vector.multi_reduction <add>, %73, %cst_74 [0] : vector<256x128xf32> to vector<128xf32>
    %75 = vector.shape_cast %74 : vector<128xf32> to vector<1x128xf32>
    %76 = tpu.concatenate %70, %75 in 0 : vector<1x128xf32>, vector<1x128xf32> -> vector<2x128xf32>
    %77 = vector.shape_cast %76 : vector<2x128xf32> to vector<1x2x128xf32>
    %c0_75 = arith.constant 0 : index
    %c0_76 = arith.constant 0 : index
    %c0_77 = arith.constant 0 : index
    %78 = vector.load %arg6[%c0_75, %c0_76, %c0_77] : memref<1x2x128xf32, #tpu.memory_space<vmem>>, vector<1x2x128xf32>
    tpu.vector_store %arg6[%c0_75, %c0_76, %c0_77], %77 {strides = array<i32>} : memref<1x2x128xf32, #tpu.memory_space<vmem>>, vector<1x2x128xf32>,
    return
  }
  func.func @transform_0(%arg0: i32) -> (i32, i32, i32, i32) {
    %c0_i32 = arith.constant 0 : i32
    %c0_i32_0 = arith.constant 0 : i32
    %c0_i32_1 = arith.constant 0 : i32
    %c0_i32_2 = arith.constant 0 : i32
    return %arg0, %c0_i32, %c0_i32_0, %c0_i32_1 : i32, i32, i32, i32
  }
  func.func @transform_1(%arg0: i32) -> (i32, i32) {
    %c0_i32 = arith.constant 0 : i32
    %c0_i32_0 = arith.constant 0 : i32
    %c0_i32_1 = arith.constant 0 : i32
    return %c0_i32, %c0_i32_0 : i32, i32
  }
  func.func @transform_2(%arg0: i32) -> (i32, i32) {
    %c0_i32 = arith.constant 0 : i32
    %c0_i32_0 = arith.constant 0 : i32
    %c0_i32_1 = arith.constant 0 : i32
    return %c0_i32, %c0_i32_0 : i32, i32
  }
  func.func @transform_3(%arg0: i32) -> (i32, i32) {
    %c0_i32 = arith.constant 0 : i32
    %c0_i32_0 = arith.constant 0 : i32
    %c0_i32_1 = arith.constant 0 : i32
    return %c0_i32, %c0_i32_0 : i32, i32
  }
  func.func @transform_4(%arg0: i32) -> (i32, i32, i32) {
    %c0_i32 = arith.constant 0 : i32
    %c0_i32_0 = arith.constant 0 : i32
    %c0_i32_1 = arith.constant 0 : i32
    return %arg0, %c0_i32, %c0_i32_0 : i32, i32, i32
  }
  func.func @transform_5(%arg0: i32) -> (i32, i32, i32) {
    %c0_i32 = arith.constant 0 : i32
    %c0_i32_0 = arith.constant 0 : i32
    %c0_i32_1 = arith.constant 0 : i32
    return %arg0, %c0_i32, %c0_i32_0 : i32, i32, i32
  }
}

module attributes {stable_mosaic.version = 11 : i64} {
  func.func @_bnrelu_kernel(%arg0: i32, %arg1: memref<1x256x128xf32, #tpu.memory_space<vmem>>, %arg2: memref<1x128xf32, #tpu.memory_space<vmem>>, %arg3: memref<1x128xf32, #tpu.memory_space<vmem>>, %arg4: memref<1x256x128xf32, #tpu.memory_space<vmem>>) attributes {dimension_semantics = [#tpu.dimension_semantics<parallel>], iteration_bounds = array<i64: 2>, scalar_prefetch = 0 : i64, scratch_operands = 0 : i64, tpu.core_type = #tpu.core_type<tc>, window_params = [{transform_indices = @transform_0, window_bounds = array<i64: 1, 256, 128>}, {pipeline_mode = #tpu.pipeline_mode<synchronous>, transform_indices = @transform_1, window_bounds = array<i64: 1, 128>}, {pipeline_mode = #tpu.pipeline_mode<synchronous>, transform_indices = @transform_2, window_bounds = array<i64: 1, 128>}, {transform_indices = @transform_3, window_bounds = array<i64: 1, 256, 128>}]} {
    %c0 = arith.constant 0 : index
    %c0_0 = arith.constant 0 : index
    %c0_1 = arith.constant 0 : index
    %0 = vector.load %arg1[%c0, %c0_0, %c0_1] : memref<1x256x128xf32, #tpu.memory_space<vmem>>, vector<1x256x128xf32>
    %c0_2 = arith.constant 0 : index
    %c0_3 = arith.constant 0 : index
    %1 = vector.load %arg2[%c0_2, %c0_3] : memref<1x128xf32, #tpu.memory_space<vmem>>, vector<1x128xf32>
    %2 = vector.shape_cast %1 : vector<1x128xf32> to vector<1x1x128xf32>
    %3 = vector.broadcast %2 : vector<1x1x128xf32> to vector<1x256x128xf32>
    %4 = arith.mulf %0, %3 : vector<1x256x128xf32>
    %c0_4 = arith.constant 0 : index
    %c0_5 = arith.constant 0 : index
    %5 = vector.load %arg3[%c0_4, %c0_5] : memref<1x128xf32, #tpu.memory_space<vmem>>, vector<1x128xf32>
    %6 = vector.shape_cast %5 : vector<1x128xf32> to vector<1x1x128xf32>
    %7 = vector.broadcast %6 : vector<1x1x128xf32> to vector<1x256x128xf32>
    %8 = arith.addf %4, %7 : vector<1x256x128xf32>
    %cst = arith.constant 0.000000e+00 : f32
    %9 = vector.broadcast %cst : f32 to vector<1x256x128xf32>
    %10 = arith.maximumf %8, %9 : vector<1x256x128xf32>
    %c0_6 = arith.constant 0 : index
    %c0_7 = arith.constant 0 : index
    %c0_8 = arith.constant 0 : index
    %11 = vector.load %arg4[%c0_6, %c0_7, %c0_8] : memref<1x256x128xf32, #tpu.memory_space<vmem>>, vector<1x256x128xf32>
    tpu.vector_store %arg4[%c0_6, %c0_7, %c0_8], %10 {strides = array<i32>} : memref<1x256x128xf32, #tpu.memory_space<vmem>>, vector<1x256x128xf32>,
    return
  }
  func.func @transform_0(%arg0: i32) -> (i32, i32, i32) {
    %c0_i32 = arith.constant 0 : i32
    %c0_i32_0 = arith.constant 0 : i32
    %c0_i32_1 = arith.constant 0 : i32
    return %arg0, %c0_i32, %c0_i32_0 : i32, i32, i32
  }
  func.func @transform_1(%arg0: i32) -> (i32, i32) {
    %c0_i32 = arith.constant 0 : i32
    %c0_i32_0 = arith.constant 0 : i32
    %c0_i32_1 = arith.constant 0 : i32
    return %c0_i32, %c0_i32_0 : i32, i32
  }
  func.func @transform_2(%arg0: i32) -> (i32, i32) {
    %c0_i32 = arith.constant 0 : i32
    %c0_i32_0 = arith.constant 0 : i32
    %c0_i32_1 = arith.constant 0 : i32
    return %c0_i32, %c0_i32_0 : i32, i32
  }
  func.func @transform_3(%arg0: i32) -> (i32, i32, i32) {
    %c0_i32 = arith.constant 0 : i32
    %c0_i32_0 = arith.constant 0 : i32
    %c0_i32_1 = arith.constant 0 : i32
    return %arg0, %c0_i32, %c0_i32_0 : i32, i32, i32
  }
}

</mosaic_0001>

<bundles_post_ra>
// kernel: double_conv.3
= control target key start
LH: loop header
LB: loop body
LE: loop exit
PB: predicated region body
PF: predicated region fallthrough
CT: control target
= control target key end

     0   :  { %s926_s12 = smov 0   ;;  %s1265_s0 = inlined_call_operand.vmem [shape: f32[2,256,128], index: 0, kind: input, shape index: {}]   ;;  %s1266_s1 = inlined_call_operand.vmem [shape: f32[128,128], index: 1, kind: input, shape index: {}]   ;;  %s1267_s2 = inlined_call_operand.vmem [shape: f32[2,256,128], index: 2, kind: output, shape index: {0}]   ;;  %s1268_s3 = inlined_call_operand.vmem [shape: f32[2,2,128], index: 3, kind: output, shape index: {1}]  }
   0x1 LB: > { %s716_s13 = sadd.s32 4294967295, %s904_s12   ;;  %p720_p0 = scmp.ge.s32.totalorder %s904_s12, 1  ;;  %s904_s12 = sphi %s926_s12, %s14_s12  }
   0x2   : > { %p140_p1 = scmp.lt.s32.totalorder %s904_s12, 3 }
   0x4   : > { %p141_p2 = pnand %p720_p0, %p140_p1 }
   0x5   : > { %p168_p3 = scmp.lt.s32.totalorder (!%p141_p2), %s716_s13, 1 }
   0x6   : > { %144 = sbr.rel (%p141_p2) target bundleno = 397 (0x18d), region = 28 }
   0xb   : > { %v229_v0 = vld [vmem:[%s1266_s1 + $0x78] sm:$0xff]  ;;  %v228_v1 = vld [vmem:[%s1266_s1 + $0x70] sm:$0xff]  ;;  %v227_v2 = vld [vmem:[%s1266_s1 + $0x68] sm:$0xff]  ;;  %s1270_s13 = smov (!%p168_p3, %s716_s13), 1  ;;  %vm627_vm0 = vcmask 1040384  }
   0xc   : > { %778 = vmatprep.subr.mxu0 %v229_v0  ;;  %858 = vmatprep.subr.mxu1 %v229_v0  ;;  %v226_v3 = vld [vmem:[%s1266_s1 + $0x60] sm:$0xff]  ;;  %s728_s22 = sshll.u32 %s1270_s13, 8  ;;  %v225_v4 = vld [vmem:[%s1266_s1 + $0x58] sm:$0xff]  ;;  %v224_v6 = vld [vmem:[%s1266_s1 + $0x50] sm:$0xff] }
   0xd   : > { %779 = vmatpush3.msra.mxu0 %v229_v0  ;;  %874 = vmatpush3.msra.mxu1 %v229_v0  ;;  %s954_s25 = scalar_lea.vmem %s1265_s0, %s728_s22  ;;  %v223_v7 = vld [vmem:[%s1266_s1 + $0x48] sm:$0xff]  ;;  %v222_v8 = vld [vmem:[%s1266_s1 + $0x40] sm:$0xff]  ;;  %v221_v9 = vld [vmem:[%s1266_s1 + $0x38] sm:$0xff]  ;;  %s1029_s29 = scalar_lea.vmem %s1267_s2, %s728_s22 }
   0xe   : > { %780 = vmatprep.subr.mxu0 %v228_v1  ;;  %859 = vmatprep.subr.mxu1 %v228_v1  ;;  %v182_v5 = vld [vmem:[%s954_s25] sm:$0xff]  ;;  %v220_v10 = vld [vmem:[%s1266_s1 + $0x30] sm:$0xff]  ;;  %v219_v11 = vld [vmem:[%s1266_s1 + $0x28] sm:$0xff]  ;;  %s725_s22 = sshll.u32 %s1270_s13, 1 }
   0xf   : > { %781 = vmatpush3.msra.mxu0 %v228_v1  ;;  %875 = vmatpush3.msra.mxu1 %v228_v1  ;;  %v218_v12 = vld [vmem:[%s1266_s1 + $0x20] sm:$0xff]  ;;  %v217_v13 = vld [vmem:[%s1266_s1 + $0x18] sm:$0xff]  ;;  %v216_v14 = vld [vmem:[%s1266_s1 + $0x10] sm:$0xff]  ;;  %s181_s4 = scalar_lea.vmem %s1268_s3, %s725_s22 }
  0x10   : > { %782 = vmatprep.subr.mxu0 %v227_v2  ;;  %860 = vmatprep.subr.mxu1 %v227_v2  ;;  %v215_v15 = vld [vmem:[%s1266_s1 + $0x8] sm:$0xff]  ;;  %v214_v16 = vld [vmem:[%s1266_s1] sm:$0xff]  ;;  %v184_v18 = vld [vmem:[%s954_s25 + $0x10] sm:$0xff] }
  0x11   : > { %783 = vmatpush3.msra.mxu0 %v227_v2  ;;  %876 = vmatpush3.msra.mxu1 %v227_v2  ;;  %v183_v17 = vld [vmem:[%s954_s25 + $0x8] sm:$0xff]  ;;  %v198_v19 = vld [vmem:[%s954_s25 + $0x80] sm:$0xff]  ;;  %v200_v21 = vld [vmem:[%s954_s25 + $0x90] sm:$0xff] }
  0x12   : > { %784 = vmatprep.subr.mxu0 %v226_v3  ;;  %810 = vmatprep.mubr.f32.mxu0 %v182_v5  ;;  %v199_v20 = vld [vmem:[%s954_s25 + $0x88] sm:$0xff]  ;;  %v185_v22 = vld [vmem:[%s954_s25 + $0x18] sm:$0xff]  ;;  %v186_v23 = vld [vmem:[%s954_s25 + $0x20] sm:$0xff] }
  0x13   : > { %785 = vmatpush3.msra.mxu0 %v226_v3  ;;  %861 = vmatprep.subr.mxu1 %v226_v3  ;;  %v201_v24 = vld [vmem:[%s954_s25 + $0x98] sm:$0xff]  ;;  %v202_v25 = vld [vmem:[%s954_s25 + $0xa0] sm:$0xff]  ;;  %v187_v26 = vld [vmem:[%s954_s25 + $0x28] sm:$0xff] }
  0x14   : > { %786 = vmatprep.subr.mxu0 %v225_v4  ;;  %877 = vmatpush3.msra.mxu1 %v226_v3  ;;  %v188_v27 = vld [vmem:[%s954_s25 + $0x30] sm:$0xff]  ;;  %v203_v28 = vld [vmem:[%s954_s25 + $0xa8] sm:$0xff]  ;;  %v189_v30 = vld [vmem:[%s954_s25 + $0x38] sm:$0xff] }
  0x15   : > { %787 = vmatpush3.msra.mxu0 %v225_v4  ;;  %862 = vmatprep.subr.mxu1 %v225_v4  ;;  %v204_v29 = vld [vmem:[%s954_s25 + $0xb0] sm:$0xff]  ;;  %v190_v31 = vld [vmem:[%s954_s25 + $0x40] sm:$0xff]  ;;  %v205_v32 = vld [vmem:[%s954_s25 + $0xb8] sm:$0xff] }
  0x16   : > { %788 = vmatprep.subr.mxu0 %v224_v6  ;;  %878 = vmatpush3.msra.mxu1 %v225_v4  ;;  %v206_v33 = vld [vmem:[%s954_s25 + $0xc0] sm:$0xff]  ;;  %v191_v34 = vld [vmem:[%s954_s25 + $0x48] sm:$0xff]  ;;  %v192_v35 = vld [vmem:[%s954_s25 + $0x50] sm:$0xff] }
  0x17   : > { %789 = vmatpush3.msra.mxu0 %v224_v6  ;;  %863 = vmatprep.subr.mxu1 %v224_v6  ;;  %v207_v36 = vld [vmem:[%s954_s25 + $0xc8] sm:$0xff]  ;;  %v208_v37 = vld [vmem:[%s954_s25 + $0xd0] sm:$0xff]  ;;  %v193_v38 = vld [vmem:[%s954_s25 + $0x58] sm:$0xff] }
  0x18   : > { %790 = vmatprep.subr.mxu0 %v223_v7  ;;  %879 = vmatpush3.msra.mxu1 %v224_v6  ;;  %v194_v39 = vld [vmem:[%s954_s25 + $0x60] sm:$0xff]  ;;  %v209_v40 = vld [vmem:[%s954_s25 + $0xd8] sm:$0xff]  ;;  %v195_v42 = vld [vmem:[%s954_s25 + $0x68] sm:$0xff] }
  0x19   : > { %791 = vmatpush3.msra.mxu0 %v223_v7  ;;  %864 = vmatprep.subr.mxu1 %v223_v7  ;;  %v210_v41 = vld [vmem:[%s954_s25 + $0xe0] sm:$0xff]  ;;  %v196_v43 = vld [vmem:[%s954_s25 + $0x70] sm:$0xff]  ;;  %v211_v44 = vld [vmem:[%s954_s25 + $0xe8] sm:$0xff] }
  0x1a   : > { %792 = vmatprep.subr.mxu0 %v222_v8  ;;  %880 = vmatpush3.msra.mxu1 %v223_v7  ;;  %v212_v45 = vld [vmem:[%s954_s25 + $0xf0] sm:$0xff]  ;;  %v197_v46 = vld [vmem:[%s954_s25 + $0x78] sm:$0xff] }
  0x1b   : > { %793 = vmatpush3.msra.mxu0 %v222_v8  ;;  %865 = vmatprep.subr.mxu1 %v222_v8  ;;  %v213_v47 = vld [vmem:[%s954_s25 + $0xf8] sm:$0xff] }
  0x1c   : > { %794 = vmatprep.subr.mxu0 %v221_v9  ;;  %881 = vmatpush3.msra.mxu1 %v222_v8 }
  0x1d   : > { %795 = vmatpush3.msra.mxu0 %v221_v9  ;;  %866 = vmatprep.subr.mxu1 %v221_v9 }
  0x1e   : > { %796 = vmatprep.subr.mxu0 %v220_v10  ;;  %882 = vmatpush3.msra.mxu1 %v221_v9 }
  0x1f   : > { %797 = vmatpush3.msra.mxu0 %v220_v10  ;;  %867 = vmatprep.subr.mxu1 %v220_v10 }
  0x20   : > { %798 = vmatprep.subr.mxu0 %v219_v11  ;;  %883 = vmatpush3.msra.mxu1 %v220_v10 }
  0x21   : > { %799 = vmatpush3.msra.mxu0 %v219_v11  ;;  %868 = vmatprep.subr.mxu1 %v219_v11 }
  0x22   : > { %800 = vmatprep.subr.mxu0 %v218_v12  ;;  %884 = vmatpush3.msra.mxu1 %v219_v11 }
  0x23   : > { %801 = vmatpush3.msra.mxu0 %v218_v12  ;;  %869 = vmatprep.subr.mxu1 %v218_v12 }
  0x24   : > { %802 = vmatprep.subr.mxu0 %v217_v13  ;;  %885 = vmatpush3.msra.mxu1 %v218_v12 }
  0x25   : > { %803 = vmatpush3.msra.mxu0 %v217_v13  ;;  %870 = vmatprep.subr.mxu1 %v217_v13 }
  0x26   : > { %804 = vmatprep.subr.mxu0 %v216_v14  ;;  %886 = vmatpush3.msra.mxu1 %v217_v13 }
  0x27   : > { %805 = vmatpush3.msra.mxu0 %v216_v14  ;;  %871 = vmatprep.subr.mxu1 %v216_v14 }
  0x28   : > { %806 = vmatprep.subr.mxu0 %v215_v15  ;;  %887 = vmatpush3.msra.mxu1 %v216_v14 }
  0x29   : > { %807 = vmatpush3.msra.mxu0 %v215_v15  ;;  %872 = vmatprep.subr.mxu1 %v215_v15 }
  0x2a   : > { %808 = vmatprep.subr.mxu0 %v214_v16  ;;  %888 = vmatpush3.msra.mxu1 %v215_v15 }
  0x2b   : > { %809 = vmatpush3.msra.mxu0 %v214_v16  ;;  %873 = vmatprep.subr.mxu1 %v214_v16 }
  0x2c   : > { %811 = vmatmul.mubr.f32.vlgmr.msra.gmra.mxu0 %v183_v17  ;;  %889 = vmatpush3.msra.mxu1 %v214_v16 }
  0x2d   : > { %813 = vmatprep.mubr.f32.mxu0 %v184_v18  ;;  %834 = vmatprep.mubr.f32.mxu1 %v198_v19 }
  0x2e   : > { %835 = vmatmul.mubr.f32.vlgmr.msra.gmra.mxu1 %v199_v20 }
  0x2f   : > { %837 = vmatprep.mubr.f32.mxu1 %v200_v21 }
  0x30   : > { %814 = vmatmul.mubr.f32.gmra.mxu0 %v185_v22 }
  0x31   : > { %816 = vmatprep.mubr.f32.mxu0 %v186_v23 }
  0x32   : > { %838 = vmatmul.mubr.f32.gmra.mxu1 %v201_v24 }
  0x33   : > { %840 = vmatprep.mubr.f32.mxu1 %v202_v25 }
  0x34   : > { %817 = vmatmul.mubr.f32.gmra.mxu0 %v187_v26 }
  0x35   : > { %819 = vmatprep.mubr.f32.mxu0 %v188_v27 }
  0x36   : > { %841 = vmatmul.mubr.f32.gmra.mxu1 %v203_v28 }
  0x37   : > { %843 = vmatprep.mubr.f32.mxu1 %v204_v29 }
  0x38   : > { %820 = vmatmul.mubr.f32.gmra.mxu0 %v189_v30 }
  0x39   : > { %822 = vmatprep.mubr.f32.mxu0 %v190_v31 }
  0x3a   : > { %844 = vmatmul.mubr.f32.gmra.mxu1 %v205_v32 }
  0x3b   : > { %846 = vmatprep.mubr.f32.mxu1 %v206_v33 }
  0x3c   : > { %823 = vmatmul.mubr.f32.gmra.mxu0 %v191_v34 }
  0x3d   : > { %825 = vmatprep.mubr.f32.mxu0 %v192_v35 }
  0x3e   : > { %847 = vmatmul.mubr.f32.gmra.mxu1 %v207_v36 }
  0x3f   : > { %849 = vmatprep.mubr.f32.mxu1 %v208_v37 }
  0x40   : > { %826 = vmatmul.mubr.f32.gmra.mxu0 %v193_v38 }
  0x41   : > { %828 = vmatprep.mubr.f32.mxu0 %v194_v39 }
  0x42   : > { %850 = vmatmul.mubr.f32.gmra.mxu1 %v209_v40 }
  0x43   : > { %852 = vmatprep.mubr.f32.mxu1 %v210_v41 }
  0x44   : > { %829 = vmatmul.mubr.f32.gmra.mxu0 %v195_v42 }
  0x45   : > { %831 = vmatprep.mubr.f32.mxu0 %v196_v43 }
  0x46   : > { %853 = vmatmul.mubr.f32.gmra.mxu1 %v211_v44 }
  0x47   : > { %855 = vmatprep.mubr.f32.mxu1 %v212_v45 }
  0x48   : > { %832 = vmatmul.mubr.f32.gmra.mxu0 %v197_v46 }
  0x4a   : > { %856 = vmatmul.mubr.f32.gmra.mxu1 %v213_v47 }
  0xec   : > { %v1031_v48 = vpop.f32.mrf.mxu0 }
  0xed   : > { %456 = vst [vmem:[%s1029_s29 + $0x8] sm:$0xff] %v1031_v48 }
  0xee   : > { %v1035_v49 = vpop.f32.mrf.mxu0  ;;  %v1037_v50 = vpop.f32.mrf.mxu1 }
  0xef   : > { %455 = vst [vmem:[%s1029_s29] sm:$0xff] %v1035_v49  ;;  %472 = vst [vmem:[%s1029_s29 + $0x88] sm:$0xff] %v1037_v50  ;;  %v487_v53 = vadd.f32 %v1031_v48, %v1035_v49 }
  0xf0   : > { %v1043_v51 = vpop.f32.mrf.mxu0  ;;  %v1045_v52 = vpop.f32.mrf.mxu1 }
  0xf1   : > { %458 = vst [vmem:[%s1029_s29 + $0x18] sm:$0xff] %v1043_v51  ;;  %471 = vst [vmem:[%s1029_s29 + $0x80] sm:$0xff] %v1045_v52 }
  0xf2   : > { %v1053_v54 = vpop.f32.mrf.mxu0  ;;  %v1055_v55 = vpop.f32.mrf.mxu1 }
  0xf3   : > { %457 = vst [vmem:[%s1029_s29 + $0x10] sm:$0xff] %v1053_v54  ;;  %v488_v56 = vadd.f32 %v487_v53, %v1053_v54  ;;  %474 = vst [vmem:[%s1029_s29 + $0x98] sm:$0xff] %v1055_v55 }
  0xf4   : > { %v1062_v57 = vpop.f32.mrf.mxu0  ;;  %v1064_v58 = vpop.f32.mrf.mxu1 }
  0xf5   : > { %460 = vst [vmem:[%s1029_s29 + $0x28] sm:$0xff] %v1062_v57  ;;  %v489_v59 = vadd.f32 %v1043_v51, %v488_v56  ;;  %473 = vst [vmem:[%s1029_s29 + $0x90] sm:$0xff] %v1064_v58 }
  0xf6   : > { %v1071_v60 = vpop.f32.mrf.mxu0  ;;  %v1073_v61 = vpop.f32.mrf.mxu1 }
  0xf7   : > { %459 = vst [vmem:[%s1029_s29 + $0x20] sm:$0xff] %v1071_v60  ;;  %v490_v62 = vadd.f32 %v489_v59, %v1071_v60  ;;  %476 = vst [vmem:[%s1029_s29 + $0xa8] sm:$0xff] %v1073_v61 }
  0xf8   : > { %v1080_v63 = vpop.f32.mrf.mxu0  ;;  %v1082_v0 = vpop.f32.mrf.mxu1 }
  0xf9   : > { %462 = vst [vmem:[%s1029_s29 + $0x38] sm:$0xff] %v1080_v63  ;;  %v491_v1 = vadd.f32 %v1062_v57, %v490_v62  ;;  %475 = vst [vmem:[%s1029_s29 + $0xa0] sm:$0xff] %v1082_v0 }
  0xfa   : > { %v1089_v2 = vpop.f32.mrf.mxu0  ;;  %v1091_v3 = vpop.f32.mrf.mxu1 }
  0xfb   : > { %461 = vst [vmem:[%s1029_s29 + $0x30] sm:$0xff] %v1089_v2  ;;  %v492_v4 = vadd.f32 %v491_v1, %v1089_v2  ;;  %478 = vst [vmem:[%s1029_s29 + $0xb8] sm:$0xff] %v1091_v3 }
  0xfc   : > { %v1098_v5 = vpop.f32.mrf.mxu0  ;;  %v1100_v6 = vpop.f32.mrf.mxu1 }
  0xfd   : > { %464 = vst [vmem:[%s1029_s29 + $0x48] sm:$0xff] %v1098_v5  ;;  %v493_v7 = vadd.f32 %v1080_v63, %v492_v4  ;;  %477 = vst [vmem:[%s1029_s29 + $0xb0] sm:$0xff] %v1100_v6 }
  0xfe   : > { %v1107_v8 = vpop.f32.mrf.mxu0  ;;  %v1109_v9 = vpop.f32.mrf.mxu1 }
  0xff   : > { %463 = vst [vmem:[%s1029_s29 + $0x40] sm:$0xff] %v1107_v8  ;;  %v494_v10 = vadd.f32 %v493_v7, %v1107_v8  ;;  %480 = vst [vmem:[%s1029_s29 + $0xc8] sm:$0xff] %v1109_v9 }
 0x100   : > { %v1116_v11 = vpop.f32.mrf.mxu0  ;;  %v1118_v12 = vpop.f32.mrf.mxu1 }
 0x101   : > { %466 = vst [vmem:[%s1029_s29 + $0x58] sm:$0xff] %v1116_v11  ;;  %v495_v13 = vadd.f32 %v1098_v5, %v494_v10  ;;  %479 = vst [vmem:[%s1029_s29 + $0xc0] sm:$0xff] %v1118_v12 }
 0x102   : > { %v1125_v14 = vpop.f32.mrf.mxu0  ;;  %v1127_v15 = vpop.f32.mrf.mxu1 }
 0x103   : > { %465 = vst [vmem:[%s1029_s29 + $0x50] sm:$0xff] %v1125_v14  ;;  %v496_v16 = vadd.f32 %v495_v13, %v1125_v14  ;;  %482 = vst [vmem:[%s1029_s29 + $0xd8] sm:$0xff] %v1127_v15 }
 0x104   : > { %v1134_v17 = vpop.f32.mrf.mxu0  ;;  %v1136_v18 = vpop.f32.mrf.mxu1 }
 0x105   : > { %468 = vst [vmem:[%s1029_s29 + $0x68] sm:$0xff] %v1134_v17  ;;  %v497_v19 = vadd.f32 %v1116_v11, %v496_v16  ;;  %481 = vst [vmem:[%s1029_s29 + $0xd0] sm:$0xff] %v1136_v18 }
 0x106   : > { %v1143_v20 = vpop.f32.mrf.mxu0  ;;  %v1145_v21 = vpop.f32.mrf.mxu1 }
 0x107   : > { %467 = vst [vmem:[%s1029_s29 + $0x60] sm:$0xff] %v1143_v20  ;;  %v498_v22 = vadd.f32 %v497_v19, %v1143_v20  ;;  %484 = vst [vmem:[%s1029_s29 + $0xe8] sm:$0xff] %v1145_v21 }
 0x108   : > { %v1152_v23 = vpop.f32.mrf.mxu0  ;;  %v1154_v24 = vpop.f32.mrf.mxu1 }
 0x109   : > { %470 = vst [vmem:[%s1029_s29 + $0x78] sm:$0xff] %v1152_v23  ;;  %v499_v25 = vadd.f32 %v1134_v17, %v498_v22  ;;  %483 = vst [vmem:[%s1029_s29 + $0xe0] sm:$0xff] %v1154_v24 }
 0x10a   : > { %v1161_v26 = vpop.f32.mrf.mxu0  ;;  %v1163_v27 = vpop.f32.mrf.mxu1 }
 0x10b   : > { %469 = vst [vmem:[%s1029_s29 + $0x70] sm:$0xff] %v1161_v26  ;;  %v500_v28 = vadd.f32 %v499_v25, %v1161_v26  ;;  %486 = vst [vmem:[%s1029_s29 + $0xf8] sm:$0xff] %v1163_v27 }
 0x10c   : > { %v1170_v29 = vpop.f32.mrf.mxu1 }
 0x10d   : > { %v501_v30 = vadd.f32 %v1152_v23, %v500_v28  ;;  %485 = vst [vmem:[%s1029_s29 + $0xf0] sm:$0xff] %v1170_v29 }
 0x10f   : > { %v502_v31 = vadd.f32 %v501_v30, %v1045_v52 }
 0x111   : > { %v503_v32 = vadd.f32 %v1037_v50, %v502_v31 }
 0x113   : > { %v504_v33 = vadd.f32 %v503_v32, %v1064_v58 }
 0x115   : > { %v505_v34 = vadd.f32 %v1055_v55, %v504_v33 }
 0x117   : > { %v506_v35 = vadd.f32 %v505_v34, %v1082_v0 }
 0x119   : > { %v507_v36 = vadd.f32 %v1073_v61, %v506_v35 }
 0x11b   : > { %v508_v37 = vadd.f32 %v507_v36, %v1100_v6 }
 0x11d   : > { %v509_v38 = vadd.f32 %v1091_v3, %v508_v37 }
 0x11f   : > { %v510_v39 = vadd.f32 %v509_v38, %v1118_v12 }
 0x121   : > { %v511_v40 = vadd.f32 %v1109_v9, %v510_v39 }
 0x123   : > { %v512_v41 = vadd.f32 %v511_v40, %v1136_v18 }
 0x125   : > { %v513_v42 = vadd.f32 %v1127_v15, %v512_v41 }
 0x127   : > { %v514_v43 = vadd.f32 %v513_v42, %v1154_v24 }
 0x129   : > { %v515_v44 = vadd.f32 %v1145_v21, %v514_v43 }
 0x12b   : > { %v516_v45 = vadd.f32 %v515_v44, %v1170_v29 }
 0x12d   : > { %v517_v46 = vadd.f32 %v1163_v27, %v516_v45 }
 0x12f   : > { %v518_v47 = vrot.slane %v517_v46, 4 }
 0x131   : > { %v519_v53 = vadd.f32 %v518_v47, %v517_v46 }
 0x133   : > { %v520_v56 = vrot.slane %v519_v53, 2 }
 0x135   : > { %v521_v59 = vadd.f32 %v520_v56, %v519_v53 }
 0x137   : > { %v522_v62 = vrot.slane %v521_v59, 1 }
 0x139   : > { %v523_v1 = vadd.f32 %v522_v62, %v521_v59 }
 0x13b   : > { %v1191_v4 = vmul.f32 0.00390625, %v523_v1 }
 0x13d   : > { %v526_v7 = vsub.f32 %v1035_v49, %v1191_v4  ;;  %v527_v10 = vsub.f32 %v1031_v48, %v1191_v4  ;;  %v528_v13 = vsub.f32 %v1053_v54, %v1191_v4  ;;  %v529_v22 = vsub.f32 %v1043_v51, %v1191_v4 }
 0x13e   : > { %v530_v25 = vsub.f32 %v1071_v60, %v1191_v4  ;;  %v531_v31 = vsub.f32 %v1062_v57, %v1191_v4  ;;  %v532_v48 = vsub.f32 %v1089_v2, %v1191_v4  ;;  %v533_v34 = vsub.f32 %v1080_v63, %v1191_v4 }
 0x13f   : > { %v558_v16 = vmul.f32 %v526_v7, %v526_v7  ;;  %v559_v19 = vmul.f32 %v527_v10, %v527_v10  ;;  %v560_v28 = vmul.f32 %v528_v13, %v528_v13  ;;  %v561_v49 = vmul.f32 %v529_v22, %v529_v22 }
 0x140   : > { %v562_v33 = vmul.f32 %v530_v25, %v530_v25  ;;  %v563_v35 = vmul.f32 %v531_v31, %v531_v31  ;;  %v534_v60 = vsub.f32 %v1107_v8, %v1191_v4  ;;  %v564_v36 = vmul.f32 %v532_v48, %v532_v48 }
 0x141   : > { %v590_v30 = vadd.f32 %v559_v19, %v558_v16  ;;  %v535_v57 = vsub.f32 %v1098_v5, %v1191_v4  ;;  %v565_v38 = vmul.f32 %v533_v34, %v533_v34  ;;  %v536_v2 = vsub.f32 %v1125_v14, %v1191_v4 }
 0x142   : > { %v566_v40 = vmul.f32 %v534_v60, %v534_v60  ;;  %v537_v63 = vsub.f32 %v1116_v11, %v1191_v4  ;;  %v538_v8 = vsub.f32 %v1143_v20, %v1191_v4  ;;  %v539_v5 = vsub.f32 %v1134_v17, %v1191_v4 }
 0x143   : > { %v591_v32 = vadd.f32 %v590_v30, %v560_v28  ;;  %v567_v42 = vmul.f32 %v535_v57, %v535_v57  ;;  %v568_v44 = vmul.f32 %v536_v2, %v536_v2  ;;  %v540_v14 = vsub.f32 %v1161_v26, %v1191_v4 }
 0x144   : > { %v569_v46 = vmul.f32 %v537_v63, %v537_v63  ;;  %v570_v53 = vmul.f32 %v538_v8, %v538_v8  ;;  %v541_v11 = vsub.f32 %v1152_v23, %v1191_v4  ;;  %v571_v59 = vmul.f32 %v539_v5, %v539_v5 }
 0x145   : > { %v592_v54 = vadd.f32 %v591_v32, %v561_v49  ;;  %v542_v20 = vsub.f32 %v1045_v52, %v1191_v4  ;;  %v572_v1 = vmul.f32 %v540_v14, %v540_v14  ;;  %v543_v17 = vsub.f32 %v1037_v50, %v1191_v4 }
 0x146   : > { %v573_v10 = vmul.f32 %v541_v11, %v541_v11  ;;  %v544_v26 = vsub.f32 %v1064_v58, %v1191_v4  ;;  %v545_v23 = vsub.f32 %v1055_v55, %v1191_v4  ;;  %v546_v52 = vsub.f32 %v1082_v0, %v1191_v4 }
 0x147   : > { %v593_v51 = vadd.f32 %v592_v54, %v562_v33  ;;  %v574_v16 = vmul.f32 %v542_v20, %v542_v20  ;;  %v575_v22 = vmul.f32 %v543_v17, %v543_v17  ;;  %v547_v50 = vsub.f32 %v1073_v61, %v1191_v4 }
 0x148   : > { %v576_v28 = vmul.f32 %v544_v26, %v544_v26  ;;  %v577_v31 = vmul.f32 %v545_v23, %v545_v23  ;;  %v548_v58 = vsub.f32 %v1100_v6, %v1191_v4  ;;  %v578_v32 = vmul.f32 %v546_v52, %v546_v52 }
 0x149   : > { %v594_v37 = vadd.f32 %v593_v51, %v563_v35  ;;  %v549_v55 = vsub.f32 %v1091_v3, %v1191_v4  ;;  %v579_v33 = vmul.f32 %v547_v50, %v547_v50  ;;  %v550_v0 = vsub.f32 %v1118_v12, %v1191_v4 }
 0x14a   : > { %v580_v34 = vmul.f32 %v548_v58, %v548_v58  ;;  %v551_v61 = vsub.f32 %v1109_v9, %v1191_v4  ;;  %v552_v6 = vsub.f32 %v1136_v18, %v1191_v4  ;;  %v553_v3 = vsub.f32 %v1127_v15, %v1191_v4 }
 0x14b   : > { %v595_v39 = vadd.f32 %v594_v37, %v564_v36  ;;  %v581_v51 = vmul.f32 %v549_v55, %v549_v55  ;;  %v582_v36 = vmul.f32 %v550_v0, %v550_v0  ;;  %v554_v12 = vsub.f32 %v1154_v24, %v1191_v4 }
 0x14c   : > { %v583_v57 = vmul.f32 %v551_v61, %v551_v61  ;;  %v555_v9 = vsub.f32 %v1145_v21, %v1191_v4  ;;  %v556_v18 = vsub.f32 %v1170_v29, %v1191_v4  ;;  %v557_v15 = vsub.f32 %v1163_v27, %v1191_v4 }
 0x14d   : > { %v596_v41 = vadd.f32 %v595_v39, %v565_v38  ;;  %v584_v39 = vmul.f32 %v552_v6, %v552_v6  ;;  %v586_v63 = vmul.f32 %v554_v12, %v554_v12 }
 0x14f   : > { %v597_v43 = vadd.f32 %v596_v41, %v566_v40  ;;  %v585_v40 = vmul.f32 %v553_v3, %v553_v3 }
 0x151   : > { %v598_v45 = vadd.f32 %v597_v43, %v567_v42  ;;  %v587_v43 = vmul.f32 %v555_v9, %v555_v9 }
 0x153   : > { %v599_v47 = vadd.f32 %v598_v45, %v568_v44  ;;  %v588_v44 = vmul.f32 %v556_v18, %v556_v18  ;;  %v589_v45 = vmul.f32 %v557_v15, %v557_v15 }
 0x155   : > { %v600_v56 = vadd.f32 %v599_v47, %v569_v46 }
 0x157   : > { %v601_v62 = vadd.f32 %v600_v56, %v570_v53 }
 0x159   : > { %v602_v7 = vadd.f32 %v601_v62, %v571_v59 }
 0x15b   : > { %v603_v13 = vadd.f32 %v602_v7, %v572_v1 }
 0x15d   : > { %v604_v19 = vadd.f32 %v603_v13, %v573_v10 }
 0x15f   : > { %v605_v25 = vadd.f32 %v604_v19, %v574_v16 }
 0x161   : > { %v606_v30 = vadd.f32 %v605_v25, %v575_v22 }
 0x163   : > { %v607_v49 = vadd.f32 %v606_v30, %v576_v28 }
 0x165   : > { %v608_v48 = vadd.f32 %v607_v49, %v577_v31 }
 0x167   : > { %v609_v54 = vadd.f32 %v608_v48, %v578_v32 }
 0x169   : > { %v610_v35 = vadd.f32 %v609_v54, %v579_v33 }
 0x16b   : > { %v611_v60 = vadd.f32 %v610_v35, %v580_v34 }
 0x16d   : > { %v612_v37 = vadd.f32 %v611_v60, %v581_v51 }
 0x16f   : > { %v613_v38 = vadd.f32 %v612_v37, %v582_v36 }
 0x171   : > { %v614_v2 = vadd.f32 %v613_v38, %v583_v57 }
 0x173   : > { %v615_v41 = vadd.f32 %v614_v2, %v584_v39 }
 0x175   : > { %v616_v42 = vadd.f32 %v615_v41, %v585_v40 }
 0x177   : > { %v617_v8 = vadd.f32 %v616_v42, %v586_v63 }
 0x179   : > { %v618_v24 = vadd.f32 %v617_v8, %v587_v43 }
 0x17b   : > { %v619_v5 = vadd.f32 %v618_v24, %v588_v44 }
 0x17d   : > { %v620_v46 = vadd.f32 %v619_v5, %v589_v45 }
 0x17f   : > { %v621_v47 = vrot.slane %v620_v46, 4 }
 0x181   : > { %v622_v21 = vadd.f32 %v621_v47, %v620_v46 }
 0x183   : > { %v623_v14 = vrot.slane %v622_v21, 2 }
 0x185   : > { %v624_v53 = vadd.f32 %v623_v14, %v622_v21 }
 0x187   : > { %v625_v56 = vrot.slane %v624_v53, 1 }
 0x189   : > { %v626_v29 = vadd.f32 %v625_v56, %v624_v53 }
 0x18b   : > { %v628_v27 = vsel %vm627_vm0, %v1191_v4, %v626_v29 }
 0x18c   : > { %629 = vst [vmem:[%s181_s4] sm:$0x3] %v628_v27 }
 0x18d PF: > { %s14_s12 = sadd.s32 1, %s904_s12  }
 0x18e   : > { %p11_p4 = scmp.ge.s32.totalorder %s14_s12, 4  }
 0x190   :  { %13 = sbr.rel (!%p11_p4) target bundleno = 1 (0x1), region = 70 }

// kernel: double_conv.5
= control target key start
LH: loop header
LB: loop body
LE: loop exit
PB: predicated region body
PF: predicated region fallthrough
CT: control target
= control target key end

     0   :  { %s451_s12 = smov 0   ;;  %s641_s0 = inlined_call_operand.vmem [shape: f32[2,256,128], index: 0, kind: input, shape index: {}, may-alias: {0,3}]   ;;  %s642_s1 = inlined_call_operand.vmem [shape: f32[1,128], index: 1, kind: input, shape index: {}]   ;;  %s643_s2 = inlined_call_operand.vmem [shape: f32[1,128], index: 2, kind: input, shape index: {}]   ;;  %s644_s3 = inlined_call_operand.vmem [shape: f32[2,256,128], index: 3, kind: output, shape index: {}, may-alias: {0,3}]  }
   0x1 LB: > { %s400_s13 = sadd.s32 4294967295, %s429_s12   ;;  %p404_p0 = scmp.ge.s32.totalorder %s429_s12, 1  ;;  %s429_s12 = sphi %s451_s12, %s13_s12  }
   0x2   : > { %p137_p1 = scmp.lt.s32.totalorder %s429_s12, 3 }
   0x4   : > { %p138_p2 = pnand %p404_p0, %p137_p1 }
   0x5   : > { %p161_p3 = scmp.lt.s32.totalorder (!%p138_p2), %s400_s13, 1 }
   0x6   : > { %141 = sbr.rel (%p138_p2) target bundleno = 44 (0x2c), region = 32 }
   0xb   : > { %s646_s13 = smov (!%p161_p3, %s400_s13), 1  ;;  %v465_v0 = vld [vmem:[%s642_s1] ss:$0 sm:$0xff] }
   0xc   : > { %s413_s14 = sshll.u32 %s646_s13, 8  ;;  %v477_v1 = vld [vmem:[%s643_s2] ss:$0 sm:$0xff] }
   0xd   : > { %s472_s19 = scalar_lea.vmem %s641_s0, %s413_s14  ;;  %s519_s24 = scalar_lea.vmem %s644_s3, %s413_s14 }
   0xe   : > { %v171_v2 = vld [vmem:[%s472_s19] sm:$0xff]  ;;  %v172_v3 = vld [vmem:[%s472_s19 + $0x8] sm:$0xff]  ;;  %v173_v4 = vld [vmem:[%s472_s19 + $0x10] sm:$0xff] }
   0xf   : > { %v174_v5 = vld [vmem:[%s472_s19 + $0x18] sm:$0xff]  ;;  %v175_v6 = vld [vmem:[%s472_s19 + $0x20] sm:$0xff]  ;;  %v176_v7 = vld [vmem:[%s472_s19 + $0x28] sm:$0xff]  ;;  %v210_v8 = vmul.f32 %v465_v0, %v171_v2  ;;  %v211_v9 = vmul.f32 %v465_v0, %v172_v3  ;;  %v212_v10 = vmul.f32 %v465_v0, %v173_v4 }
  0x10   : > { %v177_v11 = vld [vmem:[%s472_s19 + $0x30] sm:$0xff]  ;;  %v178_v12 = vld [vmem:[%s472_s19 + $0x38] sm:$0xff]  ;;  %v213_v13 = vmul.f32 %v465_v0, %v174_v5  ;;  %v214_v14 = vmul.f32 %v465_v0, %v175_v6  ;;  %v215_v15 = vmul.f32 %v465_v0, %v176_v7  ;;  %v179_v20 = vld [vmem:[%s472_s19 + $0x40] sm:$0xff] }
  0x11   : > { %v249_v16 = vadd.f32 %v477_v1, %v210_v8  ;;  %v250_v17 = vadd.f32 %v477_v1, %v211_v9  ;;  %v251_v18 = vadd.f32 %v477_v1, %v212_v10  ;;  %v216_v19 = vmul.f32 %v465_v0, %v177_v11  ;;  %v180_v21 = vld [vmem:[%s472_s19 + $0x48] sm:$0xff]  ;;  %v181_v22 = vld [vmem:[%s472_s19 + $0x50] sm:$0xff]  ;;  %v182_v27 = vld [vmem:[%s472_s19 + $0x58] sm:$0xff] }
  0x12   : > { %v252_v23 = vadd.f32 %v477_v1, %v213_v13  ;;  %v253_v24 = vadd.f32 %v477_v1, %v214_v14  ;;  %v254_v25 = vadd.f32 %v477_v1, %v215_v15  ;;  %v217_v26 = vmul.f32 %v465_v0, %v178_v12  ;;  %v183_v28 = vld [vmem:[%s472_s19 + $0x60] sm:$0xff]  ;;  %v184_v29 = vld [vmem:[%s472_s19 + $0x68] sm:$0xff]  ;;  %v185_v34 = vld [vmem:[%s472_s19 + $0x70] sm:$0xff] }
  0x13   : > { %v281_v30 = vmax.f32 %v249_v16, 0.0  ;;  %v282_v31 = vmax.f32 %v250_v17, 0.0  ;;  %v283_v32 = vmax.f32 %v251_v18, 0.0  ;;  %v255_v33 = vadd.f32 %v477_v1, %v216_v19  ;;  %v186_v39 = vld [vmem:[%s472_s19 + $0x78] sm:$0xff]  ;;  %v187_v44 = vld [vmem:[%s472_s19 + $0x80] sm:$0xff]  ;;  %v188_v45 = vld [vmem:[%s472_s19 + $0x88] sm:$0xff] }
  0x14   : > { %v284_v35 = vmax.f32 %v252_v23, 0.0  ;;  %v285_v36 = vmax.f32 %v253_v24, 0.0  ;;  %v286_v37 = vmax.f32 %v254_v25, 0.0  ;;  %v256_v38 = vadd.f32 %v477_v1, %v217_v26  ;;  %v189_v46 = vld [vmem:[%s472_s19 + $0x90] sm:$0xff]  ;;  %v190_v47 = vld [vmem:[%s472_s19 + $0x98] sm:$0xff]  ;;  %v191_v48 = vld [vmem:[%s472_s19 + $0xa0] sm:$0xff] }
  0x15   : > { %v287_v40 = vmax.f32 %v255_v33, 0.0  ;;  %v218_v41 = vmul.f32 %v465_v0, %v179_v20  ;;  %v219_v42 = vmul.f32 %v465_v0, %v180_v21  ;;  %v220_v43 = vmul.f32 %v465_v0, %v181_v22  ;;  %v192_v49 = vld [vmem:[%s472_s19 + $0xa8] sm:$0xff]  ;;  %v193_v50 = vld [vmem:[%s472_s19 + $0xb0] sm:$0xff]  ;;  %v194_v51 = vld [vmem:[%s472_s19 + $0xb8] sm:$0xff] }
  0x16   : > { %v530_v52 = vld [vmem:[%s472_s19 + $0xc0] sm:$0xff]  ;;  %v533_v53 = vld [vmem:[%s472_s19 + $0xc8] sm:$0xff]  ;;  %v288_v54 = vmax.f32 %v256_v38, 0.0  ;;  %v221_v55 = vmul.f32 %v465_v0, %v182_v27  ;;  %v222_v56 = vmul.f32 %v465_v0, %v183_v28  ;;  %v223_v57 = vmul.f32 %v465_v0, %v184_v29  ;;  %v539_v58 = vld [vmem:[%s472_s19 + $0xd0] sm:$0xff] }
  0x17   : > { %v542_v59 = vld [vmem:[%s472_s19 + $0xd8] sm:$0xff]  ;;  %v545_v60 = vld [vmem:[%s472_s19 + $0xe0] sm:$0xff]  ;;  %v257_v61 = vadd.f32 %v477_v1, %v218_v41  ;;  %v258_v62 = vadd.f32 %v477_v1, %v219_v42  ;;  %v259_v63 = vadd.f32 %v477_v1, %v220_v43  ;;  %v224_v2 = vmul.f32 %v465_v0, %v185_v34  ;;  %v552_v3 = vld [vmem:[%s472_s19 + $0xe8] sm:$0xff] }
  0x18   : > { %v555_v4 = vld [vmem:[%s472_s19 + $0xf0] sm:$0xff]  ;;  %v558_v5 = vld [vmem:[%s472_s19 + $0xf8] sm:$0xff]  ;;  %v260_v6 = vadd.f32 %v477_v1, %v221_v55  ;;  %v261_v7 = vadd.f32 %v477_v1, %v222_v56  ;;  %v262_v8 = vadd.f32 %v477_v1, %v223_v57  ;;  %v225_v9 = vmul.f32 %v465_v0, %v186_v39 }
  0x19   : > { %313 = vst [vmem:[%s519_s24] sm:$0xff] %v281_v30  ;;  %314 = vst [vmem:[%s519_s24 + $0x8] sm:$0xff] %v282_v31  ;;  %v289_v10 = vmax.f32 %v257_v61, 0.0  ;;  %v290_v11 = vmax.f32 %v258_v62, 0.0  ;;  %v291_v12 = vmax.f32 %v259_v63, 0.0  ;;  %v263_v13 = vadd.f32 %v477_v1, %v224_v2 }
  0x1a   : > { %315 = vst [vmem:[%s519_s24 + $0x10] sm:$0xff] %v283_v32  ;;  %316 = vst [vmem:[%s519_s24 + $0x18] sm:$0xff] %v284_v35  ;;  %v292_v14 = vmax.f32 %v260_v6, 0.0  ;;  %v293_v15 = vmax.f32 %v261_v7, 0.0  ;;  %v294_v16 = vmax.f32 %v262_v8, 0.0  ;;  %v264_v17 = vadd.f32 %v477_v1, %v225_v9 }
  0x1b   : > { %317 = vst [vmem:[%s519_s24 + $0x20] sm:$0xff] %v285_v36  ;;  %318 = vst [vmem:[%s519_s24 + $0x28] sm:$0xff] %v286_v37  ;;  %v295_v18 = vmax.f32 %v263_v13, 0.0  ;;  %v226_v19 = vmul.f32 %v465_v0, %v187_v44  ;;  %v227_v20 = vmul.f32 %v465_v0, %v188_v45  ;;  %v228_v21 = vmul.f32 %v465_v0, %v189_v46 }
  0x1c   : > { %319 = vst [vmem:[%s519_s24 + $0x30] sm:$0xff] %v287_v40  ;;  %320 = vst [vmem:[%s519_s24 + $0x38] sm:$0xff] %v288_v54  ;;  %v296_v22 = vmax.f32 %v264_v17, 0.0  ;;  %v229_v23 = vmul.f32 %v465_v0, %v190_v47  ;;  %v230_v24 = vmul.f32 %v465_v0, %v191_v48  ;;  %v231_v25 = vmul.f32 %v465_v0, %v192_v49 }
  0x1d   : > { %321 = vst [vmem:[%s519_s24 + $0x40] sm:$0xff] %v289_v10  ;;  %322 = vst [vmem:[%s519_s24 + $0x48] sm:$0xff] %v290_v11  ;;  %v265_v26 = vadd.f32 %v477_v1, %v226_v19  ;;  %v266_v27 = vadd.f32 %v477_v1, %v227_v20  ;;  %v267_v28 = vadd.f32 %v477_v1, %v228_v21 }
  0x1e   : > { %323 = vst [vmem:[%s519_s24 + $0x50] sm:$0xff] %v291_v12  ;;  %324 = vst [vmem:[%s519_s24 + $0x58] sm:$0xff] %v292_v14  ;;  %v232_v29 = vmul.f32 %v465_v0, %v193_v50  ;;  %v268_v30 = vadd.f32 %v477_v1, %v229_v23  ;;  %v269_v31 = vadd.f32 %v477_v1, %v230_v24 }
  0x1f   : > { %325 = vst [vmem:[%s519_s24 + $0x60] sm:$0xff] %v293_v15  ;;  %326 = vst [vmem:[%s519_s24 + $0x68] sm:$0xff] %v294_v16  ;;  %v270_v32 = vadd.f32 %v477_v1, %v231_v25  ;;  %v233_v33 = vmul.f32 %v465_v0, %v194_v51  ;;  %v297_v34 = vmax.f32 %v265_v26, 0.0  ;;  %v298_v35 = vmax.f32 %v266_v27, 0.0 }
  0x20   : > { %327 = vst [vmem:[%s519_s24 + $0x70] sm:$0xff] %v295_v18  ;;  %328 = vst [vmem:[%s519_s24 + $0x78] sm:$0xff] %v296_v22  ;;  %v299_v36 = vmax.f32 %v267_v28, 0.0  ;;  %v271_v37 = vadd.f32 %v477_v1, %v232_v29  ;;  %v300_v38 = vmax.f32 %v268_v30, 0.0  ;;  %v301_v39 = vmax.f32 %v269_v31, 0.0 }
  0x21   : > { %v302_v40 = vmax.f32 %v270_v32, 0.0  ;;  %v272_v41 = vadd.f32 %v477_v1, %v233_v33  ;;  %329 = vst [vmem:[%s519_s24 + $0x80] sm:$0xff] %v297_v34  ;;  %330 = vst [vmem:[%s519_s24 + $0x88] sm:$0xff] %v298_v35  ;;  %v234_v43 = vmul.f32 %v465_v0, %v530_v52  ;;  %v235_v44 = vmul.f32 %v465_v0, %v533_v53 }
  0x22   : > { %331 = vst [vmem:[%s519_s24 + $0x90] sm:$0xff] %v299_v36  ;;  %v303_v42 = vmax.f32 %v271_v37, 0.0  ;;  %v236_v45 = vmul.f32 %v465_v0, %v539_v58  ;;  %332 = vst [vmem:[%s519_s24 + $0x98] sm:$0xff] %v300_v38  ;;  %v237_v47 = vmul.f32 %v465_v0, %v542_v59  ;;  %v238_v48 = vmul.f32 %v465_v0, %v545_v60 }
  0x23   : > { %333 = vst [vmem:[%s519_s24 + $0xa0] sm:$0xff] %v301_v39  ;;  %334 = vst [vmem:[%s519_s24 + $0xa8] sm:$0xff] %v302_v40  ;;  %v304_v46 = vmax.f32 %v272_v41, 0.0  ;;  %v239_v49 = vmul.f32 %v465_v0, %v552_v3  ;;  %v273_v50 = vadd.f32 %v477_v1, %v234_v43  ;;  %v274_v51 = vadd.f32 %v477_v1, %v235_v44 }
  0x24   : > { %335 = vst [vmem:[%s519_s24 + $0xb0] sm:$0xff] %v303_v42  ;;  %v275_v52 = vadd.f32 %v477_v1, %v236_v45  ;;  %v240_v53 = vmul.f32 %v465_v0, %v555_v4  ;;  %v276_v54 = vadd.f32 %v477_v1, %v237_v47  ;;  %v277_v55 = vadd.f32 %v477_v1, %v238_v48 }
  0x25   : > { %336 = vst [vmem:[%s519_s24 + $0xb8] sm:$0xff] %v304_v46  ;;  %v278_v56 = vadd.f32 %v477_v1, %v239_v49  ;;  %v241_v57 = vmul.f32 %v465_v0, %v558_v5  ;;  %v305_v58 = vmax.f32 %v273_v50, 0.0  ;;  %v306_v59 = vmax.f32 %v274_v51, 0.0 }
  0x26   : > { %v307_v60 = vmax.f32 %v275_v52, 0.0  ;;  %v279_v61 = vadd.f32 %v477_v1, %v240_v53  ;;  %v308_v62 = vmax.f32 %v276_v54, 0.0  ;;  %v309_v63 = vmax.f32 %v277_v55, 0.0 }
  0x27   : > { %v310_v2 = vmax.f32 %v278_v56, 0.0  ;;  %v280_v3 = vadd.f32 %v477_v1, %v241_v57  ;;  %337 = vst [vmem:[%s519_s24 + $0xc0] sm:$0xff] %v305_v58  ;;  %338 = vst [vmem:[%s519_s24 + $0xc8] sm:$0xff] %v306_v59 }
  0x28   : > { %339 = vst [vmem:[%s519_s24 + $0xd0] sm:$0xff] %v307_v60  ;;  %v311_v4 = vmax.f32 %v279_v61, 0.0  ;;  %340 = vst [vmem:[%s519_s24 + $0xd8] sm:$0xff] %v308_v62 }
  0x29   : > { %341 = vst [vmem:[%s519_s24 + $0xe0] sm:$0xff] %v309_v63  ;;  %342 = vst [vmem:[%s519_s24 + $0xe8] sm:$0xff] %v310_v2  ;;  %v312_v0 = vmax.f32 %v280_v3, 0.0 }
  0x2a   : > { %343 = vst [vmem:[%s519_s24 + $0xf0] sm:$0xff] %v311_v4 }
  0x2b   : > { %344 = vst [vmem:[%s519_s24 + $0xf8] sm:$0xff] %v312_v0 }
  0x2c PF: > { %s13_s12 = sadd.s32 1, %s429_s12  }
  0x2d   : > { %p10_p4 = scmp.ge.s32.totalorder %s13_s12, 4  }
  0x2f   :  { %12 = sbr.rel (!%p10_p4) target bundleno = 1 (0x1), region = 62 }

// kernel: double_conv.4
= control target key start
LH: loop header
LB: loop body
LE: loop exit
PB: predicated region body
PF: predicated region fallthrough
CT: control target
= control target key end

     0   :  { %s4654_s18 = smov 0   ;;  %s6501_s0 = inlined_call_operand.vmem [shape: f32[2,16,16,128], index: 0, kind: input, shape index: {}]   ;;  %s6502_s1 = inlined_call_operand.vmem [shape: f32[1,128], index: 1, kind: input, shape index: {}]   ;;  %s6503_s2 = inlined_call_operand.vmem [shape: f32[1,128], index: 2, kind: input, shape index: {}]   ;;  %s6504_s3 = inlined_call_operand.vmem [shape: f32[1152,128], index: 3, kind: input, shape index: {}]   ;;  %s6505_s4 = inlined_call_operand.vmem [shape: f32[2,256,128], index: 4, kind: output, shape index: {0}]   ;;  %s6506_s5 = inlined_call_operand.vmem [shape: f32[2,2,128], index: 5, kind: output, shape index: {1}]  }
   0x1 LB: > { %s3397_s19 = sadd.s32 4294967295, %s4621_s18   ;;  %p3401_p0 = scmp.ge.s32.totalorder %s4621_s18, 1  ;;  %s4621_s18 = sphi %s4654_s18, %s16_s18  }
   0x2   : > { %p190_p1 = scmp.lt.s32.totalorder %s4621_s18, 3 }
   0x4   : > { %p191_p2 = pnand %p3401_p0, %p190_p1 }
   0x6   : > { %194 = sbr.rel (%p191_p2) target bundleno = 644 (0x284), region = 36 }
   0xb   : > { %v549_v0 = vld [vmem:[%s6504_s3 + $0xf8] sm:$0xff]  ;;  %v548_v1 = vld [vmem:[%s6504_s3 + $0xf0] sm:$0xff]  ;;  %p4670_p3 = scmp.lt.s32.totalorder %s3397_s19, 1  ;;  %v4623_v2 = vmov 0.0   ;;  %v547_v3 = vld [vmem:[%s6504_s3 + $0xe8] sm:$0xff]  ;;  %vm3308_vm0 = vcmask 1040384  }
   0xc   : > { %4565 = vmatprep.subr.mxu1 %v549_v0  ;;  %3845 = vmatprep.subr.mxu0 %v549_v0  ;;  %236 = vst [vmem:[#allocation2] sm:$0xff] %v4623_v2  ;;  %237 = vst [vmem:[#allocation2 + $0x8] sm:$0xff] %v4623_v2  ;;  %v546_v4 = vld [vmem:[%s6504_s3 + $0xe0] sm:$0xff]  ;;  %v545_v5 = vld [vmem:[%s6504_s3 + $0xd8] sm:$0xff] }
   0xd   : > { %238 = vst [vmem:[#allocation2 + $0x10] sm:$0x3] %v4623_v2  ;;  %240 = vst [vmem:[#allocation2 + $0x198] sm:$0xff] %v4623_v2  ;;  %4581 = vmatpush3.msra.mxu1 %v549_v0  ;;  %3846 = vmatpush3.msra.mxu0 %v549_v0  ;;  %s6637_s19 = smov (!%p4670_p3, %s3397_s19), 1  ;;  %v4742_v6 = vld [vmem:[%s6502_s1] ss:$0 sm:$0xff] }
   0xe   : > { %241 = vst [vmem:[#allocation2 + $0x1a0] sm:$0xff] %v4623_v2  ;;  %242 = vst [vmem:[#allocation2 + $0x1a8] sm:$0x3] %v4623_v2  ;;  %4566 = vmatprep.subr.mxu1 %v548_v1  ;;  %3847 = vmatprep.subr.mxu0 %v548_v1  ;;  %s3411_s29 = sshll.u32 %s6637_s19, 8  ;;  %v4748_v8 = vld [vmem:[%s6503_s2] ss:$0 sm:$0xff] }
   0xf   : > { %244 = vst [vmem:[#allocation2 + $0x18] sm:$0x1] %v4623_v2  ;;  %245 = vst [vmem:[#allocation2 + $0x30] sm:$0x1] %v4623_v2  ;;  %4582 = vmatpush3.msra.mxu1 %v548_v1  ;;  %3848 = vmatpush3.msra.mxu0 %v548_v1  ;;  %s4737_s9 = scalar_lea.vmem %s6501_s0, %s3411_s29  ;;  %v544_v13 = vld [vmem:[%s6504_s3 + $0xd0] sm:$0xff]  ;;  %v543_v19 = vld [vmem:[%s6504_s3 + $0xc8] sm:$0xff]  ;;  %s6179_s11 = scalar_lea.vmem %s6505_s4, %s3411_s29 }
  0x10   : > { %246 = vst [vmem:[#allocation2 + $0x48] sm:$0x1] %v4623_v2  ;;  %247 = vst [vmem:[#allocation2 + $0x60] sm:$0x1] %v4623_v2  ;;  %4567 = vmatprep.subr.mxu1 %v547_v3  ;;  %3849 = vmatprep.subr.mxu0 %v547_v3  ;;  %v293_v7 = vld [vmem:[%s4737_s9 + $0x70] sm:$0xff]  ;;  %v294_v9 = vld [vmem:[%s4737_s9 + $0x78] sm:$0xff] }
  0x11   : > { %248 = vst [vmem:[#allocation2 + $0x78] sm:$0x1] %v4623_v2  ;;  %249 = vst [vmem:[#allocation2 + $0x90] sm:$0x1] %v4623_v2  ;;  %4583 = vmatpush3.msra.mxu1 %v547_v3  ;;  %3850 = vmatpush3.msra.mxu0 %v547_v3  ;;  %v332_v10 = vmul.f32 %v4742_v6, %v293_v7  ;;  %v333_v11 = vmul.f32 %v4742_v6, %v294_v9  ;;  %v295_v12 = vld [vmem:[%s4737_s9 + $0x80] sm:$0xff]  ;;  %v296_v18 = vld [vmem:[%s4737_s9 + $0x88] sm:$0xff] }
  0x12   : > { %250 = vst [vmem:[#allocation2 + $0xa8] sm:$0x1] %v4623_v2  ;;  %251 = vst [vmem:[#allocation2 + $0xc0] sm:$0x1] %v4623_v2  ;;  %4568 = vmatprep.subr.mxu1 %v546_v4  ;;  %3851 = vmatprep.subr.mxu0 %v546_v4  ;;  %v334_v14 = vmul.f32 %v4742_v6, %v295_v12  ;;  %v279_v17 = vld [vmem:[%s4737_s9] sm:$0xff]  ;;  %v335_v22 = vmul.f32 %v4742_v6, %v296_v18  ;;  %v280_v23 = vld [vmem:[%s4737_s9 + $0x8] sm:$0xff] }
  0x13   : > { %252 = vst [vmem:[#allocation2 + $0xd8] sm:$0x1] %v4623_v2  ;;  %253 = vst [vmem:[#allocation2 + $0xf0] sm:$0x1] %v4623_v2  ;;  %4584 = vmatpush3.msra.mxu1 %v546_v4  ;;  %3852 = vmatpush3.msra.mxu0 %v546_v4  ;;  %v4759_v15 = vadd.f32 %v4748_v8, %v332_v10  ;;  %v4762_v16 = vadd.f32 %v4748_v8, %v333_v11  ;;  %v297_v27 = vld [vmem:[%s4737_s9 + $0x90] sm:$0xff]  ;;  %v542_v29 = vld [vmem:[%s6504_s3 + $0xc0] sm:$0xff] }
  0x14   : > { %254 = vst [vmem:[#allocation2 + $0x108] sm:$0x1] %v4623_v2  ;;  %255 = vst [vmem:[#allocation2 + $0x120] sm:$0x1] %v4623_v2  ;;  %4569 = vmatprep.subr.mxu1 %v545_v5  ;;  %3853 = vmatprep.subr.mxu0 %v545_v5  ;;  %v4770_v20 = vadd.f32 %v4748_v8, %v334_v14  ;;  %v318_v21 = vmul.f32 %v4742_v6, %v279_v17  ;;  %v281_v28 = vld [vmem:[%s4737_s9 + $0x10] sm:$0xff]  ;;  %v298_v34 = vld [vmem:[%s4737_s9 + $0x98] sm:$0xff] }
  0x15   : > { %256 = vst [vmem:[#allocation2 + $0x138] sm:$0x1] %v4623_v2  ;;  %257 = vst [vmem:[#allocation2 + $0x150] sm:$0x1] %v4623_v2  ;;  %4585 = vmatpush3.msra.mxu1 %v545_v5  ;;  %3854 = vmatpush3.msra.mxu0 %v545_v5  ;;  %v403_v24 = vmax.f32 %v4759_v15, 0.0  ;;  %v404_v25 = vmax.f32 %v4762_v16, 0.0  ;;  %v319_v26 = vmul.f32 %v4742_v6, %v280_v23 }
  0x16   : > { %258 = vst [vmem:[#allocation2 + $0x168] sm:$0x1] %v4623_v2  ;;  %259 = vst [vmem:[#allocation2 + $0x180] sm:$0x1] %v4623_v2  ;;  %4570 = vmatprep.subr.mxu1 %v544_v13  ;;  %3855 = vmatprep.subr.mxu0 %v544_v13  ;;  %v405_v30 = vmax.f32 %v4770_v20, 0.0  ;;  %v4785_v31 = vadd.f32 %v4748_v8, %v318_v21  ;;  %v4788_v32 = vadd.f32 %v4748_v8, %v335_v22  ;;  %v282_v35 = vld [vmem:[%s4737_s9 + $0x18] sm:$0xff] }
  0x17   : > { %262 = vst [vmem:[#allocation2 + $0x29] sm:$0x1] %v4623_v2  ;;  %263 = vst [vmem:[#allocation2 + $0x41] sm:$0x1] %v4623_v2  ;;  %4586 = vmatpush3.msra.mxu1 %v544_v13  ;;  %3856 = vmatpush3.msra.mxu0 %v544_v13  ;;  %v336_v33 = vmul.f32 %v4742_v6, %v297_v27  ;;  %v358_v36 = vadd.f32 %v4748_v8, %v319_v26  ;;  %v299_v39 = vld [vmem:[%s4737_s9 + $0xa0] sm:$0xff]  ;;  %v541_v40 = vld [vmem:[%s6504_s3 + $0xb8] sm:$0xff] }
  0x18   : > { %264 = vst [vmem:[#allocation2 + $0x59] sm:$0x1] %v4623_v2  ;;  %265 = vst [vmem:[#allocation2 + $0x71] sm:$0x1] %v4623_v2  ;;  %4571 = vmatprep.subr.mxu1 %v543_v19  ;;  %3857 = vmatprep.subr.mxu0 %v543_v19  ;;  %v320_v37 = vmul.f32 %v4742_v6, %v281_v28  ;;  %v337_v38 = vmul.f32 %v4742_v6, %v298_v34  ;;  %v389_v41 = vmax.f32 %v4785_v31, 0.0  ;;  %v283_v45 = vld [vmem:[%s4737_s9 + $0x20] sm:$0xff] }
  0x19   : > { %266 = vst [vmem:[#allocation2 + $0x89] sm:$0x1] %v4623_v2  ;;  %267 = vst [vmem:[#allocation2 + $0xa1] sm:$0x1] %v4623_v2  ;;  %4587 = vmatpush3.msra.mxu1 %v543_v19  ;;  %3858 = vmatpush3.msra.mxu0 %v543_v19  ;;  %v406_v42 = vmax.f32 %v4788_v32, 0.0  ;;  %v4809_v43 = vadd.f32 %v4748_v8, %v336_v33  ;;  %v321_v44 = vmul.f32 %v4742_v6, %v282_v35  ;;  %v300_v46 = vld [vmem:[%s4737_s9 + $0xa8] sm:$0xff] }
  0x1a   : > { %268 = vst [vmem:[#allocation2 + $0xb9] sm:$0x1] %v4623_v2  ;;  %269 = vst [vmem:[#allocation2 + $0xd1] sm:$0x1] %v4623_v2  ;;  %4572 = vmatprep.subr.mxu1 %v542_v29  ;;  %3859 = vmatprep.subr.mxu0 %v542_v29  ;;  %v4814_v47 = vmax.f32 %v358_v36, 0.0  ;;  %v359_v48 = vadd.f32 %v4748_v8, %v320_v37  ;;  %v4818_v49 = vadd.f32 %v4748_v8, %v337_v38  ;;  %v284_v51 = vld [vmem:[%s4737_s9 + $0x28] sm:$0xff] }
  0x1b   : > { %270 = vst [vmem:[#allocation2 + $0xe9] sm:$0x1] %v4623_v2  ;;  %271 = vst [vmem:[#allocation2 + $0x101] sm:$0x1] %v4623_v2  ;;  %v338_v50 = vmul.f32 %v4742_v6, %v299_v39  ;;  %4588 = vmatpush3.msra.mxu1 %v542_v29  ;;  %3860 = vmatpush3.msra.mxu0 %v542_v29  ;;  %v540_v52 = vld [vmem:[%s6504_s3 + $0xb0] sm:$0xff]  ;;  %v407_v53 = vmax.f32 %v4809_v43, 0.0  ;;  %v360_v54 = vadd.f32 %v4748_v8, %v321_v44 }
  0x1c   : > { %272 = vst [vmem:[#allocation2 + $0x119] sm:$0x1] %v4623_v2  ;;  %273 = vst [vmem:[#allocation2 + $0x131] sm:$0x1] %v4623_v2  ;;  %v322_v55 = vmul.f32 %v4742_v6, %v283_v45  ;;  %v339_v56 = vmul.f32 %v4742_v6, %v300_v46  ;;  %v301_v57 = vld [vmem:[%s4737_s9 + $0xb0] sm:$0xff]  ;;  %4573 = vmatprep.subr.mxu1 %v541_v40  ;;  %3861 = vmatprep.subr.mxu0 %v541_v40  ;;  %v4835_v58 = vmax.f32 %v359_v48, 0.0 }
  0x1d   : > { %274 = vst [vmem:[#allocation2 + $0x149] sm:$0x1] %v4623_v2  ;;  %275 = vst [vmem:[#allocation2 + $0x161] sm:$0x1] %v4623_v2  ;;  %v408_v59 = vmax.f32 %v4818_v49, 0.0  ;;  %v4839_v60 = vadd.f32 %v4748_v8, %v338_v50  ;;  %v323_v61 = vmul.f32 %v4742_v6, %v284_v51  ;;  %v285_v62 = vld [vmem:[%s4737_s9 + $0x30] sm:$0xff]  ;;  %4589 = vmatpush3.msra.mxu1 %v541_v40  ;;  %3862 = vmatpush3.msra.mxu0 %v541_v40 }
  0x1e   : > { %276 = vst [vmem:[#allocation2 + $0x179] sm:$0x1] %v4623_v2  ;;  %277 = vst [vmem:[#allocation2 + $0x191] sm:$0x1] %v4623_v2  ;;  %v302_v63 = vld [vmem:[%s4737_s9 + $0xb8] sm:$0xff]  ;;  %v539_v0 = vld [vmem:[%s6504_s3 + $0xa8] sm:$0xff]  ;;  %v361_v3 = vadd.f32 %v4748_v8, %v322_v55  ;;  %v4853_v4 = vadd.f32 %v4748_v8, %v339_v56  ;;  %v340_v5 = vmul.f32 %v4742_v6, %v301_v57  ;;  %4574 = vmatprep.subr.mxu1 %v540_v52 }
  0x1f   : > { %243 = vst [vmem:[#allocation2] sm:$0x1] %v4623_v2  ;;  %260 = vst [vmem:[#allocation2 + $0x198] sm:$0x1] %v4623_v2  ;;  %v4849_v1 = vmax.f32 %v360_v54, 0.0  ;;  %v286_v7 = vld [vmem:[%s4737_s9 + $0x38] sm:$0xff]  ;;  %3863 = vmatprep.subr.mxu0 %v540_v52  ;;  %v362_v10 = vadd.f32 %v4748_v8, %v323_v61  ;;  %v324_v11 = vmul.f32 %v4742_v6, %v285_v62  ;;  %4590 = vmatpush3.msra.mxu1 %v540_v52 }
  0x20   : > { %261 = vst [vmem:[#allocation2 + $0x11] sm:$0x1] %v4623_v2  ;;  %278 = vst [vmem:[#allocation2 + $0x1a9] sm:$0x1] %v4623_v2  ;;  %v409_v9 = vmax.f32 %v4839_v60, 0.0  ;;  %v341_v12 = vmul.f32 %v4742_v6, %v302_v63  ;;  %v303_v13 = vld [vmem:[%s4737_s9 + $0xc0] sm:$0xff]  ;;  %3864 = vmatpush3.msra.mxu0 %v540_v52  ;;  %v4874_v21 = vadd.f32 %v4748_v8, %v340_v5  ;;  %4575 = vmatprep.subr.mxu1 %v539_v0 }
  0x21   : > { %436 = vst [vmem:[#allocation2 + $0xc1] sm:$0xff] %v403_v24  ;;  %437 = vst [vmem:[#allocation2 + $0xc9] sm:$0xff] %v404_v25  ;;  %v287_v14 = vld [vmem:[%s4737_s9 + $0x40] sm:$0xff]  ;;  %v4870_v18 = vmax.f32 %v361_v3, 0.0  ;;  %v410_v19 = vmax.f32 %v4853_v4, 0.0  ;;  %v325_v22 = vmul.f32 %v4742_v6, %v286_v7  ;;  %v304_v23 = vld [vmem:[%s4737_s9 + $0xc8] sm:$0xff]  ;;  %3865 = vmatprep.subr.mxu0 %v539_v0  ;;  %v363_v28 = vadd.f32 %v4748_v8, %v324_v11 }
  0x22   : > { %438 = vst [vmem:[#allocation2 + $0xd9] sm:$0xff] %v405_v30  ;;  %422 = vst [vmem:[#allocation2 + $0x19] sm:$0xff] %v389_v41  ;;  %v538_v17 = vld [vmem:[%s6504_s3 + $0xa0] sm:$0xff]  ;;  %v288_v26 = vld [vmem:[%s4737_s9 + $0x48] sm:$0xff]  ;;  %v4881_v27 = vmax.f32 %v362_v10, 0.0  ;;  %v4885_v29 = vadd.f32 %v4748_v8, %v341_v12  ;;  %v342_v33 = vmul.f32 %v4742_v6, %v303_v13  ;;  %4591 = vmatpush3.msra.mxu1 %v539_v0  ;;  %3866 = vmatpush3.msra.mxu0 %v539_v0  ;;  %s3406_s29 = sshll.u32 %s6637_s19, 1 }
  0x23   : > { %439 = vst [vmem:[#allocation2 + $0xe1] sm:$0xff] %v406_v42  ;;  %423 = vst [vmem:[#allocation2 + $0x21] sm:$0xff] %v4814_v47  ;;  %v305_v34 = vld [vmem:[%s4737_s9 + $0xd0] sm:$0xff]  ;;  %v537_v35 = vld [vmem:[%s6504_s3 + $0x98] sm:$0xff]  ;;  %v411_v36 = vmax.f32 %v4874_v21, 0.0  ;;  %v364_v37 = vadd.f32 %v4748_v8, %v325_v22  ;;  %v326_v38 = vmul.f32 %v4742_v6, %v287_v14  ;;  %v343_v39 = vmul.f32 %v4742_v6, %v304_v23  ;;  %s235_s14 = scalar_lea.vmem %s6506_s5, %s3406_s29 }
  0x24   : > { %440 = vst [vmem:[#allocation2 + $0xf1] sm:$0xff] %v407_v53  ;;  %424 = vst [vmem:[#allocation2 + $0x31] sm:$0xff] %v4835_v58  ;;  %v289_v40 = vld [vmem:[%s4737_s9 + $0x50] sm:$0xff]  ;;  %v306_v44 = vld [vmem:[%s4737_s9 + $0xd8] sm:$0xff]  ;;  %4576 = vmatprep.subr.mxu1 %v538_v17  ;;  %3867 = vmatprep.subr.mxu0 %v538_v17  ;;  %v4902_v45 = vmax.f32 %v363_v28, 0.0  ;;  %v412_v46 = vmax.f32 %v4885_v29, 0.0  ;;  %v4906_v48 = vadd.f32 %v4748_v8, %v342_v33 }
  0x25   : > { %441 = vst [vmem:[#allocation2 + $0xf9] sm:$0xff] %v408_v59  ;;  %425 = vst [vmem:[#allocation2 + $0x39] sm:$0xff] %v4849_v1  ;;  %v327_v50 = vmul.f32 %v4742_v6, %v288_v26  ;;  %v290_v51 = vld [vmem:[%s4737_s9 + $0x58] sm:$0xff]  ;;  %4592 = vmatpush3.msra.mxu1 %v538_v17  ;;  %3868 = vmatpush3.msra.mxu0 %v538_v17  ;;  %v536_v52 = vld [vmem:[%s6504_s3 + $0x90] sm:$0xff]  ;;  %v4915_v54 = vmax.f32 %v364_v37, 0.0  ;;  %v365_v55 = vadd.f32 %v4748_v8, %v326_v38 }
  0x26   : > { %442 = vst [vmem:[#allocation2 + $0x109] sm:$0xff] %v409_v9  ;;  %426 = vst [vmem:[#allocation2 + $0x49] sm:$0xff] %v4870_v18  ;;  %v4919_v56 = vadd.f32 %v4748_v8, %v343_v39  ;;  %v344_v57 = vmul.f32 %v4742_v6, %v305_v34  ;;  %v307_v61 = vld [vmem:[%s4737_s9 + $0xe0] sm:$0xff]  ;;  %4577 = vmatprep.subr.mxu1 %v537_v35  ;;  %3869 = vmatprep.subr.mxu0 %v537_v35  ;;  %v413_v62 = vmax.f32 %v4906_v48, 0.0  ;;  %v308_v7 = vld [vmem:[%s4737_s9 + $0xe8] sm:$0xff] }
  0x27   : > { %443 = vst [vmem:[#allocation2 + $0x111] sm:$0xff] %v410_v19  ;;  %427 = vst [vmem:[#allocation2 + $0x51] sm:$0xff] %v4881_v27  ;;  %v366_v63 = vadd.f32 %v4748_v8, %v327_v50  ;;  %v328_v0 = vmul.f32 %v4742_v6, %v289_v40  ;;  %v345_v3 = vmul.f32 %v4742_v6, %v306_v44  ;;  %v291_v5 = vld [vmem:[%s4737_s9 + $0x60] sm:$0xff]  ;;  %4593 = vmatpush3.msra.mxu1 %v537_v35  ;;  %v535_v10 = vld [vmem:[%s6504_s3 + $0x88] sm:$0xff] }
  0x28   : > { %444 = vst [vmem:[#allocation2 + $0x121] sm:$0xff] %v411_v36  ;;  %428 = vst [vmem:[#allocation2 + $0x61] sm:$0xff] %v4902_v45  ;;  %3870 = vmatpush3.msra.mxu0 %v537_v35  ;;  %v4936_v11 = vmax.f32 %v365_v55, 0.0  ;;  %v414_v12 = vmax.f32 %v4919_v56, 0.0  ;;  %v4940_v13 = vadd.f32 %v4748_v8, %v344_v57  ;;  %v329_v14 = vmul.f32 %v4742_v6, %v290_v51  ;;  %v292_v17 = vld [vmem:[%s4737_s9 + $0x68] sm:$0xff]  ;;  %v534_v33 = vld [vmem:[%s6504_s3 + $0x80] sm:$0xff] }
  0x29   : > { %445 = vst [vmem:[#allocation2 + $0x129] sm:$0xff] %v412_v46  ;;  %429 = vst [vmem:[#allocation2 + $0x69] sm:$0xff] %v4915_v54  ;;  %4578 = vmatprep.subr.mxu1 %v536_v52  ;;  %3871 = vmatprep.subr.mxu0 %v536_v52  ;;  %v4946_v22 = vmax.f32 %v366_v63, 0.0  ;;  %v367_v23 = vadd.f32 %v4748_v8, %v328_v0  ;;  %v4950_v26 = vadd.f32 %v4748_v8, %v345_v3  ;;  %v502_v51 = vld [vmem:[#allocation2 + $0x1] sm:$0xff]  ;;  %v503_v3 = vld [vmem:[#allocation2 + $0x9] sm:$0xff] }
  0x2a   : > { %446 = vst [vmem:[#allocation2 + $0x139] sm:$0xff] %v413_v62  ;;  %v346_v28 = vmul.f32 %v4742_v6, %v307_v61  ;;  %4594 = vmatpush3.msra.mxu1 %v536_v52  ;;  %3872 = vmatpush3.msra.mxu0 %v536_v52  ;;  %430 = vst [vmem:[#allocation2 + $0x79] sm:$0xff] %v4936_v11  ;;  %v415_v34 = vmax.f32 %v4940_v13, 0.0  ;;  %v368_v35 = vadd.f32 %v4748_v8, %v329_v14  ;;  %v501_v61 = vld [vmem:[%s6504_s3 + $0x78] sm:$0xff]  ;;  %v500_v14 = vld [vmem:[%s6504_s3 + $0x70] sm:$0xff] }
  0x2b   : > { %447 = vst [vmem:[#allocation2 + $0x141] sm:$0xff] %v414_v12  ;;  %v330_v37 = vmul.f32 %v4742_v6, %v291_v5  ;;  %v347_v38 = vmul.f32 %v4742_v6, %v308_v7  ;;  %4579 = vmatprep.subr.mxu1 %v535_v10  ;;  %3873 = vmatprep.subr.mxu0 %v535_v10  ;;  %431 = vst [vmem:[#allocation2 + $0x81] sm:$0xff] %v4946_v22  ;;  %v4964_v39 = vmax.f32 %v367_v23, 0.0  ;;  %v499_v16 = vld [vmem:[%s6504_s3 + $0x68] sm:$0xff]  ;;  %v498_v20 = vld [vmem:[%s6504_s3 + $0x60] sm:$0xff] }
  0x2c   : > { %v416_v40 = vmax.f32 %v4950_v26, 0.0  ;;  %v4968_v44 = vadd.f32 %v4748_v8, %v346_v28  ;;  %v331_v50 = vmul.f32 %v4742_v6, %v292_v17  ;;  %4595 = vmatpush3.msra.mxu1 %v535_v10  ;;  %3874 = vmatpush3.msra.mxu0 %v535_v10  ;;  %448 = vst [vmem:[#allocation2 + $0x151] sm:$0xff] %v415_v34  ;;  %v4973_v52 = vmax.f32 %v368_v35, 0.0  ;;  %v1047_v10 = vld [vmem:[%s6504_s3 + $0x178] sm:$0xff]  ;;  %v495_v43 = vld [vmem:[%s6504_s3 + $0x48] sm:$0xff]  ;;  %v309_v13 = vld [vmem:[%s4737_s9 + $0xf0] sm:$0xff] }
  0x2d   : > { %v369_v55 = vadd.f32 %v4748_v8, %v330_v37  ;;  %v4977_v57 = vadd.f32 %v4748_v8, %v347_v38  ;;  %4580 = vmatprep.subr.mxu1 %v534_v33  ;;  %3875 = vmatprep.subr.mxu0 %v534_v33  ;;  %432 = vst [vmem:[#allocation2 + $0x91] sm:$0xff] %v4964_v39  ;;  %v497_v31 = vld [vmem:[%s6504_s3 + $0x58] sm:$0xff]  ;;  %v1041_v49 = vld [vmem:[%s6504_s3 + $0x148] sm:$0xff]  ;;  %v454_v37 = vld [vmem:[#allocation2] sm:$0xff] }
  0x2e   : > { %449 = vst [vmem:[#allocation2 + $0x159] sm:$0xff] %v416_v40  ;;  %v417_v63 = vmax.f32 %v4968_v44, 0.0  ;;  %v370_v0 = vadd.f32 %v4748_v8, %v331_v50  ;;  %4596 = vmatpush3.msra.mxu1 %v534_v33  ;;  %3901 = vmatprep.mubr.f32.mxu1 %v403_v24  ;;  %433 = vst [vmem:[#allocation2 + $0x99] sm:$0xff] %v4973_v52  ;;  %v1046_v24 = vld [vmem:[%s6504_s3 + $0x170] sm:$0xff]  ;;  %v1043_v32 = vld [vmem:[%s6504_s3 + $0x158] sm:$0xff]  ;;  %v348_v26 = vmul.f32 %v4742_v6, %v309_v13 }
  0x2f   : > { %v4990_v5 = vmax.f32 %v369_v55, 0.0  ;;  %v418_v7 = vmax.f32 %v4977_v57, 0.0  ;;  %3876 = vmatpush3.msra.mxu0 %v534_v33  ;;  %3877 = vmatprep.mubr.f32.mxu0 %v502_v51  ;;  %v493_v60 = vld [vmem:[%s6504_s3 + $0x38] sm:$0xff]  ;;  %v491_v21 = vld [vmem:[%s6504_s3 + $0x28] sm:$0xff]  ;;  %v1032_v38 = vld [vmem:[%s6504_s3 + $0x100] sm:$0xff] }
  0x30   : > { %450 = vst [vmem:[#allocation2 + $0x169] sm:$0xff] %v417_v63  ;;  %v5001_v15 = vmax.f32 %v370_v0, 0.0  ;;  %3902 = vmatmul.mubr.f32.vlgmr.msra.gmra.mxu1 %v404_v25  ;;  %3925 = vmatprep.subr.mxu1 %v501_v61  ;;  %v1045_v25 = vld [vmem:[%s6504_s3 + $0x168] sm:$0xff]  ;;  %v1039_v4 = vld [vmem:[%s6504_s3 + $0x138] sm:$0xff]  ;;  %v5140_v35 = vadd.f32 %v4748_v8, %v348_v26  ;;  %v1351_v0 = vld [vmem:[%s6504_s3 + $0x1f0] sm:$0xff] }
  0x31   : > { %434 = vst [vmem:[#allocation2 + $0xa9] sm:$0xff] %v4990_v5  ;;  %451 = vst [vmem:[#allocation2 + $0x171] sm:$0xff] %v418_v7  ;;  %3878 = vmatmul.mubr.f32.vlgmr.msra.gmra.mxu0 %v503_v3  ;;  %3926 = vmatpush3.msra.mxu1 %v501_v61  ;;  %v1037_v29 = vld [vmem:[%s6504_s3 + $0x128] sm:$0xff]  ;;  %v489_v48 = vld [vmem:[%s6504_s3 + $0x18] sm:$0xff] }
  0x32   : > { %435 = vst [vmem:[#allocation2 + $0xb1] sm:$0xff] %v5001_v15  ;;  %4005 = vmatprep.subr.mxu0 %v1047_v10  ;;  %3927 = vmatprep.subr.mxu1 %v500_v14  ;;  %v1035_v56 = vld [vmem:[%s6504_s3 + $0x118] sm:$0xff]  ;;  %v487_v23 = vld [vmem:[%s6504_s3 + $0x8] sm:$0xff]  ;;  %v5164_v61 = vld [vmem:[#allocation2 + $0x20] sm:$0xff] }
  0x33   : > { %4006 = vmatpush3.msra.mxu0 %v1047_v10  ;;  %3904 = vmatprep.mubr.f32.mxu1 %v405_v30  ;;  %v1044_v30 = vld [vmem:[%s6504_s3 + $0x160] sm:$0xff]  ;;  %v310_v17 = vld [vmem:[%s4737_s9 + $0xf8] sm:$0xff]  ;;  %v1033_v33 = vld [vmem:[%s6504_s3 + $0x108] sm:$0xff] }
  0x34   : > { %3928 = vmatpush3.msra.mxu1 %v500_v14  ;;  %4007 = vmatprep.subr.mxu0 %v1046_v24  ;;  %v349_v28 = vmul.f32 %v4742_v6, %v310_v17  ;;  %v1352_v50 = vld [vmem:[%s6504_s3 + $0x1f8] sm:$0xff]  ;;  %v1001_v51 = vld [vmem:[#allocation2 + $0xa] sm:$0xff] }
  0x35   : > { %3880 = vmatprep.mubr.f32.mxu0 %v389_v41  ;;  %3905 = vmatmul.mubr.f32.gmra.mxu1 %v406_v42  ;;  %v496_v41 = vld [vmem:[%s6504_s3 + $0x50] sm:$0xff]  ;;  %v1657_v55 = vld [vmem:[%s6504_s3 + $0x278] sm:$0xff]  ;;  %v1651_v17 = vld [vmem:[%s6504_s3 + $0x248] sm:$0xff] }
  0x36   : > { %3929 = vmatprep.subr.mxu1 %v499_v16  ;;  %4008 = vmatpush3.msra.mxu0 %v1046_v24  ;;  %v1042_v42 = vld [vmem:[%s6504_s3 + $0x150] sm:$0xff]  ;;  %v5143_v6 = vadd.f32 %v4748_v8, %v349_v28  ;;  %v1000_v8 = vld [vmem:[#allocation2 + $0x2] sm:$0xff]  ;;  %v5162_v57 = vld [vmem:[#allocation2 + $0x18] sm:$0xff] }
  0x37   : > { %3881 = vmatmul.mubr.f32.gmra.mxu0 %v4814_v47  ;;  %3930 = vmatpush3.msra.mxu1 %v499_v16  ;;  %v1656_v3 = vld [vmem:[%s6504_s3 + $0x270] sm:$0xff]  ;;  %v5181_v10 = vld [vmem:[#allocation2 + $0x38] sm:$0xff]  ;;  %v1350_v24 = vld [vmem:[%s6504_s3 + $0x1e8] sm:$0xff] }
  0x38   : > { %4009 = vmatprep.subr.mxu0 %v1045_v25  ;;  %3931 = vmatprep.subr.mxu1 %v498_v20  ;;  %v6507_v44 = vmax.f32 %v5143_v6, 0.0  ;;  %v5184_v14 = vld [vmem:[#allocation2 + $0x32] sm:$0xff]  ;;  %v5190_v16 = vld [vmem:[#allocation2 + $0x3a] sm:$0xff] }
  0x39   : > { %4010 = vmatpush3.msra.mxu0 %v1045_v25  ;;  %3907 = vmatprep.mubr.f32.mxu1 %v407_v53  ;;  %v494_v53 = vld [vmem:[%s6504_s3 + $0x40] sm:$0xff]  ;;  %v1655_v25 = vld [vmem:[%s6504_s3 + $0x268] sm:$0xff]  ;;  %v5271_v26 = vld [vmem:[#allocation2 + $0xb0] sm:$0xff] }
  0x3a   : > { %3932 = vmatpush3.msra.mxu1 %v498_v20  ;;  %4011 = vmatprep.subr.mxu0 %v1044_v30  ;;  %453 = vst [vmem:[#allocation2 + $0x189] sm:$0xff] %v6507_v44  ;;  %v5196_v20 = vld [vmem:[#allocation2 + $0x48] sm:$0xff]  ;;  %v5262_v13 = vld [vmem:[#allocation2 + $0x9a] sm:$0xff] }
  0x3b   : > { %3883 = vmatprep.mubr.f32.mxu0 %v4835_v58  ;;  %3908 = vmatmul.mubr.f32.gmra.mxu1 %v408_v59  ;;  %v1040_v59 = vld [vmem:[%s6504_s3 + $0x140] sm:$0xff]  ;;  %v5274_v28 = vld [vmem:[#allocation2 + $0xaa] sm:$0xff] }
  0x3c   : > { %3933 = vmatprep.subr.mxu1 %v497_v31  ;;  %4012 = vmatpush3.msra.mxu0 %v1044_v30  ;;  %v5199_v30 = vld [vmem:[#allocation2 + $0x50] sm:$0xff]  ;;  %6526 = vst [vmem:[#allocation3_spill] sm:$0xff] %v5274_v28  ;;  %v1646_v44 = vld [vmem:[%s6504_s3 + $0x220] sm:$0xff] }
  0x3d   : > { %3884 = vmatmul.mubr.f32.gmra.mxu0 %v4849_v1  ;;  %3934 = vmatpush3.msra.mxu1 %v497_v31  ;;  %v5202_v31 = vld [vmem:[#allocation2 + $0x4a] sm:$0xff] }
  0x3e   : > { %4013 = vmatprep.subr.mxu0 %v1043_v32  ;;  %3935 = vmatprep.subr.mxu1 %v496_v41 }
  0x3f   : > { %4014 = vmatpush3.msra.mxu0 %v1043_v32  ;;  %3910 = vmatprep.mubr.f32.mxu1 %v409_v9  ;;  %v492_v9 = vld [vmem:[%s6504_s3 + $0x30] sm:$0xff]  ;;  %v1349_v32 = vld [vmem:[%s6504_s3 + $0x1e0] sm:$0xff] }
  0x40   : > { %3936 = vmatpush3.msra.mxu1 %v496_v41  ;;  %4015 = vmatprep.subr.mxu0 %v1042_v42  ;;  %v5208_v41 = vld [vmem:[#allocation2 + $0x52] sm:$0xff] }
  0x41   : > { %3886 = vmatprep.mubr.f32.mxu0 %v4870_v18  ;;  %3911 = vmatmul.mubr.f32.gmra.mxu1 %v410_v19  ;;  %v1038_v19 = vld [vmem:[%s6504_s3 + $0x130] sm:$0xff] }
  0x42   : > { %3937 = vmatprep.subr.mxu1 %v495_v43  ;;  %4016 = vmatpush3.msra.mxu0 %v1042_v42  ;;  %v1654_v42 = vld [vmem:[%s6504_s3 + $0x260] sm:$0xff] }
  0x43   : > { %3887 = vmatmul.mubr.f32.gmra.mxu0 %v4881_v27  ;;  %3938 = vmatpush3.msra.mxu1 %v495_v43  ;;  %v5214_v43 = vld [vmem:[#allocation2 + $0x60] sm:$0xff] }
  0x44   : > { %4017 = vmatprep.subr.mxu0 %v1041_v49  ;;  %3939 = vmatprep.subr.mxu1 %v494_v53 }
  0x45   : > { %4018 = vmatpush3.msra.mxu0 %v1041_v49  ;;  %3913 = vmatprep.mubr.f32.mxu1 %v411_v36  ;;  %v490_v36 = vld [vmem:[%s6504_s3 + $0x20] sm:$0xff]  ;;  %v5217_v49 = vld [vmem:[#allocation2 + $0x68] sm:$0xff] }
  0x46   : > { %3940 = vmatpush3.msra.mxu1 %v494_v53  ;;  %4019 = vmatprep.subr.mxu0 %v1040_v59  ;;  %v5220_v53 = vld [vmem:[#allocation2 + $0x62] sm:$0xff] }
  0x47   : > { %3889 = vmatprep.mubr.f32.mxu0 %v4902_v45  ;;  %3914 = vmatmul.mubr.f32.gmra.mxu1 %v412_v46  ;;  %v1036_v46 = vld [vmem:[%s6504_s3 + $0x120] sm:$0xff] }
  0x48   : > { %3941 = vmatprep.subr.mxu1 %v493_v60  ;;  %4020 = vmatpush3.msra.mxu0 %v1040_v59  ;;  %v1348_v59 = vld [vmem:[%s6504_s3 + $0x1d8] sm:$0xff] }
  0x49   : > { %3890 = vmatmul.mubr.f32.gmra.mxu0 %v4915_v54  ;;  %3942 = vmatpush3.msra.mxu1 %v493_v60  ;;  %v5226_v60 = vld [vmem:[#allocation2 + $0x6a] sm:$0xff] }
  0x4a   : > { %4021 = vmatprep.subr.mxu0 %v1039_v4  ;;  %3943 = vmatprep.subr.mxu1 %v492_v9 }
  0x4b   : > { %4022 = vmatpush3.msra.mxu0 %v1039_v4  ;;  %3916 = vmatprep.mubr.f32.mxu1 %v413_v62  ;;  %v488_v62 = vld [vmem:[%s6504_s3 + $0x10] sm:$0xff]  ;;  %v1653_v4 = vld [vmem:[%s6504_s3 + $0x258] sm:$0xff] }
  0x4c   : > { %3944 = vmatpush3.msra.mxu1 %v492_v9  ;;  %4023 = vmatprep.subr.mxu0 %v1038_v19  ;;  %v5232_v9 = vld [vmem:[#allocation2 + $0x78] sm:$0xff] }
  0x4d   : > { %3892 = vmatprep.mubr.f32.mxu0 %v4936_v11  ;;  %3917 = vmatmul.mubr.f32.gmra.mxu1 %v414_v12  ;;  %v1034_v12 = vld [vmem:[%s6504_s3 + $0x110] sm:$0xff] }
  0x4e   : > { %3945 = vmatprep.subr.mxu1 %v491_v21  ;;  %4024 = vmatpush3.msra.mxu0 %v1038_v19  ;;  %v5235_v19 = vld [vmem:[#allocation2 + $0x80] sm:$0xff] }
  0x4f   : > { %3893 = vmatmul.mubr.f32.gmra.mxu0 %v4946_v22  ;;  %3946 = vmatpush3.msra.mxu1 %v491_v21  ;;  %v5238_v21 = vld [vmem:[#allocation2 + $0x7a] sm:$0xff] }
  0x50   : > { %4025 = vmatprep.subr.mxu0 %v1037_v29  ;;  %3947 = vmatprep.subr.mxu1 %v490_v36 }
  0x51   : > { %4026 = vmatpush3.msra.mxu0 %v1037_v29  ;;  %3919 = vmatprep.mubr.f32.mxu1 %v415_v34  ;;  %v486_v34 = vld [vmem:[%s6504_s3] sm:$0xff]  ;;  %v1347_v29 = vld [vmem:[%s6504_s3 + $0x1d0] sm:$0xff] }
  0x52   : > { %3948 = vmatpush3.msra.mxu1 %v490_v36  ;;  %4027 = vmatprep.subr.mxu0 %v1036_v46  ;;  %v5244_v36 = vld [vmem:[#allocation2 + $0x82] sm:$0xff] }
  0x53   : > { %3895 = vmatprep.mubr.f32.mxu0 %v4964_v39  ;;  %3920 = vmatmul.mubr.f32.gmra.mxu1 %v416_v40  ;;  %v6508_v40 = vmax.f32 %v5140_v35, 0.0 }
  0x54   : > { %3949 = vmatprep.subr.mxu1 %v489_v48  ;;  %4028 = vmatpush3.msra.mxu0 %v1036_v46  ;;  %v1652_v46 = vld [vmem:[%s6504_s3 + $0x250] sm:$0xff] }
  0x55   : > { %3896 = vmatmul.mubr.f32.gmra.mxu0 %v4973_v52  ;;  %3950 = vmatpush3.msra.mxu1 %v489_v48  ;;  %452 = vst [vmem:[#allocation2 + $0x181] sm:$0xff] %v6508_v40  ;;  %v5250_v48 = vld [vmem:[#allocation2 + $0x90] sm:$0xff]  ;;  %v5358_v40 = vld [vmem:[#allocation2 + $0x120] sm:$0xff] }
  0x56   : > { %4029 = vmatprep.subr.mxu0 %v1035_v56  ;;  %3951 = vmatprep.subr.mxu1 %v488_v62 }
  0x57   : > { %4030 = vmatpush3.msra.mxu0 %v1035_v56  ;;  %3922 = vmatprep.mubr.f32.mxu1 %v417_v63  ;;  %v5166_v63 = vld [vmem:[#allocation2 + $0x1a] sm:$0xff] }
  0x58   : > { %3952 = vmatpush3.msra.mxu1 %v488_v62  ;;  %4031 = vmatprep.subr.mxu0 %v1034_v12  ;;  %v5253_v56 = vld [vmem:[#allocation2 + $0x98] sm:$0xff] }
  0x59   : > { %3898 = vmatprep.mubr.f32.mxu0 %v4990_v5  ;;  %3923 = vmatmul.mubr.f32.gmra.mxu1 %v418_v7  ;;  %v5178_v7 = vld [vmem:[#allocation2 + $0x30] sm:$0xff] }
  0x5a   : > { %3953 = vmatprep.subr.mxu1 %v487_v23  ;;  %4032 = vmatpush3.msra.mxu0 %v1034_v12  ;;  %v5256_v62 = vld [vmem:[#allocation2 + $0x92] sm:$0xff]  ;;  %v1346_v12 = vld [vmem:[%s6504_s3 + $0x1c8] sm:$0xff] }
  0x5b   : > { %3899 = vmatmul.mubr.f32.gmra.mxu0 %v5001_v15  ;;  %3954 = vmatpush3.msra.mxu1 %v487_v23  ;;  %v5268_v23 = vld [vmem:[#allocation2 + $0xa8] sm:$0xff] }
  0x5c   : > { %4033 = vmatprep.subr.mxu0 %v1033_v33  ;;  %3955 = vmatprep.subr.mxu1 %v486_v34 }
  0x5d   : > { %4034 = vmatpush3.msra.mxu0 %v1033_v33  ;;  %3956 = vmatpush3.msra.mxu1 %v486_v34  ;;  %v1345_v33 = vld [vmem:[%s6504_s3 + $0x1c0] sm:$0xff]  ;;  %v5280_v34 = vld [vmem:[#allocation2 + $0xb2] sm:$0xff] }
  0x5e   : > { %3957 = vmatprep.mubr.f32.mxu1 %v454_v37  ;;  %4035 = vmatprep.subr.mxu0 %v1032_v38  ;;  %6527 = vst [vmem:[#allocation4_spill] sm:$0xff] %v5280_v34  ;;  %v1650_v37 = vld [vmem:[%s6504_s3 + $0x240] sm:$0xff] }
  0x5f   : > { %3958 = vmatmul.mubr.f32.vlgmr.msra.gmra.mxu1 %v4623_v2  ;;  %4036 = vmatpush3.msra.mxu0 %v1032_v38  ;;  %v5172_v2 = vld [vmem:[#allocation2 + $0x22] sm:$0xff] }
  0x60   : > { %4037 = vmatprep.mubr.f32.mxu0 %v1000_v8  ;;  %4085 = vmatprep.subr.mxu1 %v1352_v50  ;;  %v5286_v38 = vld [vmem:[#allocation2 + $0xc0] sm:$0xff]  ;;  %v5289_v8 = vld [vmem:[#allocation2 + $0xc8] sm:$0xff] }
  0x61   : > { %4038 = vmatmul.mubr.f32.vlgmr.msra.gmra.mxu0 %v1001_v51  ;;  %4086 = vmatpush3.msra.mxu1 %v1352_v50  ;;  %v5292_v50 = vld [vmem:[#allocation2 + $0xc2] sm:$0xff]  ;;  %v1344_v51 = vld [vmem:[%s6504_s3 + $0x1b8] sm:$0xff] }
  0x62   : > { %4165 = vmatprep.subr.mxu0 %v1657_v55  ;;  %3960 = vmatprep.mubr.f32.mxu1 %v5162_v57  ;;  %6528 = vst [vmem:[#allocation5_spill] sm:$0xff] %v5292_v50 }
  0x63   : > { %4166 = vmatpush3.msra.mxu0 %v1657_v55  ;;  %3961 = vmatmul.mubr.f32.gmra.mxu1 %v5164_v61  ;;  %v5298_v55 = vld [vmem:[#allocation2 + $0xca] sm:$0xff] }
  0x64   : > { %4040 = vmatprep.mubr.f32.mxu0 %v5166_v63  ;;  %4087 = vmatprep.subr.mxu1 %v1351_v0  ;;  %6529 = vst [vmem:[#allocation6_spill] sm:$0xff] %v5298_v55 }
  0x65   : > { %4041 = vmatmul.mubr.f32.gmra.mxu0 %v5172_v2  ;;  %4088 = vmatpush3.msra.mxu1 %v1351_v0  ;;  %v1649_v0 = vld [vmem:[%s6504_s3 + $0x238] sm:$0xff] }
  0x66   : > { %4167 = vmatprep.subr.mxu0 %v1656_v3  ;;  %3963 = vmatprep.mubr.f32.mxu1 %v5178_v7 }
  0x67   : > { %4168 = vmatpush3.msra.mxu0 %v1656_v3  ;;  %3964 = vmatmul.mubr.f32.gmra.mxu1 %v5181_v10  ;;  %v5304_v3 = vld [vmem:[#allocation2 + $0xd8] sm:$0xff] }
  0x68   : > { %4043 = vmatprep.mubr.f32.mxu0 %v5184_v14  ;;  %4089 = vmatprep.subr.mxu1 %v1350_v24 }
  0x69   : > { %4044 = vmatmul.mubr.f32.gmra.mxu0 %v5190_v16  ;;  %4090 = vmatpush3.msra.mxu1 %v1350_v24  ;;  %v5307_v24 = vld [vmem:[#allocation2 + $0xe0] sm:$0xff] }
  0x6a   : > { %4169 = vmatprep.subr.mxu0 %v1655_v25  ;;  %3966 = vmatprep.mubr.f32.mxu1 %v5196_v20 }
  0x6b   : > { %4170 = vmatpush3.msra.mxu0 %v1655_v25  ;;  %3967 = vmatmul.mubr.f32.gmra.mxu1 %v5199_v30  ;;  %v5310_v25 = vld [vmem:[#allocation2 + $0xda] sm:$0xff] }
  0x6c   : > { %4046 = vmatprep.mubr.f32.mxu0 %v5202_v31  ;;  %4091 = vmatprep.subr.mxu1 %v1349_v32  ;;  %6530 = vst [vmem:[#allocation7_spill] sm:$0xff] %v5310_v25 }
  0x6d   : > { %4047 = vmatmul.mubr.f32.gmra.mxu0 %v5208_v41  ;;  %4092 = vmatpush3.msra.mxu1 %v1349_v32  ;;  %v1343_v32 = vld [vmem:[%s6504_s3 + $0x1b0] sm:$0xff] }
  0x6e   : > { %4171 = vmatprep.subr.mxu0 %v1654_v42  ;;  %3969 = vmatprep.mubr.f32.mxu1 %v5214_v43 }
  0x6f   : > { %4172 = vmatpush3.msra.mxu0 %v1654_v42  ;;  %3970 = vmatmul.mubr.f32.gmra.mxu1 %v5217_v49  ;;  %v5316_v42 = vld [vmem:[#allocation2 + $0xe2] sm:$0xff] }
  0x70   : > { %4049 = vmatprep.mubr.f32.mxu0 %v5220_v53  ;;  %4093 = vmatprep.subr.mxu1 %v1348_v59  ;;  %6531 = vst [vmem:[#allocation8_spill] sm:$0xff] %v5316_v42 }
  0x71   : > { %4050 = vmatmul.mubr.f32.gmra.mxu0 %v5226_v60  ;;  %4094 = vmatpush3.msra.mxu1 %v1348_v59  ;;  %v1648_v59 = vld [vmem:[%s6504_s3 + $0x230] sm:$0xff] }
  0x72   : > { %4173 = vmatprep.subr.mxu0 %v1653_v4  ;;  %3972 = vmatprep.mubr.f32.mxu1 %v5232_v9 }
  0x73   : > { %4174 = vmatpush3.msra.mxu0 %v1653_v4  ;;  %3973 = vmatmul.mubr.f32.gmra.mxu1 %v5235_v19  ;;  %v5322_v4 = vld [vmem:[#allocation2 + $0xf0] sm:$0xff] }
  0x74   : > { %4052 = vmatprep.mubr.f32.mxu0 %v5238_v21  ;;  %4095 = vmatprep.subr.mxu1 %v1347_v29 }
  0x75   : > { %4053 = vmatmul.mubr.f32.gmra.mxu0 %v5244_v36  ;;  %4096 = vmatpush3.msra.mxu1 %v1347_v29  ;;  %v5325_v29 = vld [vmem:[#allocation2 + $0xf8] sm:$0xff] }
  0x76   : > { %4175 = vmatprep.subr.mxu0 %v1652_v46  ;;  %3975 = vmatprep.mubr.f32.mxu1 %v5250_v48 }
  0x77   : > { %4176 = vmatpush3.msra.mxu0 %v1652_v46  ;;  %3976 = vmatmul.mubr.f32.gmra.mxu1 %v5253_v56  ;;  %v5328_v46 = vld [vmem:[#allocation2 + $0xf2] sm:$0xff] }
  0x78   : > { %4055 = vmatprep.mubr.f32.mxu0 %v5256_v62  ;;  %4097 = vmatprep.subr.mxu1 %v1346_v12  ;;  %6532 = vst [vmem:[#allocation9_spill] sm:$0xff] %v5328_v46 }
  0x79   : > { %4056 = vmatmul.mubr.f32.gmra.mxu0 %v5262_v13  ;;  %4098 = vmatpush3.msra.mxu1 %v1346_v12  ;;  %v1342_v12 = vld [vmem:[%s6504_s3 + $0x1a8] sm:$0xff] }
  0x7a   : > { %4177 = vmatprep.subr.mxu0 %v1651_v17  ;;  %3978 = vmatprep.mubr.f32.mxu1 %v5268_v23 }
  0x7b   : > { %4178 = vmatpush3.msra.mxu0 %v1651_v17  ;;  %3979 = vmatmul.mubr.f32.gmra.mxu1 %v5271_v26  ;;  %v5334_v17 = vld [vmem:[#allocation2 + $0xfa] sm:$0xff] }
  0x7c   : > { %4058 = vmatprep.mubr.f32.mxu0 %v5274_v28  ;;  %4099 = vmatprep.subr.mxu1 %v1345_v33  ;;  %6533 = vst [vmem:[#allocation10_spill] sm:$0xff] %v5334_v17  ;;  %v5424_v28 = vld [vmem:[#allocation2 + $0x172] sm:$0xff] }
  0x7d   : > { %4059 = vmatmul.mubr.f32.gmra.mxu0 %v5280_v34  ;;  %4100 = vmatpush3.msra.mxu1 %v1345_v33  ;;  %v1647_v33 = vld [vmem:[%s6504_s3 + $0x228] sm:$0xff] }
  0x7e   : > { %4179 = vmatprep.subr.mxu0 %v1650_v37  ;;  %3981 = vmatprep.mubr.f32.mxu1 %v5286_v38  ;;  %v5418_v34 = vld [vmem:[#allocation2 + $0x16a] sm:$0xff] }
  0x7f   : > { %4180 = vmatpush3.msra.mxu0 %v1650_v37  ;;  %3982 = vmatmul.mubr.f32.gmra.mxu1 %v5289_v8  ;;  %v5340_v37 = vld [vmem:[#allocation2 + $0x108] sm:$0xff] }
  0x80   : > { %4061 = vmatprep.mubr.f32.mxu0 %v5292_v50  ;;  %4101 = vmatprep.subr.mxu1 %v1344_v51  ;;  %v5406_v50 = vld [vmem:[#allocation2 + $0x15a] sm:$0xff] }
  0x81   : > { %4062 = vmatmul.mubr.f32.gmra.mxu0 %v5298_v55  ;;  %4102 = vmatpush3.msra.mxu1 %v1344_v51  ;;  %v5343_v51 = vld [vmem:[#allocation2 + $0x110] sm:$0xff]  ;;  %6541 = vst [vmem:[#allocation18_spill] sm:$0xff] %v5406_v50 }
  0x82   : > { %4181 = vmatprep.subr.mxu0 %v1649_v0  ;;  %3984 = vmatprep.mubr.f32.mxu1 %v5304_v3  ;;  %v5400_v55 = vld [vmem:[#allocation2 + $0x152] sm:$0xff] }
  0x83   : > { %4182 = vmatpush3.msra.mxu0 %v1649_v0  ;;  %3985 = vmatmul.mubr.f32.gmra.mxu1 %v5307_v24  ;;  %v5346_v0 = vld [vmem:[#allocation2 + $0x10a] sm:$0xff]  ;;  %6540 = vst [vmem:[#allocation17_spill] sm:$0xff] %v5400_v55 }
  0x84   : > { %4064 = vmatprep.mubr.f32.mxu0 %v5310_v25  ;;  %4103 = vmatprep.subr.mxu1 %v1343_v32  ;;  %6534 = vst [vmem:[#allocation11_spill] sm:$0xff] %v5346_v0  ;;  %v5388_v25 = vld [vmem:[#allocation2 + $0x142] sm:$0xff] }
  0x85   : > { %4065 = vmatmul.mubr.f32.gmra.mxu0 %v5316_v42  ;;  %4104 = vmatpush3.msra.mxu1 %v1343_v32  ;;  %v1341_v32 = vld [vmem:[%s6504_s3 + $0x1a0] sm:$0xff]  ;;  %6539 = vst [vmem:[#allocation16_spill] sm:$0xff] %v5388_v25 }
  0x86   : > { %4183 = vmatprep.subr.mxu0 %v1648_v59  ;;  %3987 = vmatprep.mubr.f32.mxu1 %v5322_v4  ;;  %v5382_v42 = vld [vmem:[#allocation2 + $0x13a] sm:$0xff] }
  0x87   : > { %4184 = vmatpush3.msra.mxu0 %v1648_v59  ;;  %3988 = vmatmul.mubr.f32.gmra.mxu1 %v5325_v29  ;;  %v5352_v59 = vld [vmem:[#allocation2 + $0x112] sm:$0xff]  ;;  %6538 = vst [vmem:[#allocation15_spill] sm:$0xff] %v5382_v42 }
  0x88   : > { %4067 = vmatprep.mubr.f32.mxu0 %v5328_v46  ;;  %4105 = vmatprep.subr.mxu1 %v1342_v12  ;;  %6535 = vst [vmem:[#allocation12_spill] sm:$0xff] %v5352_v59  ;;  %v5370_v46 = vld [vmem:[#allocation2 + $0x12a] sm:$0xff] }
  0x89   : > { %4068 = vmatmul.mubr.f32.gmra.mxu0 %v5334_v17  ;;  %4106 = vmatpush3.msra.mxu1 %v1342_v12  ;;  %v5361_v12 = vld [vmem:[#allocation2 + $0x128] sm:$0xff]  ;;  %6537 = vst [vmem:[#allocation14_spill] sm:$0xff] %v5370_v46 }
  0x8a   : > { %4185 = vmatprep.subr.mxu0 %v1647_v33  ;;  %3990 = vmatprep.mubr.f32.mxu1 %v5340_v37  ;;  %v5364_v17 = vld [vmem:[#allocation2 + $0x122] sm:$0xff] }
  0x8b   : > { %4186 = vmatpush3.msra.mxu0 %v1647_v33  ;;  %3991 = vmatmul.mubr.f32.gmra.mxu1 %v5343_v51  ;;  %6536 = vst [vmem:[#allocation13_spill] sm:$0xff] %v5364_v17  ;;  %v1340_v33 = vld [vmem:[%s6504_s3 + $0x198] sm:$0xff] }
  0x8c   : > { %4070 = vmatprep.mubr.f32.mxu0 %v5346_v0  ;;  %4107 = vmatprep.subr.mxu1 %v1341_v32  ;;  %v1645_v0 = vld [vmem:[%s6504_s3 + $0x218] sm:$0xff] }
  0x8d   : > { %4071 = vmatmul.mubr.f32.gmra.mxu0 %v5352_v59  ;;  %4108 = vmatpush3.msra.mxu1 %v1341_v32  ;;  %v5376_v59 = vld [vmem:[#allocation2 + $0x138] sm:$0xff]  ;;  %v5379_v32 = vld [vmem:[#allocation2 + $0x140] sm:$0xff] }
  0x8e   : > { %4187 = vmatprep.subr.mxu0 %v1646_v44  ;;  %3993 = vmatprep.mubr.f32.mxu1 %v5358_v40 }
  0x8f   : > { %4188 = vmatpush3.msra.mxu0 %v1646_v44  ;;  %3994 = vmatmul.mubr.f32.gmra.mxu1 %v5361_v12  ;;  %v1339_v44 = vld [vmem:[%s6504_s3 + $0x190] sm:$0xff] }
  0x90   : > { %4073 = vmatprep.mubr.f32.mxu0 %v5364_v17  ;;  %4109 = vmatprep.subr.mxu1 %v1340_v33  ;;  %v1644_v17 = vld [vmem:[%s6504_s3 + $0x210] sm:$0xff] }
  0x91   : > { %4074 = vmatmul.mubr.f32.gmra.mxu0 %v5370_v46  ;;  %4110 = vmatpush3.msra.mxu1 %v1340_v33  ;;  %v5394_v46 = vld [vmem:[#allocation2 + $0x150] sm:$0xff]  ;;  %v5397_v33 = vld [vmem:[#allocation2 + $0x158] sm:$0xff] }
  0x92   : > { %4189 = vmatprep.subr.mxu0 %v1645_v0  ;;  %3996 = vmatprep.mubr.f32.mxu1 %v5376_v59 }
  0x93   : > { %4190 = vmatpush3.msra.mxu0 %v1645_v0  ;;  %3997 = vmatmul.mubr.f32.gmra.mxu1 %v5379_v32  ;;  %v1338_v0 = vld [vmem:[%s6504_s3 + $0x188] sm:$0xff] }
  0x94   : > { %4076 = vmatprep.mubr.f32.mxu0 %v5382_v42  ;;  %4111 = vmatprep.subr.mxu1 %v1339_v44  ;;  %v1643_v42 = vld [vmem:[%s6504_s3 + $0x208] sm:$0xff] }
  0x95   : > { %4077 = vmatmul.mubr.f32.gmra.mxu0 %v5388_v25  ;;  %4112 = vmatpush3.msra.mxu1 %v1339_v44  ;;  %v5412_v25 = vld [vmem:[#allocation2 + $0x168] sm:$0xff]  ;;  %v5415_v44 = vld [vmem:[#allocation2 + $0x170] sm:$0xff] }
  0x96   : > { %4191 = vmatprep.subr.mxu0 %v1644_v17  ;;  %3999 = vmatprep.mubr.f32.mxu1 %v5394_v46 }
  0x97   : > { %4192 = vmatpush3.msra.mxu0 %v1644_v17  ;;  %4000 = vmatmul.mubr.f32.gmra.mxu1 %v5397_v33  ;;  %v1337_v17 = vld [vmem:[%s6504_s3 + $0x180] sm:$0xff] }
  0x98   : > { %4079 = vmatprep.mubr.f32.mxu0 %v5400_v55  ;;  %4113 = vmatprep.subr.mxu1 %v1338_v0  ;;  %v1642_v55 = vld [vmem:[%s6504_s3 + $0x200] sm:$0xff] }
  0x99   : > { %4080 = vmatmul.mubr.f32.gmra.mxu0 %v5406_v50  ;;  %4114 = vmatpush3.msra.mxu1 %v1338_v0  ;;  %v1962_v0 = vld [vmem:[%s6504_s3 + $0x2f8] sm:$0xff] }
  0x9a   : > { %4193 = vmatprep.subr.mxu0 %v1643_v42  ;;  %4002 = vmatprep.mubr.f32.mxu1 %v5412_v25  ;;  %v4606_v50 = vld [vmem:[#allocation2 + $0x19] sm:$0xff] }
  0x9b   : > { %4194 = vmatpush3.msra.mxu0 %v1643_v42  ;;  %4003 = vmatmul.mubr.f32.gmra.mxu1 %v5415_v44  ;;  %v2268_v42 = vld [vmem:[%s6504_s3 + $0x378] sm:$0xff] }
  0x9c   : > { %4082 = vmatprep.mubr.f32.mxu0 %v5418_v34  ;;  %4115 = vmatprep.subr.mxu1 %v1337_v17 }
  0x9d   : > { %4083 = vmatmul.mubr.f32.gmra.mxu0 %v5424_v28  ;;  %4116 = vmatpush3.msra.mxu1 %v1337_v17  ;;  %v1961_v17 = vld [vmem:[%s6504_s3 + $0x2f0] sm:$0xff] }
  0x9e   : > { %4195 = vmatprep.subr.mxu0 %v1642_v55  ;;  %4117 = vmatprep.mubr.f32.mxu1 %v5162_v57  ;;  %v2267_v57 = vld [vmem:[%s6504_s3 + $0x370] sm:$0xff] }
  0x9f   : > { %4196 = vmatpush3.msra.mxu0 %v1642_v55  ;;  %4118 = vmatmul.mubr.f32.vlgmr.msra.gmra.mxu1 %v5164_v61  ;;  %v2266_v61 = vld [vmem:[%s6504_s3 + $0x368] sm:$0xff]  ;;  %v1954_v55 = vld [vmem:[%s6504_s3 + $0x2b8] sm:$0xff] }
  0xa0   : > { %4197 = vmatprep.mubr.f32.mxu0 %v4606_v50  ;;  %4245 = vmatprep.subr.mxu1 %v1962_v0  ;;  %v5507_v50 = vld [vmem:[#allocation2 + $0xc9] sm:$0xff] }
  0xa1   : > { %4198 = vmatmul.mubr.f32.vlgmr.msra.gmra.mxu0 %v4814_v47  ;;  %4246 = vmatpush3.msra.mxu1 %v1962_v0  ;;  %v1960_v47 = vld [vmem:[%s6504_s3 + $0x2e8] sm:$0xff] }
  0xa2   : > { %4325 = vmatprep.subr.mxu0 %v2268_v42  ;;  %4120 = vmatprep.mubr.f32.mxu1 %v5178_v7  ;;  %v5521_v0 = vld [vmem:[#allocation2 + $0xe1] sm:$0xff] }
  0xa3   : > { %4326 = vmatpush3.msra.mxu0 %v2268_v42  ;;  %4121 = vmatmul.mubr.f32.gmra.mxu1 %v5181_v10  ;;  %v2260_v42 = vld [vmem:[%s6504_s3 + $0x338] sm:$0xff] }
  0xa4   : > { %4200 = vmatprep.mubr.f32.mxu0 %v4835_v58  ;;  %4247 = vmatprep.subr.mxu1 %v1961_v17  ;;  %v1959_v58 = vld [vmem:[%s6504_s3 + $0x2e0] sm:$0xff] }
  0xa5   : > { %4201 = vmatmul.mubr.f32.gmra.mxu0 %v4849_v1  ;;  %4248 = vmatpush3.msra.mxu1 %v1961_v17  ;;  %v2265_v1 = vld [vmem:[%s6504_s3 + $0x360] sm:$0xff]  ;;  %v5529_v17 = vld [vmem:[#allocation2 + $0xf1] sm:$0xff] }
  0xa6   : > { %4327 = vmatprep.subr.mxu0 %v2267_v57  ;;  %4123 = vmatprep.mubr.f32.mxu1 %v5196_v20 }
  0xa7   : > { %4328 = vmatpush3.msra.mxu0 %v2267_v57  ;;  %4124 = vmatmul.mubr.f32.gmra.mxu1 %v5199_v30  ;;  %v1953_v57 = vld [vmem:[%s6504_s3 + $0x2b0] sm:$0xff] }
  0xa8   : > { %4203 = vmatprep.mubr.f32.mxu0 %v4870_v18  ;;  %4249 = vmatprep.subr.mxu1 %v1960_v47  ;;  %v1958_v18 = vld [vmem:[%s6504_s3 + $0x2d8] sm:$0xff] }
  0xa9   : > { %4204 = vmatmul.mubr.f32.gmra.mxu0 %v4881_v27  ;;  %4250 = vmatpush3.msra.mxu1 %v1960_v47  ;;  %v2264_v27 = vld [vmem:[%s6504_s3 + $0x358] sm:$0xff] }
  0xaa   : > { %4329 = vmatprep.subr.mxu0 %v2266_v61  ;;  %4126 = vmatprep.mubr.f32.mxu1 %v5214_v43  ;;  %v5535_v47 = vld [vmem:[#allocation2 + $0xf9] sm:$0xff] }
  0xab   : > { %4330 = vmatpush3.msra.mxu0 %v2266_v61  ;;  %4127 = vmatmul.mubr.f32.gmra.mxu1 %v5217_v49  ;;  %v2259_v61 = vld [vmem:[%s6504_s3 + $0x330] sm:$0xff] }
  0xac   : > { %4206 = vmatprep.mubr.f32.mxu0 %v4902_v45  ;;  %4251 = vmatprep.subr.mxu1 %v1959_v58  ;;  %v1957_v45 = vld [vmem:[%s6504_s3 + $0x2d0] sm:$0xff] }
  0xad   : > { %4207 = vmatmul.mubr.f32.gmra.mxu0 %v4915_v54  ;;  %4252 = vmatpush3.msra.mxu1 %v1959_v58  ;;  %v2263_v54 = vld [vmem:[%s6504_s3 + $0x350] sm:$0xff] }
  0xae   : > { %4331 = vmatprep.subr.mxu0 %v2265_v1  ;;  %4129 = vmatprep.mubr.f32.mxu1 %v5232_v9  ;;  %v5543_v58 = vld [vmem:[#allocation2 + $0x109] sm:$0xff] }
  0xaf   : > { %4332 = vmatpush3.msra.mxu0 %v2265_v1  ;;  %4130 = vmatmul.mubr.f32.gmra.mxu1 %v5235_v19  ;;  %v1952_v1 = vld [vmem:[%s6504_s3 + $0x2a8] sm:$0xff] }
  0xb0   : > { %4209 = vmatprep.mubr.f32.mxu0 %v4936_v11  ;;  %4253 = vmatprep.subr.mxu1 %v1958_v18  ;;  %v1956_v11 = vld [vmem:[%s6504_s3 + $0x2c8] sm:$0xff] }
  0xb1   : > { %4210 = vmatmul.mubr.f32.gmra.mxu0 %v4946_v22  ;;  %4254 = vmatpush3.msra.mxu1 %v1958_v18  ;;  %v2262_v22 = vld [vmem:[%s6504_s3 + $0x348] sm:$0xff]  ;;  %v5549_v18 = vld [vmem:[#allocation2 + $0x111] sm:$0xff] }
  0xb2   : > { %4333 = vmatprep.subr.mxu0 %v2264_v27  ;;  %4132 = vmatprep.mubr.f32.mxu1 %v5250_v48 }
  0xb3   : > { %4334 = vmatpush3.msra.mxu0 %v2264_v27  ;;  %4133 = vmatmul.mubr.f32.gmra.mxu1 %v5253_v56  ;;  %v2258_v27 = vld [vmem:[%s6504_s3 + $0x328] sm:$0xff] }
  0xb4   : > { %4212 = vmatprep.mubr.f32.mxu0 %v4964_v39  ;;  %4255 = vmatprep.subr.mxu1 %v1957_v45  ;;  %v5501_v39 = vld [vmem:[#allocation2 + $0xc1] sm:$0xff] }
  0xb5   : > { %4213 = vmatmul.mubr.f32.gmra.mxu0 %v4973_v52  ;;  %4256 = vmatpush3.msra.mxu1 %v1957_v45  ;;  %v1955_v52 = vld [vmem:[%s6504_s3 + $0x2c0] sm:$0xff] }
  0xb6   : > { %4335 = vmatprep.subr.mxu0 %v2263_v54  ;;  %4135 = vmatprep.mubr.f32.mxu1 %v5268_v23  ;;  %v5557_v45 = vld [vmem:[#allocation2 + $0x121] sm:$0xff] }
  0xb7   : > { %4336 = vmatpush3.msra.mxu0 %v2263_v54  ;;  %4136 = vmatmul.mubr.f32.gmra.mxu1 %v5271_v26  ;;  %v1951_v54 = vld [vmem:[%s6504_s3 + $0x2a0] sm:$0xff] }
  0xb8   : > { %4215 = vmatprep.mubr.f32.mxu0 %v4990_v5  ;;  %4257 = vmatprep.subr.mxu1 %v1956_v11  ;;  %v2261_v5 = vld [vmem:[%s6504_s3 + $0x340] sm:$0xff] }
  0xb9   : > { %4216 = vmatmul.mubr.f32.gmra.mxu0 %v5001_v15  ;;  %4258 = vmatpush3.msra.mxu1 %v1956_v11  ;;  %v5515_v15 = vld [vmem:[#allocation2 + $0xd9] sm:$0xff]  ;;  %v5563_v11 = vld [vmem:[#allocation2 + $0x129] sm:$0xff] }
  0xba   : > { %4337 = vmatprep.subr.mxu0 %v2262_v22  ;;  %4138 = vmatprep.mubr.f32.mxu1 %v5286_v38 }
  0xbb   : > { %4338 = vmatpush3.msra.mxu0 %v2262_v22  ;;  %4139 = vmatmul.mubr.f32.gmra.mxu1 %v5289_v8  ;;  %v2257_v22 = vld [vmem:[%s6504_s3 + $0x320] sm:$0xff] }
  0xbc   : > { %4218 = vmatprep.mubr.f32.mxu0 %v5501_v39  ;;  %4259 = vmatprep.subr.mxu1 %v1955_v52 }
  0xbd   : > { %4219 = vmatmul.mubr.f32.gmra.mxu0 %v5507_v50  ;;  %4260 = vmatpush3.msra.mxu1 %v1955_v52  ;;  %v5571_v52 = vld [vmem:[#allocation2 + $0x139] sm:$0xff] }
  0xbe   : > { %4339 = vmatprep.subr.mxu0 %v2261_v5  ;;  %4141 = vmatprep.mubr.f32.mxu1 %v5304_v3 }
  0xbf   : > { %4340 = vmatpush3.msra.mxu0 %v2261_v5  ;;  %4142 = vmatmul.mubr.f32.gmra.mxu1 %v5307_v24  ;;  %v1950_v5 = vld [vmem:[%s6504_s3 + $0x298] sm:$0xff] }
  0xc0   : > { %4221 = vmatprep.mubr.f32.mxu0 %v5515_v15  ;;  %4261 = vmatprep.subr.mxu1 %v1954_v55 }
  0xc1   : > { %4222 = vmatmul.mubr.f32.gmra.mxu0 %v5521_v0  ;;  %4262 = vmatpush3.msra.mxu1 %v1954_v55  ;;  %v2256_v55 = vld [vmem:[%s6504_s3 + $0x318] sm:$0xff] }
  0xc2   : > { %4341 = vmatprep.subr.mxu0 %v2260_v42  ;;  %4144 = vmatprep.mubr.f32.mxu1 %v5322_v4 }
  0xc3   : > { %4342 = vmatpush3.msra.mxu0 %v2260_v42  ;;  %4145 = vmatmul.mubr.f32.gmra.mxu1 %v5325_v29  ;;  %v4607_v42 = vld [vmem:[#allocation2 + $0x141] sm:$0xff] }
  0xc4   : > { %4224 = vmatprep.mubr.f32.mxu0 %v5529_v17  ;;  %4263 = vmatprep.subr.mxu1 %v1953_v57 }
  0xc5   : > { %4225 = vmatmul.mubr.f32.gmra.mxu0 %v5535_v47  ;;  %4264 = vmatpush3.msra.mxu1 %v1953_v57  ;;  %v1949_v57 = vld [vmem:[%s6504_s3 + $0x290] sm:$0xff] }
  0xc6   : > { %4343 = vmatprep.subr.mxu0 %v2259_v61  ;;  %4147 = vmatprep.mubr.f32.mxu1 %v5340_v37 }
  0xc7   : > { %4344 = vmatpush3.msra.mxu0 %v2259_v61  ;;  %4148 = vmatmul.mubr.f32.gmra.mxu1 %v5343_v51  ;;  %v2255_v61 = vld [vmem:[%s6504_s3 + $0x310] sm:$0xff] }
  0xc8   : > { %4227 = vmatprep.mubr.f32.mxu0 %v5543_v58  ;;  %4265 = vmatprep.subr.mxu1 %v1952_v1 }
  0xc9   : > { %4228 = vmatmul.mubr.f32.gmra.mxu0 %v5549_v18  ;;  %4266 = vmatpush3.msra.mxu1 %v1952_v1  ;;  %v4608_v1 = vld [vmem:[#allocation2 + $0x151] sm:$0xff] }
  0xca   : > { %4345 = vmatprep.subr.mxu0 %v2258_v27  ;;  %4150 = vmatprep.mubr.f32.mxu1 %v5358_v40 }
  0xcb   : > { %4346 = vmatpush3.msra.mxu0 %v2258_v27  ;;  %4151 = vmatmul.mubr.f32.gmra.mxu1 %v5361_v12  ;;  %v4609_v27 = vld [vmem:[#allocation2 + $0x159] sm:$0xff] }
  0xcc   : > { %4230 = vmatprep.mubr.f32.mxu0 %v5557_v45  ;;  %4267 = vmatprep.subr.mxu1 %v1951_v54 }
  0xcd   : > { %4231 = vmatmul.mubr.f32.gmra.mxu0 %v5563_v11  ;;  %4268 = vmatpush3.msra.mxu1 %v1951_v54  ;;  %v1948_v54 = vld [vmem:[%s6504_s3 + $0x288] sm:$0xff] }
  0xce   : > { %4347 = vmatprep.subr.mxu0 %v2257_v22  ;;  %4153 = vmatprep.mubr.f32.mxu1 %v5376_v59 }
  0xcf   : > { %4348 = vmatpush3.msra.mxu0 %v2257_v22  ;;  %4154 = vmatmul.mubr.f32.gmra.mxu1 %v5379_v32  ;;  %v2254_v22 = vld [vmem:[%s6504_s3 + $0x308] sm:$0xff] }
  0xd0   : > { %4233 = vmatprep.mubr.f32.mxu0 %v5571_v52  ;;  %4269 = vmatprep.subr.mxu1 %v1950_v5 }
  0xd1   : > { %4234 = vmatmul.mubr.f32.gmra.mxu0 %v4607_v42  ;;  %4270 = vmatpush3.msra.mxu1 %v1950_v5  ;;  %v5598_v5 = vld [vmem:[#allocation2 + $0x180] sm:$0xff]  ;;  %v5600_v42 = vld [vmem:[#allocation2 + $0x188] sm:$0xff] }
  0xd2   : > { %4349 = vmatprep.subr.mxu0 %v2256_v55  ;;  %4156 = vmatprep.mubr.f32.mxu1 %v5394_v46 }
  0xd3   : > { %4350 = vmatpush3.msra.mxu0 %v2256_v55  ;;  %4157 = vmatmul.mubr.f32.gmra.mxu1 %v5397_v33  ;;  %v4610_v55 = vld [vmem:[#allocation2 + $0x169] sm:$0xff] }
  0xd4   : > { %4236 = vmatprep.mubr.f32.mxu0 %v4608_v1  ;;  %4271 = vmatprep.subr.mxu1 %v1949_v57  ;;  %v2253_v1 = vld [vmem:[%s6504_s3 + $0x300] sm:$0xff] }
  0xd5   : > { %4237 = vmatmul.mubr.f32.gmra.mxu0 %v4609_v27  ;;  %4272 = vmatpush3.msra.mxu1 %v1949_v57  ;;  %v4611_v57 = vld [vmem:[#allocation2 + $0x171] sm:$0xff]  ;;  %v6542_v27 = vmax.f32 %v5140_v35, 0.0 }
  0xd6   : > { %4351 = vmatprep.subr.mxu0 %v2255_v61  ;;  %4159 = vmatprep.mubr.f32.mxu1 %v5412_v25  ;;  %v2878_v35 = vld [vmem:[%s6504_s3 + $0x478] sm:$0xff] }
  0xd7   : > { %4352 = vmatpush3.msra.mxu0 %v2255_v61  ;;  %4160 = vmatmul.mubr.f32.gmra.mxu1 %v5415_v44  ;;  %v1947_v61 = vld [vmem:[%s6504_s3 + $0x280] sm:$0xff] }
  0xd8   : > { %4239 = vmatprep.mubr.f32.mxu0 %v4610_v55  ;;  %4273 = vmatprep.subr.mxu1 %v1948_v54  ;;  %v2573_v55 = vld [vmem:[%s6504_s3 + $0x3f8] sm:$0xff] }
  0xd9   : > { %4240 = vmatmul.mubr.f32.gmra.mxu0 %v4611_v57  ;;  %4274 = vmatpush3.msra.mxu1 %v1948_v54  ;;  %v6543_v54 = vmax.f32 %v5143_v6, 0.0  ;;  %v2572_v6 = vld [vmem:[%s6504_s3 + $0x3f0] sm:$0xff] }
  0xda   : > { %4353 = vmatprep.subr.mxu0 %v2254_v22  ;;  %4162 = vmatprep.mubr.f32.mxu1 %v5598_v5 }
  0xdb   : > { %4354 = vmatpush3.msra.mxu0 %v2254_v22  ;;  %4163 = vmatmul.mubr.f32.gmra.mxu1 %v5600_v42 }
  0xdc   : > { %4242 = vmatprep.mubr.f32.mxu0 %v6542_v27  ;;  %4275 = vmatprep.subr.mxu1 %v1947_v61  ;;  %v6549_v27 = vld [vmem:[#allocation8_spill] sm:$0xff] }
  0xdd   : > { %4243 = vmatmul.mubr.f32.gmra.mxu0 %v6543_v54  ;;  %4276 = vmatpush3.msra.mxu1 %v1947_v61  ;;  %v2564_v54 = vld [vmem:[%s6504_s3 + $0x3b0] sm:$0xff] }
  0xde   : > { %4355 = vmatprep.subr.mxu0 %v2253_v1  ;;  %4277 = vmatprep.mubr.f32.mxu1 %v5166_v63  ;;  %v2877_v63 = vld [vmem:[%s6504_s3 + $0x470] sm:$0xff] }
  0xdf   : > { %4356 = vmatpush3.msra.mxu0 %v2253_v1  ;;  %4278 = vmatmul.mubr.f32.vlgmr.msra.gmra.mxu1 %v5172_v2  ;;  %v2571_v2 = vld [vmem:[%s6504_s3 + $0x3e8] sm:$0xff]  ;;  %v6548_v1 = vld [vmem:[#allocation7_spill] sm:$0xff] }
  0xe0   : > { %4357 = vmatprep.mubr.f32.mxu0 %v5178_v7  ;;  %4405 = vmatprep.subr.mxu1 %v2573_v55  ;;  %v2876_v7 = vld [vmem:[%s6504_s3 + $0x468] sm:$0xff] }
  0xe1   : > { %4358 = vmatmul.mubr.f32.vlgmr.msra.gmra.mxu0 %v5181_v10  ;;  %4406 = vmatpush3.msra.mxu1 %v2573_v55  ;;  %v2570_v10 = vld [vmem:[%s6504_s3 + $0x3e0] sm:$0xff] }
  0xe2   : > { %4485 = vmatprep.subr.mxu0 %v2878_v35  ;;  %4280 = vmatprep.mubr.f32.mxu1 %v5184_v14  ;;  %v2875_v14 = vld [vmem:[%s6504_s3 + $0x460] sm:$0xff] }
  0xe3   : > { %4486 = vmatpush3.msra.mxu0 %v2878_v35  ;;  %4281 = vmatmul.mubr.f32.gmra.mxu1 %v5190_v16  ;;  %v2569_v16 = vld [vmem:[%s6504_s3 + $0x3d8] sm:$0xff]  ;;  %v6550_v35 = vld [vmem:[#allocation9_spill] sm:$0xff] }
  0xe4   : > { %4360 = vmatprep.mubr.f32.mxu0 %v5196_v20  ;;  %4407 = vmatprep.subr.mxu1 %v2572_v6  ;;  %v2874_v20 = vld [vmem:[%s6504_s3 + $0x458] sm:$0xff] }
  0xe5   : > { %4361 = vmatmul.mubr.f32.gmra.mxu0 %v5199_v30  ;;  %4408 = vmatpush3.msra.mxu1 %v2572_v6  ;;  %v6551_v6 = vld [vmem:[#allocation10_spill] sm:$0xff] }
  0xe6   : > { %4487 = vmatprep.subr.mxu0 %v2877_v63  ;;  %4283 = vmatprep.mubr.f32.mxu1 %v5202_v31  ;;  %v2568_v31 = vld [vmem:[%s6504_s3 + $0x3d0] sm:$0xff] }
  0xe7   : > { %4488 = vmatpush3.msra.mxu0 %v2877_v63  ;;  %4284 = vmatmul.mubr.f32.gmra.mxu1 %v5208_v41 }
  0xe8   : > { %4363 = vmatprep.mubr.f32.mxu0 %v5214_v43  ;;  %4409 = vmatprep.subr.mxu1 %v2571_v2 }
  0xe9   : > { %4364 = vmatmul.mubr.f32.gmra.mxu0 %v5217_v49  ;;  %4410 = vmatpush3.msra.mxu1 %v2571_v2  ;;  %v2873_v49 = vld [vmem:[%s6504_s3 + $0x450] sm:$0xff]  ;;  %v2563_v2 = vld [vmem:[%s6504_s3 + $0x3a8] sm:$0xff] }
  0xea   : > { %4489 = vmatprep.subr.mxu0 %v2876_v7  ;;  %4286 = vmatprep.mubr.f32.mxu1 %v5220_v53 }
  0xeb   : > { %4490 = vmatpush3.msra.mxu0 %v2876_v7  ;;  %4287 = vmatmul.mubr.f32.gmra.mxu1 %v5226_v60  ;;  %v2567_v60 = vld [vmem:[%s6504_s3 + $0x3c8] sm:$0xff] }
  0xec   : > { %4366 = vmatprep.mubr.f32.mxu0 %v5232_v9  ;;  %4411 = vmatprep.subr.mxu1 %v2570_v10 }
  0xed   : > { %4367 = vmatmul.mubr.f32.gmra.mxu0 %v5235_v19  ;;  %4412 = vmatpush3.msra.mxu1 %v2570_v10  ;;  %v6544_v19 = vld [vmem:[#allocation3_spill] sm:$0xff] }
  0xee   : > { %4491 = vmatprep.subr.mxu0 %v2875_v14  ;;  %4289 = vmatprep.mubr.f32.mxu1 %v5238_v21  ;;  %v6545_v21 = vld [vmem:[#allocation4_spill] sm:$0xff]  ;;  %v6552_v10 = vld [vmem:[#allocation11_spill] sm:$0xff] }
  0xef   : > { %4492 = vmatpush3.msra.mxu0 %v2875_v14  ;;  %4290 = vmatmul.mubr.f32.gmra.mxu1 %v5244_v36  ;;  %v2872_v36 = vld [vmem:[%s6504_s3 + $0x448] sm:$0xff]  ;;  %v6553_v14 = vld [vmem:[#allocation12_spill] sm:$0xff] }
  0xf0   : > { %4369 = vmatprep.mubr.f32.mxu0 %v5250_v48  ;;  %4413 = vmatprep.subr.mxu1 %v2569_v16  ;;  %v5663_v30 = vpop.f32.mrf.mxu1 }
  0xf1   : > { %4370 = vmatmul.mubr.f32.gmra.mxu0 %v5253_v56  ;;  %4414 = vmatpush3.msra.mxu1 %v2569_v16  ;;  %v5669_v41 = vpop.f32.mrf.mxu0 }
  0xf2   : > { %4493 = vmatprep.subr.mxu0 %v2874_v20  ;;  %4292 = vmatprep.mubr.f32.mxu1 %v5256_v62  ;;  %v5672_v43 = vpop.f32.mrf.mxu1  ;;  %v2566_v62 = vld [vmem:[%s6504_s3 + $0x3c0] sm:$0xff] }
  0xf3   : > { %4494 = vmatpush3.msra.mxu0 %v2874_v20  ;;  %4293 = vmatmul.mubr.f32.gmra.mxu1 %v5262_v13  ;;  %v5678_v53 = vpop.f32.mrf.mxu0 }
  0xf4   : > { %4372 = vmatprep.mubr.f32.mxu0 %v5268_v23  ;;  %4415 = vmatprep.subr.mxu1 %v2568_v31  ;;  %v6546_v23 = vld [vmem:[#allocation5_spill] sm:$0xff] }
  0xf5   : > { %4373 = vmatmul.mubr.f32.gmra.mxu0 %v5271_v26  ;;  %4416 = vmatpush3.msra.mxu1 %v2568_v31  ;;  %v5685_v9 = vpop.f32.mrf.mxu1  ;;  %v6547_v26 = vld [vmem:[#allocation6_spill] sm:$0xff] }
  0xf6   : > { %4495 = vmatprep.subr.mxu0 %v2873_v49  ;;  %4295 = vmatprep.mubr.f32.mxu1 %v6544_v19  ;;  %v2561_v19 = vld [vmem:[%s6504_s3 + $0x398] sm:$0xff] }
  0xf7   : > { %4496 = vmatpush3.msra.mxu0 %v2873_v49  ;;  %4296 = vmatmul.mubr.f32.gmra.mxu1 %v6545_v21  ;;  %v5692_v48 = vpop.f32.mrf.mxu0  ;;  %v5694_v56 = vpop.f32.mrf.mxu1  ;;  %v6554_v49 = vld [vmem:[#allocation13_spill] sm:$0xff] }
  0xf8   : > { %4375 = vmatprep.mubr.f32.mxu0 %v5286_v38  ;;  %4417 = vmatprep.subr.mxu1 %v2567_v60  ;;  %v2871_v38 = vld [vmem:[%s6504_s3 + $0x440] sm:$0xff] }
  0xf9   : > { %4376 = vmatmul.mubr.f32.gmra.mxu0 %v5289_v8  ;;  %4418 = vmatpush3.msra.mxu1 %v2567_v60  ;;  %v5701_v13 = vpop.f32.mrf.mxu0  ;;  %v2565_v8 = vld [vmem:[%s6504_s3 + $0x3b8] sm:$0xff]  ;;  %v6555_v60 = vld [vmem:[#allocation14_spill] sm:$0xff] }
  0xfa   : > { %4497 = vmatprep.subr.mxu0 %v2872_v36  ;;  %4298 = vmatprep.mubr.f32.mxu1 %v6546_v23 }
  0xfb   : > { %4498 = vmatpush3.msra.mxu0 %v2872_v36  ;;  %4299 = vmatmul.mubr.f32.gmra.mxu1 %v6547_v26  ;;  %v5708_v22 = vpop.f32.mrf.mxu1  ;;  %v6556_v36 = vld [vmem:[#allocation15_spill] sm:$0xff] }
  0xfc   : > { %4378 = vmatprep.mubr.f32.mxu0 %v5304_v3  ;;  %4419 = vmatprep.subr.mxu1 %v2566_v62  ;;  %v2870_v3 = vld [vmem:[%s6504_s3 + $0x438] sm:$0xff]  ;;  %v2560_v26 = vld [vmem:[%s6504_s3 + $0x390] sm:$0xff] }
  0xfd   : > { %4379 = vmatmul.mubr.f32.gmra.mxu0 %v5307_v24  ;;  %4420 = vmatpush3.msra.mxu1 %v2566_v62  ;;  %v5715_v57 = vpop.f32.mrf.mxu0  ;;  %v5717_v61 = vpop.f32.mrf.mxu1  ;;  %v6557_v62 = vld [vmem:[#allocation16_spill] sm:$0xff] }
  0xfe   : > { %4499 = vmatprep.subr.mxu0 %v2871_v38  ;;  %4301 = vmatprep.mubr.f32.mxu1 %v6548_v1  ;;  %v6559_v1 = vld [vmem:[#allocation18_spill] sm:$0xff] }
  0xff   : > { %4500 = vmatpush3.msra.mxu0 %v2871_v38  ;;  %4302 = vmatmul.mubr.f32.gmra.mxu1 %v6549_v27  ;;  %v5724_v24 = vpop.f32.mrf.mxu0 }
 0x100   : > { %4381 = vmatprep.mubr.f32.mxu0 %v5322_v4  ;;  %4421 = vmatprep.subr.mxu1 %v2565_v8  ;;  %v2869_v4 = vld [vmem:[%s6504_s3 + $0x430] sm:$0xff] }
 0x101   : > { %4382 = vmatmul.mubr.f32.gmra.mxu0 %v5325_v29  ;;  %4422 = vmatpush3.msra.mxu1 %v2565_v8  ;;  %v5731_v55 = vpop.f32.mrf.mxu1  ;;  %v6558_v8 = vld [vmem:[#allocation17_spill] sm:$0xff] }
 0x102   : > { %4501 = vmatprep.subr.mxu0 %v2870_v3  ;;  %4304 = vmatprep.mubr.f32.mxu1 %v6550_v35  ;;  %v5818_v35 = vld [vmem:[#allocation2 + $0x182] sm:$0xff] }
 0x103   : > { %4502 = vmatpush3.msra.mxu0 %v2870_v3  ;;  %4305 = vmatmul.mubr.f32.gmra.mxu1 %v6551_v6  ;;  %v5738_v63 = vpop.f32.mrf.mxu0  ;;  %v5740_v29 = vpop.f32.mrf.mxu1  ;;  %v5821_v6 = vld [vmem:[#allocation2 + $0x18a] sm:$0xff] }
 0x104   : > { %4384 = vmatprep.mubr.f32.mxu0 %v5340_v37  ;;  %4423 = vmatprep.subr.mxu1 %v2564_v54  ;;  %v2868_v37 = vld [vmem:[%s6504_s3 + $0x428] sm:$0xff] }
 0x105   : > { %4385 = vmatmul.mubr.f32.gmra.mxu0 %v5343_v51  ;;  %4424 = vmatpush3.msra.mxu1 %v2564_v54  ;;  %v5747_v7 = vpop.f32.mrf.mxu0  ;;  %v2562_v51 = vld [vmem:[%s6504_s3 + $0x3a0] sm:$0xff] }
 0x106   : > { %4503 = vmatprep.subr.mxu0 %v2869_v4  ;;  %4307 = vmatprep.mubr.f32.mxu1 %v6552_v10  ;;  %v2526_v10 = vld [vmem:[#allocation2 + $0x31] sm:$0xff] }
 0x107   : > { %4504 = vmatpush3.msra.mxu0 %v2869_v4  ;;  %4308 = vmatmul.mubr.f32.gmra.mxu1 %v6553_v14  ;;  %v5754_v16 = vpop.f32.mrf.mxu1  ;;  %v2251_v4 = vld [vmem:[#allocation2 + $0x198] sm:$0xff] }
 0x108   : > { %4387 = vmatprep.mubr.f32.mxu0 %v5358_v40  ;;  %4425 = vmatprep.subr.mxu1 %v2563_v2  ;;  %v2867_v40 = vld [vmem:[%s6504_s3 + $0x420] sm:$0xff] }
 0x109   : > { %4388 = vmatmul.mubr.f32.gmra.mxu0 %v5361_v12  ;;  %4426 = vmatpush3.msra.mxu1 %v2563_v2  ;;  %v5761_v20 = vpop.f32.mrf.mxu0  ;;  %v5763_v31 = vpop.f32.mrf.mxu1  ;;  %v2527_v14 = vld [vmem:[#allocation2 + $0x39] sm:$0xff] }
 0x10a   : > { %4505 = vmatprep.subr.mxu0 %v2868_v37  ;;  %4310 = vmatprep.mubr.f32.mxu1 %v6554_v49  ;;  %v2831_v49 = vld [vmem:[#allocation2 + $0x32] sm:$0xff] }
 0x10b   : > { %4506 = vmatpush3.msra.mxu0 %v2868_v37  ;;  %4311 = vmatmul.mubr.f32.gmra.mxu1 %v6555_v60  ;;  %v5770_v12 = vpop.f32.mrf.mxu0  ;;  %v4612_v37 = vld [vmem:[#allocation2 + $0x8] sm:$0xff] }
 0x10c   : > { %4390 = vmatprep.mubr.f32.mxu0 %v5376_v59  ;;  %4427 = vmatprep.subr.mxu1 %v2562_v51  ;;  %v2866_v59 = vld [vmem:[%s6504_s3 + $0x418] sm:$0xff]  ;;  %v2528_v60 = vld [vmem:[#allocation2 + $0x49] sm:$0xff] }
 0x10d   : > { %4391 = vmatmul.mubr.f32.gmra.mxu0 %v5379_v32  ;;  %4428 = vmatpush3.msra.mxu1 %v2562_v51  ;;  %v5777_v21 = vpop.f32.mrf.mxu1 }
 0x10e   : > { %4507 = vmatprep.subr.mxu0 %v2867_v40  ;;  %4313 = vmatprep.mubr.f32.mxu1 %v6556_v36  ;;  %v2833_v36 = vld [vmem:[#allocation2 + $0x4a] sm:$0xff] }
 0x10f   : > { %4508 = vmatpush3.msra.mxu0 %v2867_v40  ;;  %4314 = vmatmul.mubr.f32.gmra.mxu1 %v6557_v62  ;;  %v5784_v23 = vpop.f32.mrf.mxu0  ;;  %v5786_v32 = vpop.f32.mrf.mxu1  ;;  %v2832_v40 = vld [vmem:[#allocation2 + $0x3a] sm:$0xff] }
 0x110   : > { %4393 = vmatprep.mubr.f32.mxu0 %v5394_v46  ;;  %4429 = vmatprep.subr.mxu1 %v2561_v19  ;;  %v2865_v46 = vld [vmem:[%s6504_s3 + $0x410] sm:$0xff] }
 0x111   : > { %4394 = vmatmul.mubr.f32.gmra.mxu0 %v5397_v33  ;;  %4430 = vmatpush3.msra.mxu1 %v2561_v19  ;;  %v5793_v38 = vpop.f32.mrf.mxu0  ;;  %v2559_v33 = vld [vmem:[%s6504_s3 + $0x388] sm:$0xff] }
 0x112   : > { %4509 = vmatprep.subr.mxu0 %v2866_v59  ;;  %4316 = vmatprep.mubr.f32.mxu1 %v6558_v8 }
 0x113   : > { %4510 = vmatpush3.msra.mxu0 %v2866_v59  ;;  %4317 = vmatmul.mubr.f32.gmra.mxu1 %v6559_v1  ;;  %v5800_v27 = vpop.f32.mrf.mxu1  ;;  %v2529_v59 = vld [vmem:[#allocation2 + $0x51] sm:$0xff]  ;;  %v2530_v1 = vld [vmem:[#allocation2 + $0x61] sm:$0xff] }
 0x114   : > { %4396 = vmatprep.mubr.f32.mxu0 %v5412_v25  ;;  %4431 = vmatprep.subr.mxu1 %v2560_v26  ;;  %v2864_v25 = vld [vmem:[%s6504_s3 + $0x408] sm:$0xff] }
 0x115   : > { %4397 = vmatmul.mubr.f32.gmra.mxu0 %v5415_v44  ;;  %4432 = vmatpush3.msra.mxu1 %v2560_v26  ;;  %v5807_v3 = vpop.f32.mrf.mxu0  ;;  %v5809_v54 = vpop.f32.mrf.mxu1 }
 0x116   : > { %4511 = vmatprep.subr.mxu0 %v2865_v46  ;;  %4319 = vmatprep.mubr.f32.mxu1 %v5418_v34 }
 0x117   : > { %4512 = vmatpush3.msra.mxu0 %v2865_v46  ;;  %4320 = vmatmul.mubr.f32.gmra.mxu1 %v5424_v28  ;;  %v5816_v44 = vpop.f32.mrf.mxu0  ;;  %v2558_v28 = vld [vmem:[%s6504_s3 + $0x380] sm:$0xff] }
 0x118   : > { %4399 = vmatprep.mubr.f32.mxu0 %v5598_v5  ;;  %4433 = vmatprep.subr.mxu1 %v2559_v33 }
 0x119   : > { %4400 = vmatmul.mubr.f32.gmra.mxu0 %v5600_v42  ;;  %4434 = vmatpush3.msra.mxu1 %v2559_v33  ;;  %v5824_v34 = vpop.f32.mrf.mxu1  ;;  %v2863_v42 = vld [vmem:[%s6504_s3 + $0x400] sm:$0xff] }
 0x11a   : > { %4513 = vmatprep.subr.mxu0 %v2864_v25  ;;  %4322 = vmatprep.mubr.f32.mxu1 %v5818_v35 }
 0x11b   : > { %4514 = vmatpush3.msra.mxu0 %v2864_v25  ;;  %4323 = vmatmul.mubr.f32.gmra.mxu1 %v5821_v6  ;;  %v5831_v5 = vpop.f32.mrf.mxu0  ;;  %v5833_v2 = vpop.f32.mrf.mxu1  ;;  %v2834_v25 = vld [vmem:[#allocation2 + $0x52] sm:$0xff] }
 0x11c   : > { %4402 = vmatprep.mubr.f32.mxu0 %v2251_v4  ;;  %4435 = vmatprep.subr.mxu1 %v2558_v28 }
 0x11d   : > { %4403 = vmatmul.mubr.f32.gmra.mxu0 %v4612_v37  ;;  %4436 = vmatpush3.msra.mxu1 %v2558_v28  ;;  %v5838_v51 = vpop.f32.mrf.mxu0 }
 0x11e   : > { %4515 = vmatprep.subr.mxu0 %v2863_v42  ;;  %4437 = vmatprep.mubr.f32.mxu1 %v2526_v10 }
 0x11f   : > { %4516 = vmatpush3.msra.mxu0 %v2863_v42  ;;  %v3959_v19 = vpop.f32.mrf.mxu1  ;;  %4438 = vmatmul.mubr.f32.vlgmr.msra.gmra.mxu1 %v2527_v14  ;;  %v2835_v42 = vld [vmem:[#allocation2 + $0x62] sm:$0xff] }
 0x120   : > { %v847_v62 = vadd.f32 %v3959_v19, %v5669_v41  ;;  %4517 = vmatprep.mubr.f32.mxu0 %v2831_v49  ;;  %4440 = vmatprep.mubr.f32.mxu1 %v2528_v60  ;;  %v2531_v14 = vld [vmem:[#allocation2 + $0x69] sm:$0xff]  ;;  %v2532_v60 = vld [vmem:[#allocation2 + $0x79] sm:$0xff] }
 0x121   : > { %v4039_v26 = vpop.f32.mrf.mxu0  ;;  %4518 = vmatmul.mubr.f32.vlgmr.msra.gmra.mxu0 %v2832_v40  ;;  %v841_v8 = vpop.f32.mrf.mxu1  ;;  %v2836_v19 = vld [vmem:[#allocation2 + $0x6a] sm:$0xff] }
 0x122   : > { %v5841_v46 = vadd.f32 %v4039_v26, %v847_v62  ;;  %v842_v33 = vadd.f32 %v841_v8, %v5678_v53  ;;  %4520 = vmatprep.mubr.f32.mxu0 %v2833_v36  ;;  %v2533_v8 = vld [vmem:[#allocation2 + $0x81] sm:$0xff] }
 0x123   : > { %v1114_v4 = vpop.f32.mrf.mxu0  ;;  %v3962_v28 = vpop.f32.mrf.mxu1  ;;  %4441 = vmatmul.mubr.f32.gmra.mxu1 %v2529_v59  ;;  %v2837_v59 = vld [vmem:[#allocation2 + $0x7a] sm:$0xff] }
 0x124   : > { %v5844_v10 = vadd.f32 %v1114_v4, %v842_v33  ;;  %v857_v41 = vadd.f32 %v3962_v28, %v5692_v48  ;;  %4443 = vmatprep.mubr.f32.mxu1 %v2530_v1  ;;  %v2838_v28 = vld [vmem:[#allocation2 + $0x82] sm:$0xff] }
 0x125   : > { %v4042_v37 = vpop.f32.mrf.mxu0  ;;  %4521 = vmatmul.mubr.f32.gmra.mxu0 %v2834_v25  ;;  %v851_v49 = vpop.f32.mrf.mxu1  ;;  %v2534_v25 = vld [vmem:[#allocation2 + $0x91] sm:$0xff] }
 0x126   : > { %v5847_v40 = vadd.f32 %v4042_v37, %v857_v41  ;;  %v852_v53 = vadd.f32 %v851_v49, %v5701_v13  ;;  %4523 = vmatprep.mubr.f32.mxu0 %v2835_v42  ;;  %v2535_v49 = vld [vmem:[#allocation2 + $0x99] sm:$0xff] }
 0x127   : > { %v1124_v36 = vpop.f32.mrf.mxu0  ;;  %v3965_v62 = vpop.f32.mrf.mxu1  ;;  %4444 = vmatmul.mubr.f32.gmra.mxu1 %v2531_v14  ;;  %v2839_v14 = vld [vmem:[#allocation2 + $0x92] sm:$0xff] }
 0x128   : > { %v5850_v26 = vadd.f32 %v1124_v36, %v852_v53  ;;  %v867_v48 = vadd.f32 %v3965_v62, %v5715_v57  ;;  %4446 = vmatprep.mubr.f32.mxu1 %v2532_v60  ;;  %v2840_v62 = vld [vmem:[#allocation2 + $0x9a] sm:$0xff] }
 0x129   : > { %v4045_v1 = vpop.f32.mrf.mxu0  ;;  %4524 = vmatmul.mubr.f32.gmra.mxu0 %v2836_v19  ;;  %v861_v33 = vpop.f32.mrf.mxu1  ;;  %v2536_v19 = vld [vmem:[#allocation2 + $0xa9] sm:$0xff] }
 0x12a   : > { %v5853_v4 = vadd.f32 %v4045_v1, %v867_v48  ;;  %v862_v13 = vadd.f32 %v861_v33, %v5724_v24  ;;  %4526 = vmatprep.mubr.f32.mxu0 %v2837_v59  ;;  %v2537_v33 = vld [vmem:[#allocation2 + $0xb1] sm:$0xff] }
 0x12b   : > { %v1134_v42 = vpop.f32.mrf.mxu0  ;;  %v3968_v41 = vpop.f32.mrf.mxu1  ;;  %4447 = vmatmul.mubr.f32.gmra.mxu1 %v2533_v8  ;;  %v2841_v8 = vld [vmem:[#allocation2 + $0xaa] sm:$0xff] }
 0x12c   : > { %v5856_v37 = vadd.f32 %v1134_v42, %v862_v13  ;;  %v877_v57 = vadd.f32 %v3968_v41, %v5738_v63  ;;  %4449 = vmatprep.mubr.f32.mxu1 %v2534_v25 }
 0x12d   : > { %v4048_v60 = vpop.f32.mrf.mxu0  ;;  %4527 = vmatmul.mubr.f32.gmra.mxu0 %v2838_v28  ;;  %v871_v53 = vpop.f32.mrf.mxu1 }
 0x12e   : > { %v5859_v36 = vadd.f32 %v4048_v60, %v877_v57  ;;  %v872_v24 = vadd.f32 %v871_v53, %v5747_v7  ;;  %4529 = vmatprep.mubr.f32.mxu0 %v2839_v14  ;;  %v2842_v7 = vld [vmem:[#allocation2 + $0xb2] sm:$0xff]  ;;  %v2843_v57 = vld [vmem:[#allocation2 + $0xc2] sm:$0xff] }
 0x12f   : > { %v1144_v59 = vpop.f32.mrf.mxu0  ;;  %v3971_v48 = vpop.f32.mrf.mxu1  ;;  %4450 = vmatmul.mubr.f32.gmra.mxu1 %v2535_v49 }
 0x130   : > { %v5862_v1 = vadd.f32 %v1144_v59, %v872_v24  ;;  %v887_v63 = vadd.f32 %v3971_v48, %v5761_v20  ;;  %4452 = vmatprep.mubr.f32.mxu1 %v2536_v19  ;;  %v2845_v48 = vld [vmem:[#allocation2 + $0xda] sm:$0xff] }
 0x131   : > { %v4051_v25 = vpop.f32.mrf.mxu0  ;;  %4530 = vmatmul.mubr.f32.gmra.mxu0 %v2840_v62  ;;  %v881_v13 = vpop.f32.mrf.mxu1 }
 0x132   : > { %v5865_v28 = vadd.f32 %v4051_v25, %v887_v63  ;;  %v882_v42 = vadd.f32 %v881_v13, %v5770_v12  ;;  %4532 = vmatprep.mubr.f32.mxu0 %v2841_v8  ;;  %v2844_v12 = vld [vmem:[#allocation2 + $0xca] sm:$0xff]  ;;  %v2846_v25 = vld [vmem:[#allocation2 + $0xe2] sm:$0xff] }
 0x133   : > { %v1154_v41 = vpop.f32.mrf.mxu0  ;;  %v3974_v14 = vpop.f32.mrf.mxu1  ;;  %4453 = vmatmul.mubr.f32.gmra.mxu1 %v2537_v33 }
 0x134   : > { %v5868_v49 = vadd.f32 %v1154_v41, %v882_v42  ;;  %v897_v60 = vadd.f32 %v3974_v14, %v5784_v23  ;;  %4455 = vmatprep.mubr.f32.mxu1 %v5501_v39 }
 0x135   : > { %v4054_v20 = vpop.f32.mrf.mxu0  ;;  %4533 = vmatmul.mubr.f32.gmra.mxu0 %v2842_v7  ;;  %v891_v53 = vpop.f32.mrf.mxu1 }
 0x136   : > { %v5872_v19 = vadd.f32 %v4054_v20, %v897_v60  ;;  %v892_v24 = vadd.f32 %v891_v53, %v5793_v38  ;;  %4535 = vmatprep.mubr.f32.mxu0 %v2843_v57  ;;  %v2848_v57 = vld [vmem:[#allocation2 + $0xfa] sm:$0xff] }
 0x137   : > { %v1164_v62 = vpop.f32.mrf.mxu0  ;;  %v3977_v59 = vpop.f32.mrf.mxu1  ;;  %4456 = vmatmul.mubr.f32.gmra.mxu1 %v5507_v50  ;;  %v2847_v50 = vld [vmem:[#allocation2 + $0xf2] sm:$0xff] }
 0x138   : > { %v5876_v8 = vadd.f32 %v1164_v62, %v892_v24  ;;  %v907_v23 = vadd.f32 %v3977_v59, %v5807_v3  ;;  %4458 = vmatprep.mubr.f32.mxu1 %v5515_v15  ;;  %v2850_v62 = vld [vmem:[#allocation2 + $0x112] sm:$0xff] }
 0x139   : > { %v4057_v39 = vpop.f32.mrf.mxu0  ;;  %4536 = vmatmul.mubr.f32.gmra.mxu0 %v2844_v12  ;;  %v901_v63 = vpop.f32.mrf.mxu1 }
 0x13a   : > { %v5880_v33 = vadd.f32 %v4057_v39, %v907_v23  ;;  %v902_v38 = vadd.f32 %v901_v63, %v5816_v44  ;;  %4538 = vmatprep.mubr.f32.mxu0 %v2845_v48 }
 0x13b   : > { %v1174_v13 = vpop.f32.mrf.mxu0  ;;  %v3980_v42 = vpop.f32.mrf.mxu1  ;;  %4459 = vmatmul.mubr.f32.gmra.mxu1 %v5521_v0  ;;  %v2849_v0 = vld [vmem:[#allocation2 + $0x10a] sm:$0xff] }
 0x13c   : > { %v5884_v7 = vadd.f32 %v1174_v13, %v902_v38  ;;  %v917_v3 = vadd.f32 %v3980_v42, %v5831_v5  ;;  %4461 = vmatprep.mubr.f32.mxu1 %v5529_v17  ;;  %v2852_v38 = vld [vmem:[#allocation2 + $0x12a] sm:$0xff] }
 0x13d   : > { %v4060_v15 = vpop.f32.mrf.mxu0  ;;  %4539 = vmatmul.mubr.f32.gmra.mxu0 %v2846_v25  ;;  %v911_v41 = vpop.f32.mrf.mxu1 }
 0x13e   : > { %v5888_v14 = vadd.f32 %v4060_v15, %v917_v3  ;;  %v912_v44 = vadd.f32 %v911_v41, %v5838_v51  ;;  %4541 = vmatprep.mubr.f32.mxu0 %v2847_v50  ;;  %v2550_v15 = vld [vmem:[#allocation2 + $0x151] sm:$0xff] }
 0x13f   : > { %v1184_v60 = vpop.f32.mrf.mxu0  ;;  %v3983_v20 = vpop.f32.mrf.mxu1  ;;  %4462 = vmatmul.mubr.f32.gmra.mxu1 %v5535_v47  ;;  %v2851_v47 = vld [vmem:[#allocation2 + $0x122] sm:$0xff] }
 0x140   : > { %v5892_v53 = vadd.f32 %v1184_v60, %v912_v44  ;;  %v927_v5 = vadd.f32 %v3983_v20, %v5663_v30  ;;  %4464 = vmatprep.mubr.f32.mxu1 %v5543_v58  ;;  %v2854_v44 = vld [vmem:[#allocation2 + $0x142] sm:$0xff]  ;;  %v2855_v60 = vld [vmem:[#allocation2 + $0x152] sm:$0xff] }
 0x141   : > { %v4063_v17 = vpop.f32.mrf.mxu0  ;;  %4542 = vmatmul.mubr.f32.gmra.mxu0 %v2848_v57  ;;  %v921_v24 = vpop.f32.mrf.mxu1 }
 0x142   : > { %v5896_v12 = vadd.f32 %v4063_v17, %v927_v5  ;;  %v922_v51 = vadd.f32 %v921_v24, %v5672_v43  ;;  %4544 = vmatprep.mubr.f32.mxu0 %v2849_v0  ;;  %v2552_v17 = vld [vmem:[#allocation2 + $0x169] sm:$0xff] }
 0x143   : > { %v1194_v59 = vpop.f32.mrf.mxu0  ;;  %v3986_v48 = vpop.f32.mrf.mxu1  ;;  %4465 = vmatmul.mubr.f32.gmra.mxu1 %v5549_v18  ;;  %v2853_v18 = vld [vmem:[#allocation2 + $0x13a] sm:$0xff] }
 0x144   : > { %v5900_v23 = vadd.f32 %v1194_v59, %v922_v51  ;;  %v937_v30 = vadd.f32 %v3986_v48, %v5685_v9  ;;  %4467 = vmatprep.mubr.f32.mxu1 %v5557_v45  ;;  %v2549_v45 = vld [vmem:[#allocation2 + $0x141] sm:$0xff]  ;;  %v2857_v48 = vld [vmem:[#allocation2 + $0x16a] sm:$0xff] }
 0x145   : > { %v4066_v58 = vpop.f32.mrf.mxu0  ;;  %4545 = vmatmul.mubr.f32.gmra.mxu0 %v2850_v62  ;;  %v931_v39 = vpop.f32.mrf.mxu1  ;;  %v2856_v51 = vld [vmem:[#allocation2 + $0x15a] sm:$0xff] }
 0x146   : > { %v5904_v63 = vadd.f32 %v4066_v58, %v937_v30  ;;  %v932_v43 = vadd.f32 %v931_v39, %v5694_v56  ;;  %4547 = vmatprep.mubr.f32.mxu0 %v2851_v47  ;;  %v2553_v30 = vld [vmem:[#allocation2 + $0x171] sm:$0xff] }
 0x147   : > { %v1204_v25 = vpop.f32.mrf.mxu0  ;;  %v3989_v13 = vpop.f32.mrf.mxu1  ;;  %4468 = vmatmul.mubr.f32.gmra.mxu1 %v5563_v11 }
 0x148   : > { %v5908_v42 = vadd.f32 %v1204_v25, %v932_v43  ;;  %v947_v9 = vadd.f32 %v3989_v13, %v5708_v22  ;;  %4470 = vmatprep.mubr.f32.mxu1 %v5571_v52  ;;  %v2551_v52 = vld [vmem:[#allocation2 + $0x159] sm:$0xff] }
 0x149   : > { %v4069_v50 = vpop.f32.mrf.mxu0  ;;  %4548 = vmatmul.mubr.f32.gmra.mxu0 %v2852_v38  ;;  %v941_v3 = vpop.f32.mrf.mxu1 }
 0x14a   : > { %v5912_v41 = vadd.f32 %v4069_v50, %v947_v9  ;;  %v942_v56 = vadd.f32 %v941_v3, %v5717_v61  ;;  %4550 = vmatprep.mubr.f32.mxu0 %v2853_v18  ;;  %v2556_v3 = vld [vmem:[#allocation2 + $0x199] sm:$0xff] }
 0x14b   : > { %v1214_v57 = vpop.f32.mrf.mxu0  ;;  %v3992_v11 = vpop.f32.mrf.mxu1  ;;  %4471 = vmatmul.mubr.f32.gmra.mxu1 %v2549_v45  ;;  %v4613_v45 = vld [vmem:[#allocation2 + $0x181] sm:$0xff] }
 0x14c   : > { %v5915_v20 = vadd.f32 %v1214_v57, %v942_v56  ;;  %v957_v22 = vadd.f32 %v3992_v11, %v5731_v55  ;;  %4473 = vmatprep.mubr.f32.mxu1 %v2550_v15  ;;  %v4614_v57 = vld [vmem:[#allocation2 + $0x189] sm:$0xff]  ;;  %v2861_v11 = vld [vmem:[#allocation2 + $0x19a] sm:$0xff] }
 0x14d   : > { %v4072_v0 = vpop.f32.mrf.mxu0  ;;  %4551 = vmatmul.mubr.f32.gmra.mxu0 %v2854_v44  ;;  %v951_v5 = vpop.f32.mrf.mxu1 }
 0x14e   : > { %v5918_v24 = vadd.f32 %v4072_v0, %v957_v22  ;;  %v952_v61 = vadd.f32 %v951_v5, %v5740_v29  ;;  %4553 = vmatprep.mubr.f32.mxu0 %v2855_v60  ;;  %v2858_v29 = vld [vmem:[#allocation2 + $0x172] sm:$0xff]  ;;  %v2557_v22 = vld [vmem:[#allocation2 + $0x1a1] sm:$0xff] }
 0x14f   : > { %v1224_v62 = vpop.f32.mrf.mxu0  ;;  %v3995_v59 = vpop.f32.mrf.mxu1  ;;  %4474 = vmatmul.mubr.f32.gmra.mxu1 %v2551_v52 }
 0x150   : > { %v5921_v47 = vadd.f32 %v1224_v62, %v952_v61  ;;  %v967_v55 = vadd.f32 %v3995_v59, %v5754_v16  ;;  %4476 = vmatprep.mubr.f32.mxu1 %v2552_v17 }
 0x151   : > { %v4075_v58 = vpop.f32.mrf.mxu0  ;;  %4554 = vmatmul.mubr.f32.gmra.mxu0 %v2856_v51  ;;  %v961_v39 = vpop.f32.mrf.mxu1 }
 0x152   : > { %v5924_v43 = vadd.f32 %v4075_v58, %v967_v55  ;;  %v962_v38 = vadd.f32 %v961_v39, %v5763_v31  ;;  %4556 = vmatprep.mubr.f32.mxu0 %v2857_v48 }
 0x153   : > { %v1234_v25 = vpop.f32.mrf.mxu0  ;;  %v3998_v13 = vpop.f32.mrf.mxu1  ;;  %4477 = vmatmul.mubr.f32.gmra.mxu1 %v2553_v30 }
 0x154   : > { %v5927_v18 = vadd.f32 %v1234_v25, %v962_v38  ;;  %v977_v9 = vadd.f32 %v3998_v13, %v5777_v21  ;;  %4479 = vmatprep.mubr.f32.mxu1 %v4613_v45 }
 0x155   : > { %v4078_v16 = vpop.f32.mrf.mxu0  ;;  %4557 = vmatmul.mubr.f32.gmra.mxu0 %v2858_v29  ;;  %v971_v50 = vpop.f32.mrf.mxu1 }
 0x156   : > { %v5930_v15 = vadd.f32 %v4078_v16, %v977_v9  ;;  %v972_v56 = vadd.f32 %v971_v50, %v5786_v32  ;;  %4559 = vmatprep.mubr.f32.mxu0 %v5818_v35  ;;  %v2862_v35 = vld [vmem:[#allocation2 + $0x1a2] sm:$0xff] }
 0x157   : > { %v1244_v31 = vpop.f32.mrf.mxu0  ;;  %v4001_v44 = vpop.f32.mrf.mxu1  ;;  %4480 = vmatmul.mubr.f32.gmra.mxu1 %v4614_v57 }
 0x158   : > { %v5934_v60 = vadd.f32 %v1244_v31, %v972_v56  ;;  %v987_v21 = vadd.f32 %v4001_v44, %v5800_v27  ;;  %4482 = vmatprep.mubr.f32.mxu1 %v2556_v3 }
 0x159   : > { %v4081_v52 = vpop.f32.mrf.mxu0  ;;  %4560 = vmatmul.mubr.f32.gmra.mxu0 %v5821_v6  ;;  %v981_v0 = vpop.f32.mrf.mxu1 }
 0x15a   : > { %v5938_v5 = vadd.f32 %v4081_v52, %v987_v21  ;;  %v982_v32 = vadd.f32 %v981_v0, %v5809_v54  ;;  %4562 = vmatprep.mubr.f32.mxu0 %v2861_v11 }
 0x15b   : > { %v1254_v17 = vpop.f32.mrf.mxu0  ;;  %v4004_v61 = vpop.f32.mrf.mxu1  ;;  %4483 = vmatmul.mubr.f32.gmra.mxu1 %v2557_v22 }
 0x15c   : > { %v5941_v51 = vadd.f32 %v1254_v17, %v982_v32  ;;  %v997_v62 = vadd.f32 %v4004_v61, %v5824_v34 }
 0x15d   : > { %v4084_v27 = vpop.f32.mrf.mxu0  ;;  %4563 = vmatmul.mubr.f32.gmra.mxu0 %v2862_v35  ;;  %v991_v59 = vpop.f32.mrf.mxu1 }
 0x15e   : > { %v5944_v48 = vadd.f32 %v4084_v27, %v997_v62  ;;  %v992_v6 = vadd.f32 %v991_v59, %v5833_v2 }
 0x15f   : > { %v1264_v55 = vpop.f32.mrf.mxu0  ;;  %v4119_v30 = vpop.f32.mrf.mxu1 }
 0x160   : > { %v5947_v58 = vadd.f32 %v1264_v55, %v992_v6  ;;  %v1579_v54 = vadd.f32 %v4119_v30, %v5841_v46 }
 0x161   : > { %v4199_v39 = vpop.f32.mrf.mxu0  ;;  %v1419_v38 = vpop.f32.mrf.mxu1 }
 0x162   : > { %v5950_v29 = vadd.f32 %v4199_v39, %v1579_v54  ;;  %v1578_v25 = vadd.f32 %v1419_v38, %v5844_v10 }
 0x163   : > { %v1724_v34 = vpop.f32.mrf.mxu0  ;;  %v4122_v13 = vpop.f32.mrf.mxu1 }
 0x164   : > { %v5953_v9 = vadd.f32 %v1724_v34, %v1578_v25  ;;  %v1581_v45 = vadd.f32 %v4122_v13, %v5847_v40 }
 0x165   : > { %v4202_v16 = vpop.f32.mrf.mxu0  ;;  %v1429_v2 = vpop.f32.mrf.mxu1 }
 0x166   : > { %v5956_v50 = vadd.f32 %v4202_v16, %v1581_v45  ;;  %v1580_v3 = vadd.f32 %v1429_v2, %v5850_v26 }
 0x167   : > { %v1734_v56 = vpop.f32.mrf.mxu0  ;;  %v4125_v46 = vpop.f32.mrf.mxu1 }
 0x168   : > { %v5959_v31 = vadd.f32 %v1734_v56, %v1580_v3  ;;  %v1583_v44 = vadd.f32 %v4125_v46, %v5853_v4 }
 0x169   : > { %v4205_v57 = vpop.f32.mrf.mxu0  ;;  %v1439_v10 = vpop.f32.mrf.mxu1 }
 0x16a   : > { %v5962_v11 = vadd.f32 %v4205_v57, %v1583_v44  ;;  %v1582_v21 = vadd.f32 %v1439_v10, %v5856_v37 }
 0x16b   : > { %v1744_v22 = vpop.f32.mrf.mxu0  ;;  %v4128_v40 = vpop.f32.mrf.mxu1 }
 0x16c   : > { %v5965_v52 = vadd.f32 %v1744_v22, %v1582_v21  ;;  %v1585_v0 = vadd.f32 %v4128_v40, %v5859_v36 }
 0x16d   : > { %v4208_v32 = vpop.f32.mrf.mxu0  ;;  %v1449_v26 = vpop.f32.mrf.mxu1 }
 0x16e   : > { %v5968_v35 = vadd.f32 %v4208_v32, %v1585_v0  ;;  %v1584_v17 = vadd.f32 %v1449_v26, %v5862_v1 }
 0x16f   : > { %v1754_v61 = vpop.f32.mrf.mxu0  ;;  %v4131_v4 = vpop.f32.mrf.mxu1 }
 0x170   : > { %v5971_v62 = vadd.f32 %v1754_v61, %v1584_v17  ;;  %v1587_v27 = vadd.f32 %v4131_v4, %v5865_v28 }
 0x171   : > { %v4211_v59 = vpop.f32.mrf.mxu0  ;;  %v1459_v37 = vpop.f32.mrf.mxu1 }
 0x172   : > { %v5974_v6 = vadd.f32 %v4211_v59, %v1587_v27  ;;  %v1586_v55 = vadd.f32 %v1459_v37, %v5868_v49 }
 0x173   : > { %v1764_v30 = vpop.f32.mrf.mxu0  ;;  %v4134_v36 = vpop.f32.mrf.mxu1 }
 0x174   : > { %v5977_v54 = vadd.f32 %v1764_v30, %v1586_v55  ;;  %v1589_v39 = vadd.f32 %v4134_v36, %v5872_v19 }
 0x175   : > { %v4214_v38 = vpop.f32.mrf.mxu0  ;;  %v1469_v1 = vpop.f32.mrf.mxu1 }
 0x176   : > { %v5980_v25 = vadd.f32 %v4214_v38, %v1589_v39  ;;  %v1588_v34 = vadd.f32 %v1469_v1, %v5876_v8 }
 0x177   : > { %v1774_v13 = vpop.f32.mrf.mxu0  ;;  %v4137_v28 = vpop.f32.mrf.mxu1 }
 0x178   : > { %v5983_v45 = vadd.f32 %v1774_v13, %v1588_v34  ;;  %v1591_v16 = vadd.f32 %v4137_v28, %v5880_v33 }
 0x179   : > { %v4217_v2 = vpop.f32.mrf.mxu0  ;;  %v1479_v49 = vpop.f32.mrf.mxu1 }
 0x17a   : > { %v5986_v3 = vadd.f32 %v4217_v2, %v1591_v16  ;;  %v1590_v56 = vadd.f32 %v1479_v49, %v5884_v7 }
 0x17b   : > { %v1784_v46 = vpop.f32.mrf.mxu0  ;;  %v4140_v19 = vpop.f32.mrf.mxu1 }
 0x17c   : > { %v5989_v44 = vadd.f32 %v1784_v46, %v1590_v56  ;;  %v1593_v57 = vadd.f32 %v4140_v19, %v5888_v14 }
 0x17d   : > { %v4220_v10 = vpop.f32.mrf.mxu0  ;;  %v1489_v8 = vpop.f32.mrf.mxu1 }
 0x17e   : > { %v5992_v21 = vadd.f32 %v4220_v10, %v1593_v57  ;;  %v1592_v22 = vadd.f32 %v1489_v8, %v5892_v53 }
 0x17f   : > { %v1794_v40 = vpop.f32.mrf.mxu0  ;;  %v4143_v33 = vpop.f32.mrf.mxu1 }
 0x180   : > { %v5995_v0 = vadd.f32 %v1794_v40, %v1592_v22  ;;  %v1595_v32 = vadd.f32 %v4143_v33, %v5896_v12 }
 0x181   : > { %v4223_v26 = vpop.f32.mrf.mxu0  ;;  %v1499_v7 = vpop.f32.mrf.mxu1 }
 0x182   : > { %v5998_v17 = vadd.f32 %v4223_v26, %v1595_v32  ;;  %v1594_v61 = vadd.f32 %v1499_v7, %v5900_v23 }
 0x183   : > { %v1804_v4 = vpop.f32.mrf.mxu0  ;;  %v4146_v14 = vpop.f32.mrf.mxu1 }
 0x184   : > { %v6001_v27 = vadd.f32 %v1804_v4, %v1594_v61  ;;  %v1597_v59 = vadd.f32 %v4146_v14, %v5904_v63 }
 0x185   : > { %v4226_v37 = vpop.f32.mrf.mxu0  ;;  %v1509_v53 = vpop.f32.mrf.mxu1 }
 0x186   : > { %v6004_v55 = vadd.f32 %v4226_v37, %v1597_v59  ;;  %v1596_v30 = vadd.f32 %v1509_v53, %v5908_v42 }
 0x187   : > { %v1814_v36 = vpop.f32.mrf.mxu0  ;;  %v4149_v12 = vpop.f32.mrf.mxu1 }
 0x188   : > { %6560 = vst [vmem:[#allocation3_spill] sm:$0xff] %v6004_v55  ;;  %v6007_v39 = vadd.f32 %v1814_v36, %v1596_v30  ;;  %v1599_v38 = vadd.f32 %v4149_v12, %v5912_v41 }
 0x189   : > { %v4229_v1 = vpop.f32.mrf.mxu0  ;;  %v1519_v23 = vpop.f32.mrf.mxu1 }
 0x18a   : > { %6561 = vst [vmem:[#allocation4_spill] sm:$0xff] %v6007_v39  ;;  %v6010_v34 = vadd.f32 %v4229_v1, %v1599_v38  ;;  %v1598_v13 = vadd.f32 %v1519_v23, %v5915_v20 }
 0x18b   : > { %v1824_v28 = vpop.f32.mrf.mxu0  ;;  %v4152_v63 = vpop.f32.mrf.mxu1 }
 0x18c   : > { %6562 = vst [vmem:[#allocation5_spill] sm:$0xff] %v6010_v34  ;;  %v6013_v16 = vadd.f32 %v1824_v28, %v1598_v13  ;;  %v1601_v2 = vadd.f32 %v4152_v63, %v5918_v24 }
 0x18d   : > { %v4232_v49 = vpop.f32.mrf.mxu0  ;;  %v1529_v42 = vpop.f32.mrf.mxu1 }
 0x18e   : > { %6563 = vst [vmem:[#allocation6_spill] sm:$0xff] %v6013_v16  ;;  %v6016_v56 = vadd.f32 %v4232_v49, %v1601_v2  ;;  %v1600_v46 = vadd.f32 %v1529_v42, %v5921_v47 }
 0x18f   : > { %v1834_v19 = vpop.f32.mrf.mxu0  ;;  %v4155_v41 = vpop.f32.mrf.mxu1 }
 0x190   : > { %6564 = vst [vmem:[#allocation7_spill] sm:$0xff] %v6016_v56  ;;  %v6019_v57 = vadd.f32 %v1834_v19, %v1600_v46  ;;  %v1603_v10 = vadd.f32 %v4155_v41, %v5924_v43 }
 0x191   : > { %v4235_v8 = vpop.f32.mrf.mxu0  ;;  %v1539_v20 = vpop.f32.mrf.mxu1 }
 0x192   : > { %6565 = vst [vmem:[#allocation8_spill] sm:$0xff] %v6019_v57  ;;  %v6022_v22 = vadd.f32 %v4235_v8, %v1603_v10  ;;  %v1602_v40 = vadd.f32 %v1539_v20, %v5927_v18 }
 0x193   : > { %v1844_v33 = vpop.f32.mrf.mxu0  ;;  %v4158_v24 = vpop.f32.mrf.mxu1 }
 0x194   : > { %6566 = vst [vmem:[#allocation9_spill] sm:$0xff] %v6022_v22  ;;  %v6025_v32 = vadd.f32 %v1844_v33, %v1602_v40  ;;  %v1605_v26 = vadd.f32 %v4158_v24, %v5930_v15 }
 0x195   : > { %v4238_v7 = vpop.f32.mrf.mxu0  ;;  %v1549_v47 = vpop.f32.mrf.mxu1 }
 0x196   : > { %6567 = vst [vmem:[#allocation10_spill] sm:$0xff] %v6025_v32  ;;  %v6028_v61 = vadd.f32 %v4238_v7, %v1605_v26  ;;  %v1604_v4 = vadd.f32 %v1549_v47, %v5934_v60 }
 0x197   : > { %v1854_v14 = vpop.f32.mrf.mxu0  ;;  %v4161_v43 = vpop.f32.mrf.mxu1 }
 0x198   : > { %6568 = vst [vmem:[#allocation11_spill] sm:$0xff] %v6028_v61  ;;  %v6031_v59 = vadd.f32 %v1854_v14, %v1604_v4  ;;  %v1607_v37 = vadd.f32 %v4161_v43, %v5938_v5 }
 0x199   : > { %v4241_v53 = vpop.f32.mrf.mxu0  ;;  %v1559_v18 = vpop.f32.mrf.mxu1 }
 0x19a   : > { %6569 = vst [vmem:[#allocation12_spill] sm:$0xff] %v6031_v59  ;;  %v6034_v30 = vadd.f32 %v4241_v53, %v1607_v37  ;;  %v1606_v36 = vadd.f32 %v1559_v18, %v5941_v51 }
 0x19b   : > { %v1864_v12 = vpop.f32.mrf.mxu0  ;;  %v4164_v15 = vpop.f32.mrf.mxu1 }
 0x19c   : > { %6570 = vst [vmem:[#allocation13_spill] sm:$0xff] %v6034_v30  ;;  %v6037_v38 = vadd.f32 %v1864_v12, %v1606_v36  ;;  %v1609_v1 = vadd.f32 %v4164_v15, %v5944_v48 }
 0x19d   : > { %v4244_v23 = vpop.f32.mrf.mxu0  ;;  %v1569_v60 = vpop.f32.mrf.mxu1 }
 0x19e   : > { %6571 = vst [vmem:[#allocation14_spill] sm:$0xff] %v6037_v38  ;;  %v6040_v13 = vadd.f32 %v4244_v23, %v1609_v1  ;;  %v1608_v28 = vadd.f32 %v1569_v60, %v5947_v58 }
 0x19f   : > { %v1874_v63 = vpop.f32.mrf.mxu0  ;;  %v4279_v5 = vpop.f32.mrf.mxu1 }
 0x1a0   : > { %6572 = vst [vmem:[#allocation15_spill] sm:$0xff] %v6040_v13  ;;  %v6043_v2 = vadd.f32 %v1874_v63, %v1608_v28 }
 0x1a1   : > { %v6045_v49 = vpop.f32.mrf.mxu0  ;;  %v2029_v42 = vpop.f32.mrf.mxu1 }
 0x1a2   : > { %6573 = vst [vmem:[#allocation16_spill] sm:$0xff] %v6043_v2 }
 0x1a3   : > { %v6047_v51 = vpop.f32.mrf.mxu0  ;;  %v4282_v46 = vpop.f32.mrf.mxu1 }
 0x1a5   : > { %v6049_v19 = vpop.f32.mrf.mxu0  ;;  %v6051_v41 = vpop.f32.mrf.mxu1 }
 0x1a7   : > { %v6053_v48 = vpop.f32.mrf.mxu0  ;;  %v6055_v10 = vpop.f32.mrf.mxu1 }
 0x1a9   : > { %v6057_v8 = vpop.f32.mrf.mxu0  ;;  %v6059_v58 = vpop.f32.mrf.mxu1 }
 0x1ab   : > { %v6061_v20 = vpop.f32.mrf.mxu0  ;;  %v6063_v40 = vpop.f32.mrf.mxu1 }
 0x1ad   : > { %v6065_v33 = vpop.f32.mrf.mxu0  ;;  %v6067_v24 = vpop.f32.mrf.mxu1 }
 0x1af   : > { %v6069_v26 = vpop.f32.mrf.mxu0  ;;  %v6071_v7 = vpop.f32.mrf.mxu1 }
 0x1b1   : > { %v6073_v47 = vpop.f32.mrf.mxu0  ;;  %v6075_v4 = vpop.f32.mrf.mxu1 }
 0x1b3   : > { %v6077_v14 = vpop.f32.mrf.mxu0  ;;  %v6079_v43 = vpop.f32.mrf.mxu1 }
 0x1b5   : > { %v6081_v37 = vpop.f32.mrf.mxu0  ;;  %v6083_v53 = vpop.f32.mrf.mxu1 }
 0x1b7   : > { %v6085_v18 = vpop.f32.mrf.mxu0  ;;  %v6087_v36 = vpop.f32.mrf.mxu1 }
 0x1b9   : > { %v6089_v12 = vpop.f32.mrf.mxu0  ;;  %v6091_v15 = vpop.f32.mrf.mxu1 }
 0x1bb   : > { %v6093_v1 = vpop.f32.mrf.mxu0  ;;  %v6095_v23 = vpop.f32.mrf.mxu1 }
 0x1bd   : > { %v6097_v60 = vpop.f32.mrf.mxu0  ;;  %v6099_v28 = vpop.f32.mrf.mxu1 }
 0x1bf   : > { %v6101_v63 = vpop.f32.mrf.mxu0  ;;  %v6103_v2 = vpop.f32.mrf.mxu1 }
 0x1c1   : > { %v6105_v13 = vpop.f32.mrf.mxu0  ;;  %v6107_v38 = vpop.f32.mrf.mxu1 }
 0x1c3   : > { %v6109_v30 = vpop.f32.mrf.mxu0  ;;  %v6111_v59 = vpop.f32.mrf.mxu1 }
 0x1c4   : > { %6574 = vst [vmem:[#allocation17_spill] sm:$0xff] %v6109_v30  ;;  %6575 = vst [vmem:[#allocation18_spill] sm:$0xff] %v6111_v59 }
 0x1c5   : > { %v6113_v61 = vpop.f32.mrf.mxu0  ;;  %v6115_v32 = vpop.f32.mrf.mxu1 }
 0x1c6   : > { %6576 = vst [vmem:[#allocation19_spill] sm:$0xff] %v6113_v61  ;;  %6577 = vst [vmem:[#allocation20_spill] sm:$0xff] %v6115_v32 }
 0x1c7   : > { %v6117_v22 = vpop.f32.mrf.mxu0  ;;  %v6119_v57 = vpop.f32.mrf.mxu1 }
 0x1c8   : > { %6578 = vst [vmem:[#allocation21_spill] sm:$0xff] %v6117_v22  ;;  %6579 = vst [vmem:[#allocation22_spill] sm:$0xff] %v6119_v57 }
 0x1c9   : > { %v6121_v56 = vpop.f32.mrf.mxu0  ;;  %v6123_v16 = vpop.f32.mrf.mxu1 }
 0x1ca   : > { %6580 = vst [vmem:[#allocation23_spill] sm:$0xff] %v6121_v56  ;;  %6581 = vst [vmem:[#allocation24_spill] sm:$0xff] %v6123_v16 }
 0x1cb   : > { %v6125_v34 = vpop.f32.mrf.mxu0  ;;  %v6127_v39 = vpop.f32.mrf.mxu1 }
 0x1cc   : > { %6582 = vst [vmem:[#allocation25_spill] sm:$0xff] %v6125_v34  ;;  %6583 = vst [vmem:[#allocation26_spill] sm:$0xff] %v6127_v39 }
 0x1cd   : > { %v6129_v55 = vpop.f32.mrf.mxu0  ;;  %v6131_v30 = vpop.f32.mrf.mxu1 }
 0x1ce   : > { %6584 = vst [vmem:[#allocation27_spill] sm:$0xff] %v6129_v55  ;;  %6585 = vst [vmem:[#allocation28_spill] sm:$0xff] %v6131_v30 }
 0x1cf   : > { %v6133_v59 = vpop.f32.mrf.mxu0  ;;  %v6135_v61 = vpop.f32.mrf.mxu1 }
 0x1d0   : > { %6586 = vst [vmem:[#allocation29_spill] sm:$0xff] %v6133_v59  ;;  %6587 = vst [vmem:[#allocation30_spill] sm:$0xff] %v6135_v61 }
 0x1d1   : > { %v6137_v32 = vpop.f32.mrf.mxu0  ;;  %v6139_v22 = vpop.f32.mrf.mxu1 }
 0x1d2   : > { %6588 = vst [vmem:[#allocation31_spill] sm:$0xff] %v6137_v32  ;;  %6589 = vst [vmem:[#allocation32_spill] sm:$0xff] %v6139_v22  ;;  %v2189_v32 = vadd.f32 %v4279_v5, %v5950_v29  ;;  %v2190_v29 = vadd.f32 %v6051_v41, %v5959_v31  ;;  %v2192_v31 = vadd.f32 %v6059_v58, %v5965_v52 }
 0x1d3   : > { %v6141_v57 = vpop.f32.mrf.mxu0  ;;  %v6143_v56 = vpop.f32.mrf.mxu1 }
 0x1d4   : > { %6590 = vst [vmem:[#allocation33_spill] sm:$0xff] %v6141_v57  ;;  %6591 = vst [vmem:[#allocation34_spill] sm:$0xff] %v6143_v56  ;;  %v2188_v56 = vadd.f32 %v2029_v42, %v5953_v9 }
 0x1d5   : > { %v6145_v16 = vpop.f32.mrf.mxu0  ;;  %v6147_v34 = vpop.f32.mrf.mxu1 }
 0x1d6   : > { %6592 = vst [vmem:[#allocation35_spill] sm:$0xff] %v6145_v16  ;;  %6593 = vst [vmem:[#allocation36_spill] sm:$0xff] %v6147_v34 }
 0x1d7   : > { %v6149_v39 = vpop.f32.mrf.mxu0  ;;  %v6151_v55 = vpop.f32.mrf.mxu1 }
 0x1d8   : > { %6594 = vst [vmem:[#allocation37_spill] sm:$0xff] %v6149_v39  ;;  %6595 = vst [vmem:[#allocation38_spill] sm:$0xff] %v6151_v55  ;;  %v2495_v39 = vadd.f32 %v6045_v49, %v2189_v32  ;;  %v2191_v55 = vadd.f32 %v4282_v46, %v5956_v50  ;;  %v2193_v49 = vadd.f32 %v6055_v10, %v5962_v11 }
 0x1d9   : > { %v6153_v59 = vpop.f32.mrf.mxu0  ;;  %v6155_v61 = vpop.f32.mrf.mxu1 }
 0x1da   : > { %6596 = vst [vmem:[#allocation39_spill] sm:$0xff] %v6153_v59  ;;  %6597 = vst [vmem:[#allocation40_spill] sm:$0xff] %v6155_v61  ;;  %v2494_v61 = vadd.f32 %v6047_v51, %v2188_v56  ;;  %v2497_v50 = vadd.f32 %v6049_v19, %v2191_v55  ;;  %v2496_v51 = vadd.f32 %v6053_v48, %v2190_v29 }
 0x1db   : > { %v6158_v22 = vpop.f32.mrf.mxu0  ;;  %v6160_v57 = vpop.f32.mrf.mxu1  ;;  %v2499_v11 = vadd.f32 %v6057_v8, %v2193_v49  ;;  %v2498_v48 = vadd.f32 %v6061_v20, %v2192_v31 }
 0x1dd   : > { %v6163_v16 = vpop.f32.mrf.mxu0  ;;  %v6165_v34 = vpop.f32.mrf.mxu1 }
 0x1df   : > { %v6169_v30 = vpop.f32.mrf.mxu0  ;;  %v4439_v59 = vpop.f32.mrf.mxu1 }
 0x1e0   : > { %v2800_v5 = vadd.f32 %v4439_v59, %v2495_v39 }
 0x1e1   : > { %v4519_v9 = vpop.f32.mrf.mxu0  ;;  %v2640_v32 = vpop.f32.mrf.mxu1 }
 0x1e2   : > { %v6184_v56 = vadd.f32 %v4519_v9, %v2800_v5  ;;  %v2799_v42 = vadd.f32 %v2640_v32, %v2494_v61  ;;  %v2195_v61 = vadd.f32 %v6063_v40, %v5968_v35  ;;  %v2194_v5 = vadd.f32 %v6067_v24, %v5971_v62 }
 0x1e3   : > { %v2945_v39 = vpop.f32.mrf.mxu0  ;;  %v4442_v59 = vpop.f32.mrf.mxu1  ;;  %v2197_v40 = vadd.f32 %v6071_v7, %v5974_v6 }
 0x1e4   : > { %3137 = vst [vmem:[%s6179_s11 + $0x8] sm:$0xff] %v6184_v56  ;;  %v6191_v46 = vadd.f32 %v2945_v39, %v2799_v42  ;;  %v2802_v41 = vadd.f32 %v4442_v59, %v2497_v50  ;;  %v2501_v20 = vadd.f32 %v6065_v33, %v2195_v61  ;;  %v2196_v42 = vadd.f32 %v6075_v4, %v5977_v54 }
 0x1e5   : > { %v4522_v55 = vpop.f32.mrf.mxu0  ;;  %v2650_v19 = vpop.f32.mrf.mxu1  ;;  %v2500_v59 = vadd.f32 %v6069_v26, %v2194_v5 }
 0x1e6   : > { %3136 = vst [vmem:[%s6179_s11] sm:$0xff] %v6191_v46  ;;  %v6198_v52 = vadd.f32 %v4522_v55, %v2802_v41  ;;  %v2801_v10 = vadd.f32 %v2650_v19, %v2496_v51  ;;  %v3168_v9 = vadd.f32 %v6184_v56, %v6191_v46  ;;  %v2503_v51 = vadd.f32 %v6073_v47, %v2197_v40 }
 0x1e7   : > { %v2955_v58 = vpop.f32.mrf.mxu0  ;;  %v4445_v29 = vpop.f32.mrf.mxu1  ;;  %v2199_v19 = vadd.f32 %v6079_v43, %v5980_v25  ;;  %v2198_v47 = vadd.f32 %v6083_v53, %v5983_v45 }
 0x1e8   : > { %3139 = vst [vmem:[%s6179_s11 + $0x18] sm:$0xff] %v6198_v52  ;;  %v6207_v35 = vadd.f32 %v2955_v58, %v2801_v10  ;;  %v2804_v8 = vadd.f32 %v4445_v29, %v2499_v11  ;;  %v2502_v11 = vadd.f32 %v6077_v14, %v2196_v42  ;;  %v2201_v58 = vadd.f32 %v6087_v36, %v5986_v3 }
 0x1e9   : > { %v4525_v32 = vpop.f32.mrf.mxu0  ;;  %v2660_v50 = vpop.f32.mrf.mxu1  ;;  %v2505_v14 = vadd.f32 %v6081_v37, %v2199_v19  ;;  %v2203_v42 = vadd.f32 %v6095_v23, %v5992_v21  ;;  %v2204_v19 = vadd.f32 %v6107_v38, %v6001_v27 }
 0x1ea   : > { %3138 = vst [vmem:[%s6179_s11 + $0x10] sm:$0xff] %v6207_v35  ;;  %v3169_v62 = vadd.f32 %v3168_v9, %v6207_v35  ;;  %v6215_v24 = vadd.f32 %v4525_v32, %v2804_v8  ;;  %v2803_v49 = vadd.f32 %v2660_v50, %v2498_v48  ;;  %v2200_v8 = vadd.f32 %v6091_v15, %v5989_v44 }
 0x1eb   : > { %v2965_v31 = vpop.f32.mrf.mxu0  ;;  %v4448_v39 = vpop.f32.mrf.mxu1  ;;  %v2504_v50 = vadd.f32 %v6085_v18, %v2198_v47 }
 0x1ec   : > { %3141 = vst [vmem:[%s6179_s11 + $0x28] sm:$0xff] %v6215_v24  ;;  %v6222_v6 = vadd.f32 %v2965_v31, %v2803_v49  ;;  %v3170_v33 = vadd.f32 %v3169_v62, %v6198_v52  ;;  %v2806_v7 = vadd.f32 %v4448_v39, %v2501_v20  ;;  %v2507_v20 = vadd.f32 %v6089_v12, %v2201_v58 }
 0x1ed   : > { %v4528_v41 = vpop.f32.mrf.mxu0  ;;  %v2670_v55 = vpop.f32.mrf.mxu1  ;;  %v2506_v31 = vadd.f32 %v6093_v1, %v2200_v8  ;;  %v2202_v12 = vadd.f32 %v6099_v28, %v5995_v0  ;;  %v2509_v1 = vadd.f32 %v6097_v60, %v2203_v42  ;;  %v6602_v8 = vld [vmem:[#allocation20_spill] sm:$0xff]  ;;  %v6605_v42 = vld [vmem:[#allocation19_spill] sm:$0xff] }
 0x1ee   : > { %3140 = vst [vmem:[%s6179_s11 + $0x20] sm:$0xff] %v6222_v6  ;;  %v3171_v54 = vadd.f32 %v3170_v33, %v6222_v6  ;;  %v6231_v26 = vadd.f32 %v4528_v41, %v2806_v7  ;;  %v2805_v4 = vadd.f32 %v2670_v55, %v2500_v59  ;;  %v2205_v7 = vadd.f32 %v6103_v2, %v5998_v17 }
 0x1ef   : > { %v2975_v61 = vpop.f32.mrf.mxu0  ;;  %v4451_v10 = vpop.f32.mrf.mxu1 }
 0x1f0   : > { %3143 = vst [vmem:[%s6179_s11 + $0x38] sm:$0xff] %v6231_v26  ;;  %v6238_v48 = vadd.f32 %v2975_v61, %v2805_v4  ;;  %v3172_v25 = vadd.f32 %v3171_v54, %v6215_v24  ;;  %v2808_v43 = vadd.f32 %v4451_v10, %v2503_v51  ;;  %v2511_v61 = vadd.f32 %v6105_v13, %v2205_v7 }
 0x1f1   : > { %v4531_v29 = vpop.f32.mrf.mxu0  ;;  %v2680_v5 = vpop.f32.mrf.mxu1 }
 0x1f2   : > { %3142 = vst [vmem:[%s6179_s11 + $0x30] sm:$0xff] %v6238_v48  ;;  %v3173_v45 = vadd.f32 %v3172_v25, %v6238_v48  ;;  %v6247_v53 = vadd.f32 %v4531_v29, %v2808_v43  ;;  %v2807_v9 = vadd.f32 %v2680_v5, %v2502_v11  ;;  %v2508_v11 = vadd.f32 %v6101_v63, %v2202_v12  ;;  %v6598_v25 = vld [vmem:[#allocation3_spill] sm:$0xff]  ;;  %v6599_v43 = vld [vmem:[#allocation18_spill] sm:$0xff]  ;;  %v6600_v29 = vld [vmem:[#allocation17_spill] sm:$0xff] }
 0x1f3   : > { %v2985_v40 = vpop.f32.mrf.mxu0  ;;  %v4454_v32 = vpop.f32.mrf.mxu1  ;;  %v2207_v58 = vadd.f32 %v6599_v43, %v6598_v25  ;;  %v2510_v5 = vadd.f32 %v6600_v29, %v2204_v19  ;;  %v6607_v12 = vld [vmem:[#allocation24_spill] sm:$0xff]  ;;  %v6609_v19 = vld [vmem:[#allocation23_spill] sm:$0xff]  ;;  %v6612_v43 = vld [vmem:[#allocation25_spill] sm:$0xff] }
 0x1f4   : > { %3145 = vst [vmem:[%s6179_s11 + $0x48] sm:$0xff] %v6247_v53  ;;  %v6254_v3 = vadd.f32 %v2985_v40, %v2807_v9  ;;  %v3174_v37 = vadd.f32 %v3173_v45, %v6231_v26  ;;  %v2810_v36 = vadd.f32 %v4454_v32, %v2505_v14  ;;  %v6601_v9 = vld [vmem:[#allocation4_spill] sm:$0xff] }
 0x1f5   : > { %v4534_v62 = vpop.f32.mrf.mxu0  ;;  %v2690_v49 = vpop.f32.mrf.mxu1  ;;  %v2206_v13 = vadd.f32 %v6602_v8, %v6601_v9  ;;  %v6613_v29 = vld [vmem:[#allocation8_spill] sm:$0xff] }
 0x1f6   : > { %3144 = vst [vmem:[%s6179_s11 + $0x40] sm:$0xff] %v6254_v3  ;;  %v3175_v44 = vadd.f32 %v3174_v37, %v6254_v3  ;;  %v6263_v18 = vadd.f32 %v4534_v62, %v2810_v36  ;;  %v2809_v15 = vadd.f32 %v2690_v49, %v2504_v50  ;;  %v6603_v37 = vld [vmem:[#allocation5_spill] sm:$0xff]  ;;  %v6604_v36 = vld [vmem:[#allocation22_spill] sm:$0xff] }
 0x1f7   : > { %v2995_v39 = vpop.f32.mrf.mxu0  ;;  %v4457_v59 = vpop.f32.mrf.mxu1 }
 0x1f8   : > { %3147 = vst [vmem:[%s6179_s11 + $0x58] sm:$0xff] %v6263_v18  ;;  %v6270_v33 = vadd.f32 %v2995_v39, %v2809_v15  ;;  %v3176_v21 = vadd.f32 %v3175_v44, %v6247_v53  ;;  %v2812_v23 = vadd.f32 %v4457_v59, %v2507_v20  ;;  %v2209_v20 = vadd.f32 %v6604_v36, %v6603_v37  ;;  %v6606_v59 = vld [vmem:[#allocation6_spill] sm:$0xff] }
 0x1f9   : > { %v4537_v51 = vpop.f32.mrf.mxu0  ;;  %v2700_v41 = vpop.f32.mrf.mxu1  ;;  %v2513_v44 = vadd.f32 %v6605_v42, %v2207_v58 }
 0x1fa   : > { %3146 = vst [vmem:[%s6179_s11 + $0x50] sm:$0xff] %v6270_v33  ;;  %v3177_v0 = vadd.f32 %v3176_v21, %v6270_v33  ;;  %v6279_v28 = vadd.f32 %v4537_v51, %v2812_v23  ;;  %v2811_v55 = vadd.f32 %v2700_v41, %v2506_v31  ;;  %v2208_v21 = vadd.f32 %v6607_v12, %v6606_v59  ;;  %v6608_v51 = vld [vmem:[#allocation21_spill] sm:$0xff] }
 0x1fb   : > { %v3005_v54 = vpop.f32.mrf.mxu0  ;;  %v4460_v4 = vpop.f32.mrf.mxu1  ;;  %v2512_v41 = vadd.f32 %v6608_v51, %v2206_v13  ;;  %v6615_v13 = vld [vmem:[#allocation9_spill] sm:$0xff] }
 0x1fc   : > { %3149 = vst [vmem:[%s6179_s11 + $0x68] sm:$0xff] %v6279_v28  ;;  %v6286_v17 = vadd.f32 %v3005_v54, %v2811_v55  ;;  %v3178_v2 = vadd.f32 %v3177_v0, %v6263_v18  ;;  %v2814_v60 = vadd.f32 %v4460_v4, %v2509_v1  ;;  %v2515_v54 = vadd.f32 %v6609_v19, %v2209_v20  ;;  %v6617_v20 = vld [vmem:[#allocation27_spill] sm:$0xff] }
 0x1fd   : > { %v4540_v10 = vpop.f32.mrf.mxu0  ;;  %v2710_v47 = vpop.f32.mrf.mxu1  ;;  %v2514_v58 = vadd.f32 %v6612_v43, %v2208_v21  ;;  %v6624_v43 = vld [vmem:[#allocation33_spill] sm:$0xff] }
 0x1fe   : > { %3148 = vst [vmem:[%s6179_s11 + $0x60] sm:$0xff] %v6286_v17  ;;  %v3179_v27 = vadd.f32 %v3178_v2, %v6286_v17  ;;  %v6295_v38 = vadd.f32 %v4540_v10, %v2814_v60  ;;  %v2813_v63 = vadd.f32 %v2710_v47, %v2508_v11  ;;  %v6610_v2 = vld [vmem:[#allocation7_spill] sm:$0xff]  ;;  %v6611_v60 = vld [vmem:[#allocation26_spill] sm:$0xff] }
 0x1ff   : > { %v3015_v14 = vpop.f32.mrf.mxu0  ;;  %v4463_v45 = vpop.f32.mrf.mxu1 }
 0x200   : > { %3151 = vst [vmem:[%s6179_s11 + $0x78] sm:$0xff] %v6295_v38  ;;  %v6302_v40 = vadd.f32 %v3015_v14, %v2813_v63  ;;  %v3180_v32 = vadd.f32 %v3179_v27, %v6279_v28  ;;  %v2816_v50 = vadd.f32 %v4463_v45, %v2511_v61  ;;  %v2211_v61 = vadd.f32 %v6611_v60, %v6610_v2  ;;  %v6623_v2 = vld [vmem:[#allocation34_spill] sm:$0xff] }
 0x201   : > { %v4543_v62 = vpop.f32.mrf.mxu0  ;;  %v2720_v49 = vpop.f32.mrf.mxu1 }
 0x202   : > { %3150 = vst [vmem:[%s6179_s11 + $0x70] sm:$0xff] %v6302_v40  ;;  %v3181_v15 = vadd.f32 %v3180_v32, %v6302_v40  ;;  %v6311_v31 = vadd.f32 %v4543_v62, %v2816_v50  ;;  %v2815_v39 = vadd.f32 %v2720_v49, %v2510_v5  ;;  %v6614_v5 = vld [vmem:[#allocation28_spill] sm:$0xff]  ;;  %v6616_v32 = vld [vmem:[#allocation30_spill] sm:$0xff]  ;;  %v2517_v62 = vadd.f32 %v6617_v20, %v2211_v61 }
 0x203   : > { %v3025_v23 = vpop.f32.mrf.mxu0  ;;  %v4466_v7 = vpop.f32.mrf.mxu1  ;;  %v2210_v14 = vadd.f32 %v6614_v5, %v6613_v29  ;;  %v2213_v50 = vadd.f32 %v6616_v32, %v6615_v13  ;;  %v6625_v29 = vld [vmem:[#allocation12_spill] sm:$0xff]  ;;  %v6627_v32 = vld [vmem:[#allocation13_spill] sm:$0xff] }
 0x204   : > { %3153 = vst [vmem:[%s6179_s11 + $0x88] sm:$0xff] %v6311_v31  ;;  %v6318_v1 = vadd.f32 %v3025_v23, %v2815_v39  ;;  %v3182_v0 = vadd.f32 %v3181_v15, %v6295_v38  ;;  %v2818_v55 = vadd.f32 %v4466_v7, %v2513_v44  ;;  %v6618_v15 = vld [vmem:[#allocation10_spill] sm:$0xff]  ;;  %v6619_v39 = vld [vmem:[#allocation32_spill] sm:$0xff]  ;;  %v6620_v23 = vld [vmem:[#allocation29_spill] sm:$0xff] }
 0x205   : > { %v4546_v4 = vpop.f32.mrf.mxu0  ;;  %v2730_v11 = vpop.f32.mrf.mxu1  ;;  %v2212_v59 = vadd.f32 %v6619_v39, %v6618_v15  ;;  %v2516_v7 = vadd.f32 %v6620_v23, %v2210_v14  ;;  %v6626_v5 = vld [vmem:[#allocation36_spill] sm:$0xff] }
 0x206   : > { %3152 = vst [vmem:[%s6179_s11 + $0x80] sm:$0xff] %v6318_v1  ;;  %v3183_v10 = vadd.f32 %v3182_v0, %v6318_v1  ;;  %v6327_v47 = vadd.f32 %v4546_v4, %v2818_v55  ;;  %v2817_v25 = vadd.f32 %v2730_v11, %v2512_v41  ;;  %v6621_v55 = vld [vmem:[#allocation31_spill] sm:$0xff]  ;;  %v2214_v14 = vadd.f32 %v6626_v5, %v6625_v29 }
 0x207   : > { %v3035_v27 = vpop.f32.mrf.mxu0  ;;  %v4469_v63 = vpop.f32.mrf.mxu1  ;;  %v2519_v19 = vadd.f32 %v6621_v55, %v2213_v50  ;;  %v6622_v11 = vld [vmem:[#allocation11_spill] sm:$0xff]  ;;  %v6628_v50 = vld [vmem:[#allocation38_spill] sm:$0xff] }
 0x208   : > { %3155 = vst [vmem:[%s6179_s11 + $0x98] sm:$0xff] %v6327_v47  ;;  %v6334_v45 = vadd.f32 %v3035_v27, %v2817_v25  ;;  %v3184_v9 = vadd.f32 %v3183_v10, %v6311_v31  ;;  %v2820_v8 = vadd.f32 %v4469_v63, %v2515_v54  ;;  %v2215_v60 = vadd.f32 %v6623_v2, %v6622_v11 }
 0x209   : > { %v4549_v37 = vpop.f32.mrf.mxu0  ;;  %v2740_v36 = vpop.f32.mrf.mxu1 }
 0x20a   : > { %3154 = vst [vmem:[%s6179_s11 + $0x90] sm:$0xff] %v6334_v45  ;;  %v3185_v49 = vadd.f32 %v3184_v9, %v6334_v45  ;;  %v6343_v42 = vadd.f32 %v4549_v37, %v2820_v8  ;;  %v2819_v44 = vadd.f32 %v2740_v36, %v2514_v58  ;;  %v2518_v58 = vadd.f32 %v6624_v43, %v2212_v59  ;;  %v6630_v59 = vld [vmem:[#allocation14_spill] sm:$0xff] }
 0x20b   : > { %v3045_v12 = vpop.f32.mrf.mxu0  ;;  %v4472_v21 = vpop.f32.mrf.mxu1  ;;  %v2217_v37 = vadd.f32 %v6628_v50, %v6627_v32 }
 0x20c   : > { %3157 = vst [vmem:[%s6179_s11 + $0xa8] sm:$0xff] %v6343_v42  ;;  %v6350_v51 = vadd.f32 %v3045_v12, %v2819_v44  ;;  %v3186_v41 = vadd.f32 %v3185_v49, %v6327_v47  ;;  %v2822_v0 = vadd.f32 %v4472_v21, %v2517_v62  ;;  %v6629_v62 = vld [vmem:[#allocation35_spill] sm:$0xff]  ;;  %v6631_v12 = vld [vmem:[#allocation40_spill] sm:$0xff] }
 0x20d   : > { %v4552_v54 = vpop.f32.mrf.mxu0  ;;  %v2750_v4 = vpop.f32.mrf.mxu1  ;;  %v2521_v49 = vadd.f32 %v6629_v62, %v2215_v60  ;;  %v2216_v21 = vadd.f32 %v6631_v12, %v6630_v59 }
 0x20e   : > { %3156 = vst [vmem:[%s6179_s11 + $0xa0] sm:$0xff] %v6350_v51  ;;  %v3187_v61 = vadd.f32 %v3186_v41, %v6350_v51  ;;  %v6359_v10 = vadd.f32 %v4552_v54, %v2822_v0  ;;  %v2821_v25 = vadd.f32 %v2750_v4, %v2516_v7  ;;  %v6632_v41 = vld [vmem:[#allocation37_spill] sm:$0xff]  ;;  %v6633_v4 = vld [vmem:[#allocation39_spill] sm:$0xff] }
 0x20f   : > { %v3055_v27 = vpop.f32.mrf.mxu0  ;;  %v4475_v63 = vpop.f32.mrf.mxu1  ;;  %v2520_v0 = vadd.f32 %v6632_v41, %v2214_v14  ;;  %v2523_v11 = vadd.f32 %v6633_v4, %v2217_v37  ;;  %v6635_v14 = vld [vmem:[#allocation16_spill] sm:$0xff] }
 0x210   : > { %3159 = vst [vmem:[%s6179_s11 + $0xb8] sm:$0xff] %v6359_v10  ;;  %v6366_v9 = vadd.f32 %v3055_v27, %v2821_v25  ;;  %v3188_v8 = vadd.f32 %v3187_v61, %v6343_v42  ;;  %v2824_v13 = vadd.f32 %v4475_v63, %v2519_v19  ;;  %v6634_v61 = vld [vmem:[#allocation15_spill] sm:$0xff]  ;;  %v2522_v63 = vadd.f32 %v6158_v22, %v2216_v21 }
 0x211   : > { %v4555_v36 = vpop.f32.mrf.mxu0  ;;  %v2760_v20 = vpop.f32.mrf.mxu1  ;;  %v2219_v25 = vadd.f32 %v6160_v57, %v6634_v61 }
 0x212   : > { %3158 = vst [vmem:[%s6179_s11 + $0xb0] sm:$0xff] %v6366_v9  ;;  %v3189_v44 = vadd.f32 %v3188_v8, %v6366_v9  ;;  %v6375_v15 = vadd.f32 %v4555_v36, %v2824_v13  ;;  %v2823_v39 = vadd.f32 %v2760_v20, %v2518_v58  ;;  %v2218_v8 = vadd.f32 %v6165_v34, %v6635_v14 }
 0x213   : > { %v3065_v23 = vpop.f32.mrf.mxu0  ;;  %v4478_v7 = vpop.f32.mrf.mxu1  ;;  %v2525_v36 = vadd.f32 %v6163_v16, %v2219_v25 }
 0x214   : > { %3161 = vst [vmem:[%s6179_s11 + $0xc8] sm:$0xff] %v6375_v15  ;;  %v6382_v55 = vadd.f32 %v3065_v23, %v2823_v39  ;;  %v3190_v19 = vadd.f32 %v3189_v44, %v6359_v10  ;;  %v2826_v54 = vadd.f32 %v4478_v7, %v2521_v49  ;;  %v2524_v44 = vadd.f32 %v6169_v30, %v2218_v8 }
 0x215   : > { %v4558_v2 = vpop.f32.mrf.mxu0  ;;  %v2770_v60 = vpop.f32.mrf.mxu1 }
 0x216   : > { %3160 = vst [vmem:[%s6179_s11 + $0xc0] sm:$0xff] %v6382_v55  ;;  %v3191_v43 = vadd.f32 %v3190_v19, %v6382_v55  ;;  %v6391_v58 = vadd.f32 %v4558_v2, %v2826_v54  ;;  %v2825_v27 = vadd.f32 %v2770_v60, %v2520_v0 }
 0x217   : > { %v3075_v29 = vpop.f32.mrf.mxu0  ;;  %v4481_v5 = vpop.f32.mrf.mxu1 }
 0x218   : > { %3163 = vst [vmem:[%s6179_s11 + $0xd8] sm:$0xff] %v6391_v58  ;;  %v6398_v13 = vadd.f32 %v3075_v29, %v2825_v27  ;;  %v3192_v57 = vadd.f32 %v3191_v43, %v6375_v15  ;;  %v2828_v32 = vadd.f32 %v4481_v5, %v2523_v11 }
 0x219   : > { %v4561_v50 = vpop.f32.mrf.mxu0  ;;  %v2780_v37 = vpop.f32.mrf.mxu1 }
 0x21a   : > { %3162 = vst [vmem:[%s6179_s11 + $0xd0] sm:$0xff] %v6398_v13  ;;  %v3193_v22 = vadd.f32 %v3192_v57, %v6398_v13  ;;  %v6405_v20 = vadd.f32 %v4561_v50, %v2828_v32  ;;  %v2827_v34 = vadd.f32 %v2780_v37, %v2522_v63 }
 0x21b   : > { %v3085_v62 = vpop.f32.mrf.mxu0  ;;  %v4484_v49 = vpop.f32.mrf.mxu1 }
 0x21c   : > { %3165 = vst [vmem:[%s6179_s11 + $0xe8] sm:$0xff] %v6405_v20  ;;  %v6410_v39 = vadd.f32 %v3085_v62, %v2827_v34  ;;  %v3194_v59 = vadd.f32 %v3193_v22, %v6391_v58  ;;  %v2830_v16 = vadd.f32 %v4484_v49, %v2525_v36 }
 0x21d   : > { %v4564_v12 = vpop.f32.mrf.mxu0  ;;  %v2790_v21 = vpop.f32.mrf.mxu1 }
 0x21e   : > { %3164 = vst [vmem:[%s6179_s11 + $0xe0] sm:$0xff] %v6410_v39  ;;  %v3195_v23 = vadd.f32 %v3194_v59, %v6410_v39  ;;  %v6416_v7 = vadd.f32 %v4564_v12, %v2830_v16  ;;  %v2829_v41 = vadd.f32 %v2790_v21, %v2524_v44 }
 0x21f   : > { %v3095_v0 = vpop.f32.mrf.mxu0 }
 0x220   : > { %3167 = vst [vmem:[%s6179_s11 + $0xf8] sm:$0xff] %v6416_v7  ;;  %v6420_v30 = vadd.f32 %v3095_v0, %v2829_v41  ;;  %v3196_v19 = vadd.f32 %v3195_v23, %v6405_v20 }
 0x222   : > { %3166 = vst [vmem:[%s6179_s11 + $0xf0] sm:$0xff] %v6420_v30  ;;  %v3197_v54 = vadd.f32 %v3196_v19, %v6420_v30 }
 0x224   : > { %v3198_v4 = vadd.f32 %v3197_v54, %v6416_v7 }
 0x226   : > { %v3199_v11 = vrot.slane %v3198_v4, 4 }
 0x228   : > { %v3200_v2 = vadd.f32 %v3199_v11, %v3198_v4 }
 0x22a   : > { %v3201_v60 = vrot.slane %v3200_v2, 2 }
 0x22c   : > { %v3202_v61 = vadd.f32 %v3201_v60, %v3200_v2 }
 0x22e   : > { %v3203_v25 = vrot.slane %v3202_v61, 1 }
 0x230   : > { %v3204_v43 = vadd.f32 %v3203_v25, %v3202_v61 }
 0x232   : > { %v6427_v27 = vmul.f32 0.00390625, %v3204_v43 }
 0x234   : > { %v3207_v63 = vsub.f32 %v6191_v46, %v6427_v27  ;;  %v3208_v29 = vsub.f32 %v6184_v56, %v6427_v27  ;;  %v3209_v5 = vsub.f32 %v6207_v35, %v6427_v27  ;;  %v3210_v57 = vsub.f32 %v6198_v52, %v6427_v27 }
 0x235   : > { %v3211_v32 = vsub.f32 %v6222_v6, %v6427_v27  ;;  %v3212_v36 = vsub.f32 %v6215_v24, %v6427_v27  ;;  %v3213_v56 = vsub.f32 %v6238_v48, %v6427_v27  ;;  %v3214_v62 = vsub.f32 %v6231_v26, %v6427_v27 }
 0x236   : > { %v3239_v14 = vmul.f32 %v3207_v63, %v3207_v63  ;;  %v3240_v8 = vmul.f32 %v3208_v29, %v3208_v29  ;;  %v3241_v50 = vmul.f32 %v3209_v5, %v3209_v5  ;;  %v3242_v46 = vmul.f32 %v3210_v57, %v3210_v57 }
 0x237   : > { %v3243_v34 = vmul.f32 %v3211_v32, %v3211_v32  ;;  %v3244_v49 = vmul.f32 %v3212_v36, %v3212_v36  ;;  %v3215_v6 = vsub.f32 %v6254_v3, %v6427_v27  ;;  %v3245_v44 = vmul.f32 %v3213_v56, %v3213_v56 }
 0x238   : > { %v3271_v37 = vadd.f32 %v3240_v8, %v3239_v14  ;;  %v3216_v24 = vsub.f32 %v6247_v53, %v6427_v27  ;;  %v3246_v16 = vmul.f32 %v3214_v62, %v3214_v62  ;;  %v3217_v48 = vsub.f32 %v6270_v33, %v6427_v27 }
 0x239   : > { %v3247_v21 = vmul.f32 %v3215_v6, %v3215_v6  ;;  %v3218_v26 = vsub.f32 %v6263_v18, %v6427_v27  ;;  %v3219_v3 = vsub.f32 %v6286_v17, %v6427_v27  ;;  %v3220_v53 = vsub.f32 %v6279_v28, %v6427_v27 }
 0x23a   : > { %v3272_v22 = vadd.f32 %v3271_v37, %v3241_v50  ;;  %v3248_v41 = vmul.f32 %v3216_v24, %v3216_v24  ;;  %v3249_v19 = vmul.f32 %v3217_v48, %v3217_v48  ;;  %v3221_v33 = vsub.f32 %v6302_v40, %v6427_v27 }
 0x23b   : > { %v3250_v4 = vmul.f32 %v3218_v26, %v3218_v26  ;;  %v3251_v2 = vmul.f32 %v3219_v3, %v3219_v3  ;;  %v3222_v18 = vsub.f32 %v6295_v38, %v6427_v27  ;;  %v3252_v61 = vmul.f32 %v3220_v53, %v3220_v53 }
 0x23c   : > { %v3273_v35 = vadd.f32 %v3272_v22, %v3242_v46  ;;  %v3223_v17 = vsub.f32 %v6318_v1, %v6427_v27  ;;  %v3253_v43 = vmul.f32 %v3221_v33, %v3221_v33  ;;  %v3224_v28 = vsub.f32 %v6311_v31, %v6427_v27 }
 0x23d   : > { %v3254_v29 = vmul.f32 %v3222_v18, %v3222_v18  ;;  %v3225_v40 = vsub.f32 %v6334_v45, %v6427_v27  ;;  %v3226_v38 = vsub.f32 %v6327_v47, %v6427_v27  ;;  %v3227_v1 = vsub.f32 %v6350_v51, %v6427_v27 }
 0x23e   : > { %v3274_v52 = vadd.f32 %v3273_v35, %v3243_v34  ;;  %v3255_v14 = vmul.f32 %v3223_v17, %v3223_v17  ;;  %v3256_v57 = vmul.f32 %v3224_v28, %v3224_v28  ;;  %v3228_v31 = vsub.f32 %v6343_v42, %v6427_v27 }
 0x23f   : > { %v3257_v50 = vmul.f32 %v3225_v40, %v3225_v40  ;;  %v3258_v36 = vmul.f32 %v3226_v38, %v3226_v38  ;;  %v3229_v45 = vsub.f32 %v6366_v9, %v6427_v27  ;;  %v3259_v22 = vmul.f32 %v3227_v1, %v3227_v1 }
 0x240   : > { %v3275_v59 = vadd.f32 %v3274_v52, %v3244_v49  ;;  %v3230_v47 = vsub.f32 %v6359_v10, %v6427_v27  ;;  %v3260_v34 = vmul.f32 %v3228_v31, %v3228_v31  ;;  %v3231_v51 = vsub.f32 %v6382_v55, %v6427_v27 }
 0x241   : > { %v3261_v62 = vmul.f32 %v3229_v45, %v3229_v45  ;;  %v3232_v42 = vsub.f32 %v6375_v15, %v6427_v27  ;;  %v3233_v9 = vsub.f32 %v6398_v13, %v6427_v27  ;;  %v3234_v10 = vsub.f32 %v6391_v58, %v6427_v27 }
 0x242   : > { %v3276_v12 = vadd.f32 %v3275_v59, %v3245_v44  ;;  %v3262_v52 = vmul.f32 %v3230_v47, %v3230_v47  ;;  %v3263_v44 = vmul.f32 %v3231_v51, %v3231_v51  ;;  %v3235_v55 = vsub.f32 %v6410_v39, %v6427_v27 }
 0x243   : > { %v3264_v24 = vmul.f32 %v3232_v42, %v3232_v42  ;;  %v3236_v15 = vsub.f32 %v6405_v20, %v6427_v27  ;;  %v3237_v13 = vsub.f32 %v6420_v30, %v6427_v27  ;;  %v3238_v58 = vsub.f32 %v6416_v7, %v6427_v27 }
 0x244   : > { %v3277_v23 = vadd.f32 %v3276_v12, %v3246_v16  ;;  %v3265_v12 = vmul.f32 %v3233_v9, %v3233_v9  ;;  %v3267_v26 = vmul.f32 %v3235_v55, %v3235_v55 }
 0x246   : > { %v3278_v0 = vadd.f32 %v3277_v23, %v3247_v21  ;;  %v3266_v21 = vmul.f32 %v3234_v10, %v3234_v10 }
 0x248   : > { %v3279_v54 = vadd.f32 %v3278_v0, %v3248_v41  ;;  %v3268_v0 = vmul.f32 %v3236_v15, %v3236_v15 }
 0x24a   : > { %v3280_v11 = vadd.f32 %v3279_v54, %v3249_v19  ;;  %v3269_v19 = vmul.f32 %v3237_v13, %v3237_v13  ;;  %v3270_v54 = vmul.f32 %v3238_v58, %v3238_v58 }
 0x24c   : > { %v3281_v60 = vadd.f32 %v3280_v11, %v3250_v4 }
 0x24e   : > { %v3282_v25 = vadd.f32 %v3281_v60, %v3251_v2 }
 0x250   : > { %v3283_v63 = vadd.f32 %v3282_v25, %v3252_v61 }
 0x252   : > { %v3284_v5 = vadd.f32 %v3283_v63, %v3253_v43 }
 0x254   : > { %v3285_v8 = vadd.f32 %v3284_v5, %v3254_v29 }
 0x256   : > { %v3286_v32 = vadd.f32 %v3285_v8, %v3255_v14 }
 0x258   : > { %v3287_v37 = vadd.f32 %v3286_v32, %v3256_v57 }
 0x25a   : > { %v3288_v46 = vadd.f32 %v3287_v37, %v3257_v50 }
 0x25c   : > { %v3289_v56 = vadd.f32 %v3288_v46, %v3258_v36 }
 0x25e   : > { %v3290_v35 = vadd.f32 %v3289_v56, %v3259_v22 }
 0x260   : > { %v3291_v49 = vadd.f32 %v3290_v35, %v3260_v34 }
 0x262   : > { %v3292_v6 = vadd.f32 %v3291_v49, %v3261_v62 }
 0x264   : > { %v3293_v59 = vadd.f32 %v3292_v6, %v3262_v52 }
 0x266   : > { %v3294_v16 = vadd.f32 %v3293_v59, %v3263_v44 }
 0x268   : > { %v3295_v48 = vadd.f32 %v3294_v16, %v3264_v24 }
 0x26a   : > { %v3296_v23 = vadd.f32 %v3295_v48, %v3265_v12 }
 0x26c   : > { %v3297_v41 = vadd.f32 %v3296_v23, %v3266_v21 }
 0x26e   : > { %v3298_v3 = vadd.f32 %v3297_v41, %v3267_v26 }
 0x270   : > { %v3299_v39 = vadd.f32 %v3298_v3, %v3268_v0 }
 0x272   : > { %v3300_v53 = vadd.f32 %v3299_v39, %v3269_v19 }
 0x274   : > { %v3301_v4 = vadd.f32 %v3300_v53, %v3270_v54 }
 0x276   : > { %v3302_v11 = vrot.slane %v3301_v4, 4 }
 0x278   : > { %v3303_v20 = vadd.f32 %v3302_v11, %v3301_v4 }
 0x27a   : > { %v3304_v33 = vrot.slane %v3303_v20, 2 }
 0x27c   : > { %v3305_v2 = vadd.f32 %v3304_v33, %v3303_v20 }
 0x27e   : > { %v3306_v60 = vrot.slane %v3305_v2, 1 }
 0x280   : > { %v3307_v30 = vadd.f32 %v3306_v60, %v3305_v2 }
 0x282   : > { %v3309_v7 = vsel %vm3308_vm0, %v6427_v27, %v3307_v30 }
 0x283   : > { %3310 = vst [vmem:[%s235_s14] sm:$0x3] %v3309_v7 }
 0x284 PF: > { %s16_s18 = sadd.s32 1, %s4621_s18  }
 0x285   : > { %p13_p4 = scmp.ge.s32.totalorder %s16_s18, 4  }
 0x287   :  { %15 = sbr.rel (!%p13_p4) target bundleno = 1 (0x1), region = 81 }

</bundles_post_ra>
